<compile_context>
chip_gen: v6e
topology: v6e:2x2x1
jax: 0.10.0
libtpu: 0.0.40
codegen_flags: <defaults>
</compile_context>

<pallas_src>
import functools
import math

import jax
import jax.numpy as jnp
from jax import lax
from jax.experimental import pallas as pl
from jax.experimental.pallas import tpu as pltpu

LANE = 128


# -----------------------------------------------------------------------------
# Fused encoder + greedy-decoder kernel (single invocation, everything in VMEM).
# -----------------------------------------------------------------------------
def fused_translate_kernel(
        gi_all_ref, lens_ref,
        e_wh_ref, e_bhn_ref, e_wout_ref, e_bout_ref,
        d_m_ref, d_bi_ref, d_wh_ref, d_bhn_ref, d_wvoc_ref, d_bvoc_ref,
        concept_ref, toks_ref,
        *, bos_id):
    f32 = jnp.float32
    bf16 = jnp.bfloat16

    T, B, threeHp = gi_all_ref.shape
    Hp = threeHp // 3
    V_trg = d_m_ref.shape[0]
    dec_len = toks_ref.shape[1]

    def gru_step(h, gi, wh_bf16, bhn):
        # One fused (B,Hp)@(Hp,3Hp) MXU dot per step; gate slices are
        # 128-lane aligned because the hidden dim is padded to Hp.
        hh = jnp.dot(h.astype(bf16), wh_bf16, preferred_element_type=f32)
        rz = jax.nn.sigmoid(gi[:, :2 * Hp] + hh[:, :2 * Hp])
        r = rz[:, :Hp]
        z = rz[:, Hp:]
        n = jnp.tanh(gi[:, 2 * Hp:] + r * (hh[:, 2 * Hp:] + bhn))
        return n + z * (h - n)                     # == (1-z)*n + z*h

    # ----------------------- encoder (RnnListener) -----------------------
    lens = lens_ref[...]                           # (B, 1) int32
    e_wh = e_wh_ref[...]                           # (Hp, 3Hp) bf16
    e_bhn = e_bhn_ref[...]                         # (1, Hp)  f32

    h = jnp.zeros((B, Hp), f32)
    for t in range(T):                             # fully unrolled; T small & static
        gi = gi_all_ref[t]                         # (B, 3Hp) f32, gathered in wrapper
        h_new = gru_step(h, gi, e_wh, e_bhn)
        # pack_padded_sequence semantics: only update while t < len (one vsel).
        h = jnp.where(lens > t, h_new, h)

    out = (jnp.dot(h.astype(bf16), e_wout_ref[...], preferred_element_type=f32)
           + e_bout_ref[...])
    # Unit L2 norm via EUP rsqrt (padded dims of `out` are exactly 0).
    concept = out * lax.rsqrt(jnp.sum(out * out, axis=1, keepdims=True) + 1e-18)
    concept_ref[...] = concept

    # ------------------- greedy decoder (Speaker.sample) -------------------
    d_m = d_m_ref[...]                             # (V_trg, 3Hp) bf16
    d_bi = d_bi_ref[...]                           # (1, 3Hp) f32
    d_wh = d_wh_ref[...]                           # (Hp, 3Hp) bf16
    d_bhn = d_bhn_ref[...]                         # (1, Hp)  f32
    d_wvoc = d_wvoc_ref[...]                       # (Hp, V_trg) bf16
    d_bvoc = d_bvoc_ref[...]                       # (1, V_trg) f32

    voc_iota = lax.broadcasted_iota(jnp.int32, (B, V_trg), 1)
    col_iota = lax.broadcasted_iota(jnp.int32, (B, dec_len), 1)

    oh = (voc_iota == bos_id).astype(f32)          # <BOS> one-hot, (B, V_trg)
    hd = concept                                   # initial hidden; never hits HBM
    toks = jnp.zeros((B, dec_len), jnp.int32)      # lane-dense carried token buffer

    for t in range(dec_len):                       # fully unrolled rollout
        gi = jnp.dot(oh.astype(bf16), d_m, preferred_element_type=f32) + d_bi
        hd = gru_step(hd, gi, d_wh, d_bhn)
        logits = (jnp.dot(hd.astype(bf16), d_wvoc, preferred_element_type=f32)
                  + d_bvoc)                        # (B, V_trg) f32
        # Exact argmax with smallest-index tie-break (torch.topk tie order is
        # implementation-defined; this is deterministic). Compared in f32.
        m = jnp.max(logits, axis=1, keepdims=True)
        tok = jnp.min(jnp.where(logits >= m, voc_iota, V_trg),
                      axis=1, keepdims=True)       # (B, 1) int32
        toks = jnp.where(col_iota == t, tok, toks) # one lane-blend per step
        oh = (voc_iota == tok).astype(f32)         # argmax feedback

    toks_ref[...] = toks                           # single lane-dense store


# -----------------------------------------------------------------------------
# Wrapper
# -----------------------------------------------------------------------------
def _vmem_spec():
    return pl.BlockSpec(memory_space=pltpu.MemorySpace.VMEM)


def _padded_nbytes(x):
    """(8,128)-tile-padded VMEM footprint estimate for one operand/output."""
    shape = tuple(x.shape)
    if len(shape) < 2:
        shape = (1,) * (2 - len(shape)) + shape
    lead = math.prod(shape[:-2]) if len(shape) > 2 else 1
    s = -(-shape[-2] // 8) * 8
    l = -(-shape[-1] // 128) * 128
    return lead * s * l * x.dtype.itemsize


def naka_translate_greedy(src_tokens, src_lens, enc, dec, *,
                          bos_id, eos_id, dec_len):
    """NakaAgent.translate(decode_how='greedy'); returns (gen, keep, concept)."""
    B, T = src_tokens.shape
    H, Hp = enc["H"], enc["Hp"]

    # Encoder input-gate projections via an XLA gather in the wrapper (no
    # one-hot x vocab matmul, no encoder vocab table in VMEM). Time-major.
    tok_tm = src_tokens.astype(jnp.int32).T                       # (T, B)
    gi_all = jnp.take(enc["m_all_f32"], tok_tm, axis=0) + enc["bi_fold"]  # (T,B,3Hp)
    lens = src_lens.astype(jnp.int32).reshape(B, 1)

    operands = (
        gi_all, lens,
        enc["wh_all"], enc["bhn"], enc["w_out"], enc["b_out"],
        dec["m_all"], dec["bi_fold"], dec["wh_all"], dec["bhn"],
        dec["w_voc"], dec["b_voc"],
    )
    out_shapes = (jax.ShapeDtypeStruct((B, Hp), jnp.float32),
                  jax.ShapeDtypeStruct((B, dec_len), jnp.int32))

    # Size the scoped VMEM limit to the actual resident footprint (with slack),
    # capped to leave headroom for v7x's 64 MiB physical VMEM.
    resident = sum(_padded_nbytes(a) for a in operands + out_shapes)
    vmem_limit = int(min(max(2 * resident + (4 << 20), 32 << 20), 48 << 20))

    kernel = functools.partial(fused_translate_kernel, bos_id=bos_id)
    concept_p, toks = pl.pallas_call(
        kernel,
        out_shape=out_shapes,
        in_specs=[_vmem_spec() for _ in operands],
        out_specs=(_vmem_spec(), _vmem_spec()),
        compiler_params=pltpu.CompilerParams(vmem_limit_bytes=vmem_limit),
    )(*operands)

    concept = concept_p[:, :H]                     # drop zero padding
    # Speaker.sample drops the EOS token and everything after it (glue in JAX).
    keep = jnp.cumprod((toks != eos_id).astype(jnp.int32), axis=1)
    gen = toks * keep
    # NOTE: translate() re-normalizes the already unit-norm concept (a no-op).
    return gen, keep, concept


# -----------------------------------------------------------------------------
# Deterministic parameter construction (PyTorch-default-style init) + one-time
# kernel-layout prep (gate fusion, emb @ W_ih folding, hidden-dim padding).
# -----------------------------------------------------------------------------
def init_raw_gru(key, *, V, D_emb, D_hid):
    ks = jax.random.split(key, 5)
    bound = 1.0 / jnp.sqrt(jnp.float32(D_hid))

    emb = jax.random.normal(ks[0], (V, D_emb), jnp.float32)
    emb = emb.at[0].set(0.0)                       # padding_idx=0

    def u(k, shape):
        return jax.random.uniform(k, shape, jnp.float32, -bound, bound)

    return dict(
        emb=emb,
        w_ih=u(ks[1], (3 * D_hid, D_emb)),         # [W_ir; W_iz; W_in]
        w_hh=u(ks[2], (3 * D_hid, D_hid)),         # [W_hr; W_hz; W_hn]
        b_ih=u(ks[3], (3 * D_hid,)),
        b_hh=u(ks[4], (3 * D_hid,)),
    )


def prep_gru(raw, Hp):
    """Fuse gates into [r|z|n] slabs, fold emb @ W_ih, zero-pad hidden -> Hp."""
    H = raw["w_hh"].shape[1]

    def gate(x, i):
        return x[i * H:(i + 1) * H]

    def pad_cols(x):
        return jnp.pad(x, ((0, 0), (0, Hp - x.shape[1])))

    def pad_rows(x):
        return jnp.pad(x, ((0, Hp - x.shape[0]), (0, 0)))

    m_g, wh_g, bi_g = [], [], []
    for i in range(3):
        m_g.append(pad_cols(raw["emb"] @ gate(raw["w_ih"], i).T))     # (V, Hp)
        wh_g.append(pad_cols(pad_rows(gate(raw["w_hh"], i).T)))       # (Hp, Hp)
        b = gate(raw["b_ih"], i)
        if i < 2:                                   # fold b_hh for r,z gates
            b = b + gate(raw["b_hh"], i)
        bi_g.append(pad_cols(b.reshape(1, H)))                        # (1, Hp)

    m_all_f32 = jnp.concatenate(m_g, axis=1)        # (V, 3Hp) f32
    return dict(
        m_all_f32=m_all_f32,                        # wrapper-side gather (encoder)
        m_all=m_all_f32.astype(jnp.bfloat16),       # in-kernel table (decoder)
        wh_all=jnp.concatenate(wh_g, axis=1).astype(jnp.bfloat16),    # (Hp, 3Hp)
        bi_fold=jnp.concatenate(bi_g, axis=1),                        # (1, 3Hp) f32
        bhn=pad_cols(gate(raw["b_hh"], 2).reshape(1, H)),             # (1, Hp) f32
        H=H, Hp=Hp,
    )


if __name__ == "__main__":
    # Small, module-consistent sizes.
    B, T_SRC = 4, 6
    V_SRC, V_TRG = 16, 16
    D_EMB, D_HID = 32, 32
    DEC_LEN = 8
    PAD_ID, BOS_ID, EOS_ID = 0, 1, 2
    HP = -(-D_HID // LANE) * LANE                   # hidden padded to 128 lanes

    root = jax.random.PRNGKey(0)
    k_enc, k_dec, k_lin, k_tok = jax.random.split(root, 4)
    bound = 1.0 / jnp.sqrt(jnp.float32(D_HID))
    kl = jax.random.split(k_lin, 4)

    # Encoder (RnnListener, foreign language) + hid_to_hid.
    enc = prep_gru(init_raw_gru(k_enc, V=V_SRC, D_emb=D_EMB, D_hid=D_HID), HP)
    w_out = jax.random.uniform(kl[0], (D_HID, D_HID), jnp.float32, -bound, bound)
    b_out = jax.random.uniform(kl[1], (D_HID,), jnp.float32, -bound, bound)
    enc["w_out"] = jnp.pad(w_out, ((0, HP - D_HID), (0, HP - D_HID))).astype(jnp.bfloat16)
    enc["b_out"] = jnp.pad(b_out.reshape(1, D_HID), ((0, 0), (0, HP - D_HID)))

    # Decoder (Speaker, native language) + hid_to_voc.
    dec = prep_gru(init_raw_gru(k_dec, V=V_TRG, D_emb=D_EMB, D_hid=D_HID), HP)
    w_voc = jax.random.uniform(kl[2], (D_HID, V_TRG), jnp.float32, -bound, bound)
    b_voc = jax.random.uniform(kl[3], (V_TRG,), jnp.float32, -bound, bound)
    dec["w_voc"] = jnp.pad(w_voc, ((0, HP - D_HID), (0, 0))).astype(jnp.bfloat16)
    dec["b_voc"] = b_voc.reshape(1, V_TRG)

    # Source batch: padded token ids (B, T), descending lengths as in translate().
    src_lens = jnp.array([6, 4, 3, 2], dtype=jnp.int32)
    raw_tok = jax.random.randint(k_tok, (B, T_SRC), 1, V_SRC, dtype=jnp.int32)
    pad_mask = (jnp.arange(T_SRC)[None, :] < src_lens[:, None]).astype(jnp.int32)
    src_tokens = raw_tok * pad_mask                 # pad -> 0

    gen, keep, concept = naka_translate_greedy(
        src_tokens, src_lens, enc, dec,
        bos_id=BOS_ID, eos_id=EOS_ID, dec_len=DEC_LEN)
    jax.block_until_ready((gen, keep, concept))

    assert gen.shape == (B, DEC_LEN) and gen.dtype == jnp.int32
    assert keep.shape == (B, DEC_LEN)
    assert concept.shape == (B, D_HID)
    # concept is unit-normalized.
    assert bool(jnp.all(jnp.abs(jnp.sum(concept * concept, axis=1) - 1.0) < 1e-3))

    print("KERNEL_OK")
</pallas_src>

<mosaic_0001>
module attributes {stable_mosaic.version = 11 : i64} {
  func.func @fused_translate_kernel(%arg0: memref<6x4x384xf32, #tpu.memory_space<vmem>>, %arg1: memref<4x1xi32, #tpu.memory_space<vmem>>, %arg2: memref<128x384xbf16, #tpu.memory_space<vmem>>, %arg3: memref<1x128xf32, #tpu.memory_space<vmem>>, %arg4: memref<128x128xbf16, #tpu.memory_space<vmem>>, %arg5: memref<1x128xf32, #tpu.memory_space<vmem>>, %arg6: memref<16x384xbf16, #tpu.memory_space<vmem>>, %arg7: memref<1x384xf32, #tpu.memory_space<vmem>>, %arg8: memref<128x384xbf16, #tpu.memory_space<vmem>>, %arg9: memref<1x128xf32, #tpu.memory_space<vmem>>, %arg10: memref<128x16xbf16, #tpu.memory_space<vmem>>, %arg11: memref<1x16xf32, #tpu.memory_space<vmem>>, %arg12: memref<4x128xf32, #tpu.memory_space<vmem>>, %arg13: memref<4x8xi32, #tpu.memory_space<vmem>>) attributes {dimension_semantics = [], scalar_prefetch = 0 : i64, scratch_operands = 0 : i64, tpu.core_type = #tpu.core_type<tc>} {
    %c0 = arith.constant 0 : index
    %c0_0 = arith.constant 0 : index
    %0 = vector.load %arg1[%c0, %c0_0] : memref<4x1xi32, #tpu.memory_space<vmem>>, vector<4x1xi32>
    %c0_1 = arith.constant 0 : index
    %c0_2 = arith.constant 0 : index
    %1 = vector.load %arg2[%c0_1, %c0_2] : memref<128x384xbf16, #tpu.memory_space<vmem>>, vector<128x384xbf16>
    %c0_3 = arith.constant 0 : index
    %c0_4 = arith.constant 0 : index
    %2 = vector.load %arg3[%c0_3, %c0_4] : memref<1x128xf32, #tpu.memory_space<vmem>>, vector<1x128xf32>
    %cst = arith.constant 0.000000e+00 : f32
    %3 = vector.broadcast %cst : f32 to vector<4x128xf32>
    %c0_5 = arith.constant 0 : index
    %c0_6 = arith.constant 0 : index
    %c0_7 = arith.constant 0 : index
    %4 = vector.load %arg0[%c0_5, %c0_6, %c0_7] : memref<6x4x384xf32, #tpu.memory_space<vmem>>, vector<1x4x384xf32>
    %5 = vector.shape_cast %4 : vector<1x4x384xf32> to vector<4x384xf32>
    %6 = arith.truncf %3 : vector<4x128xf32> to vector<4x128xbf16>
    %cst_8 = arith.constant dense<0.000000e+00> : vector<4x384xf32>
    %7 = tpu.matmul %6, %1, %cst_8 {dimension_numbers = #tpu.dot_dimension_numbers<[1], [0], [0], [1], [0, 0, 1, 1], [], []>} : vector<4x128xbf16>, vector<128x384xbf16>, vector<4x384xf32> -> vector<4x384xf32>
    %8 = vector.extract_strided_slice %5 {offsets = [0, 0], sizes = [4, 256], strides = [1, 1]} : vector<4x384xf32> to vector<4x256xf32>
    %9 = vector.extract_strided_slice %7 {offsets = [0, 0], sizes = [4, 256], strides = [1, 1]} : vector<4x384xf32> to vector<4x256xf32>
    %10 = arith.addf %8, %9 : vector<4x256xf32>
    %11 = arith.negf %10 : vector<4x256xf32>
    %12 = math.exp %11 : vector<4x256xf32>
    %cst_9 = arith.constant 1.000000e+00 : f32
    %13 = vector.broadcast %cst_9 : f32 to vector<4x256xf32>
    %14 = arith.addf %13, %12 : vector<4x256xf32>
    %15 = arith.divf %13, %14 : vector<4x256xf32>
    %16 = vector.extract_strided_slice %15 {offsets = [0, 0], sizes = [4, 128], strides = [1, 1]} : vector<4x256xf32> to vector<4x128xf32>
    %17 = vector.extract_strided_slice %15 {offsets = [0, 128], sizes = [4, 128], strides = [1, 1]} : vector<4x256xf32> to vector<4x128xf32>
    %18 = vector.extract_strided_slice %5 {offsets = [0, 256], sizes = [4, 128], strides = [1, 1]} : vector<4x384xf32> to vector<4x128xf32>
    %19 = vector.extract_strided_slice %7 {offsets = [0, 256], sizes = [4, 128], strides = [1, 1]} : vector<4x384xf32> to vector<4x128xf32>
    %20 = vector.broadcast %2 : vector<1x128xf32> to vector<4x128xf32>
    %21 = arith.addf %19, %20 : vector<4x128xf32>
    %22 = arith.mulf %16, %21 : vector<4x128xf32>
    %23 = arith.addf %18, %22 : vector<4x128xf32>
    %24 = math.tanh %23 : vector<4x128xf32>
    %25 = arith.subf %3, %24 : vector<4x128xf32>
    %26 = arith.mulf %17, %25 : vector<4x128xf32>
    %27 = arith.addf %24, %26 : vector<4x128xf32>
    %c0_i32 = arith.constant 0 : i32
    %28 = vector.broadcast %c0_i32 : i32 to vector<4x1xi32>
    %29 = arith.cmpi sgt, %0, %28 : vector<4x1xi32>
    %30 = vector.shape_cast %29 : vector<4x1xi1> to vector<4x1xi1>
    %31 = vector.broadcast %30 : vector<4x1xi1> to vector<4x128xi1>
    %32 = arith.select %31, %27, %3 : vector<4x128xi1>, vector<4x128xf32>
    %c1 = arith.constant 1 : index
    %c0_10 = arith.constant 0 : index
    %c0_11 = arith.constant 0 : index
    %33 = vector.load %arg0[%c1, %c0_10, %c0_11] : memref<6x4x384xf32, #tpu.memory_space<vmem>>, vector<1x4x384xf32>
    %34 = vector.shape_cast %33 : vector<1x4x384xf32> to vector<4x384xf32>
    %35 = arith.truncf %32 : vector<4x128xf32> to vector<4x128xbf16>
    %cst_12 = arith.constant dense<0.000000e+00> : vector<4x384xf32>
    %36 = tpu.matmul %35, %1, %cst_12 {dimension_numbers = #tpu.dot_dimension_numbers<[1], [0], [0], [1], [0, 0, 1, 1], [], []>} : vector<4x128xbf16>, vector<128x384xbf16>, vector<4x384xf32> -> vector<4x384xf32>
    %37 = vector.extract_strided_slice %34 {offsets = [0, 0], sizes = [4, 256], strides = [1, 1]} : vector<4x384xf32> to vector<4x256xf32>
    %38 = vector.extract_strided_slice %36 {offsets = [0, 0], sizes = [4, 256], strides = [1, 1]} : vector<4x384xf32> to vector<4x256xf32>
    %39 = arith.addf %37, %38 : vector<4x256xf32>
    %40 = arith.negf %39 : vector<4x256xf32>
    %41 = math.exp %40 : vector<4x256xf32>
    %cst_13 = arith.constant 1.000000e+00 : f32
    %42 = vector.broadcast %cst_13 : f32 to vector<4x256xf32>
    %43 = arith.addf %42, %41 : vector<4x256xf32>
    %44 = arith.divf %42, %43 : vector<4x256xf32>
    %45 = vector.extract_strided_slice %44 {offsets = [0, 0], sizes = [4, 128], strides = [1, 1]} : vector<4x256xf32> to vector<4x128xf32>
    %46 = vector.extract_strided_slice %44 {offsets = [0, 128], sizes = [4, 128], strides = [1, 1]} : vector<4x256xf32> to vector<4x128xf32>
    %47 = vector.extract_strided_slice %34 {offsets = [0, 256], sizes = [4, 128], strides = [1, 1]} : vector<4x384xf32> to vector<4x128xf32>
    %48 = vector.extract_strided_slice %36 {offsets = [0, 256], sizes = [4, 128], strides = [1, 1]} : vector<4x384xf32> to vector<4x128xf32>
    %49 = vector.broadcast %2 : vector<1x128xf32> to vector<4x128xf32>
    %50 = arith.addf %48, %49 : vector<4x128xf32>
    %51 = arith.mulf %45, %50 : vector<4x128xf32>
    %52 = arith.addf %47, %51 : vector<4x128xf32>
    %53 = math.tanh %52 : vector<4x128xf32>
    %54 = arith.subf %32, %53 : vector<4x128xf32>
    %55 = arith.mulf %46, %54 : vector<4x128xf32>
    %56 = arith.addf %53, %55 : vector<4x128xf32>
    %c1_i32 = arith.constant 1 : i32
    %57 = vector.broadcast %c1_i32 : i32 to vector<4x1xi32>
    %58 = arith.cmpi sgt, %0, %57 : vector<4x1xi32>
    %59 = vector.shape_cast %58 : vector<4x1xi1> to vector<4x1xi1>
    %60 = vector.broadcast %59 : vector<4x1xi1> to vector<4x128xi1>
    %61 = arith.select %60, %56, %32 : vector<4x128xi1>, vector<4x128xf32>
    %c2 = arith.constant 2 : index
    %c0_14 = arith.constant 0 : index
    %c0_15 = arith.constant 0 : index
    %62 = vector.load %arg0[%c2, %c0_14, %c0_15] : memref<6x4x384xf32, #tpu.memory_space<vmem>>, vector<1x4x384xf32>
    %63 = vector.shape_cast %62 : vector<1x4x384xf32> to vector<4x384xf32>
    %64 = arith.truncf %61 : vector<4x128xf32> to vector<4x128xbf16>
    %cst_16 = arith.constant dense<0.000000e+00> : vector<4x384xf32>
    %65 = tpu.matmul %64, %1, %cst_16 {dimension_numbers = #tpu.dot_dimension_numbers<[1], [0], [0], [1], [0, 0, 1, 1], [], []>} : vector<4x128xbf16>, vector<128x384xbf16>, vector<4x384xf32> -> vector<4x384xf32>
    %66 = vector.extract_strided_slice %63 {offsets = [0, 0], sizes = [4, 256], strides = [1, 1]} : vector<4x384xf32> to vector<4x256xf32>
    %67 = vector.extract_strided_slice %65 {offsets = [0, 0], sizes = [4, 256], strides = [1, 1]} : vector<4x384xf32> to vector<4x256xf32>
    %68 = arith.addf %66, %67 : vector<4x256xf32>
    %69 = arith.negf %68 : vector<4x256xf32>
    %70 = math.exp %69 : vector<4x256xf32>
    %cst_17 = arith.constant 1.000000e+00 : f32
    %71 = vector.broadcast %cst_17 : f32 to vector<4x256xf32>
    %72 = arith.addf %71, %70 : vector<4x256xf32>
    %73 = arith.divf %71, %72 : vector<4x256xf32>
    %74 = vector.extract_strided_slice %73 {offsets = [0, 0], sizes = [4, 128], strides = [1, 1]} : vector<4x256xf32> to vector<4x128xf32>
    %75 = vector.extract_strided_slice %73 {offsets = [0, 128], sizes = [4, 128], strides = [1, 1]} : vector<4x256xf32> to vector<4x128xf32>
    %76 = vector.extract_strided_slice %63 {offsets = [0, 256], sizes = [4, 128], strides = [1, 1]} : vector<4x384xf32> to vector<4x128xf32>
    %77 = vector.extract_strided_slice %65 {offsets = [0, 256], sizes = [4, 128], strides = [1, 1]} : vector<4x384xf32> to vector<4x128xf32>
    %78 = vector.broadcast %2 : vector<1x128xf32> to vector<4x128xf32>
    %79 = arith.addf %77, %78 : vector<4x128xf32>
    %80 = arith.mulf %74, %79 : vector<4x128xf32>
    %81 = arith.addf %76, %80 : vector<4x128xf32>
    %82 = math.tanh %81 : vector<4x128xf32>
    %83 = arith.subf %61, %82 : vector<4x128xf32>
    %84 = arith.mulf %75, %83 : vector<4x128xf32>
    %85 = arith.addf %82, %84 : vector<4x128xf32>
    %c2_i32 = arith.constant 2 : i32
    %86 = vector.broadcast %c2_i32 : i32 to vector<4x1xi32>
    %87 = arith.cmpi sgt, %0, %86 : vector<4x1xi32>
    %88 = vector.shape_cast %87 : vector<4x1xi1> to vector<4x1xi1>
    %89 = vector.broadcast %88 : vector<4x1xi1> to vector<4x128xi1>
    %90 = arith.select %89, %85, %61 : vector<4x128xi1>, vector<4x128xf32>
    %c3 = arith.constant 3 : index
    %c0_18 = arith.constant 0 : index
    %c0_19 = arith.constant 0 : index
    %91 = vector.load %arg0[%c3, %c0_18, %c0_19] : memref<6x4x384xf32, #tpu.memory_space<vmem>>, vector<1x4x384xf32>
    %92 = vector.shape_cast %91 : vector<1x4x384xf32> to vector<4x384xf32>
    %93 = arith.truncf %90 : vector<4x128xf32> to vector<4x128xbf16>
    %cst_20 = arith.constant dense<0.000000e+00> : vector<4x384xf32>
    %94 = tpu.matmul %93, %1, %cst_20 {dimension_numbers = #tpu.dot_dimension_numbers<[1], [0], [0], [1], [0, 0, 1, 1], [], []>} : vector<4x128xbf16>, vector<128x384xbf16>, vector<4x384xf32> -> vector<4x384xf32>
    %95 = vector.extract_strided_slice %92 {offsets = [0, 0], sizes = [4, 256], strides = [1, 1]} : vector<4x384xf32> to vector<4x256xf32>
    %96 = vector.extract_strided_slice %94 {offsets = [0, 0], sizes = [4, 256], strides = [1, 1]} : vector<4x384xf32> to vector<4x256xf32>
    %97 = arith.addf %95, %96 : vector<4x256xf32>
    %98 = arith.negf %97 : vector<4x256xf32>
    %99 = math.exp %98 : vector<4x256xf32>
    %cst_21 = arith.constant 1.000000e+00 : f32
    %100 = vector.broadcast %cst_21 : f32 to vector<4x256xf32>
    %101 = arith.addf %100, %99 : vector<4x256xf32>
    %102 = arith.divf %100, %101 : vector<4x256xf32>
    %103 = vector.extract_strided_slice %102 {offsets = [0, 0], sizes = [4, 128], strides = [1, 1]} : vector<4x256xf32> to vector<4x128xf32>
    %104 = vector.extract_strided_slice %102 {offsets = [0, 128], sizes = [4, 128], strides = [1, 1]} : vector<4x256xf32> to vector<4x128xf32>
    %105 = vector.extract_strided_slice %92 {offsets = [0, 256], sizes = [4, 128], strides = [1, 1]} : vector<4x384xf32> to vector<4x128xf32>
    %106 = vector.extract_strided_slice %94 {offsets = [0, 256], sizes = [4, 128], strides = [1, 1]} : vector<4x384xf32> to vector<4x128xf32>
    %107 = vector.broadcast %2 : vector<1x128xf32> to vector<4x128xf32>
    %108 = arith.addf %106, %107 : vector<4x128xf32>
    %109 = arith.mulf %103, %108 : vector<4x128xf32>
    %110 = arith.addf %105, %109 : vector<4x128xf32>
    %111 = math.tanh %110 : vector<4x128xf32>
    %112 = arith.subf %90, %111 : vector<4x128xf32>
    %113 = arith.mulf %104, %112 : vector<4x128xf32>
    %114 = arith.addf %111, %113 : vector<4x128xf32>
    %c3_i32 = arith.constant 3 : i32
    %115 = vector.broadcast %c3_i32 : i32 to vector<4x1xi32>
    %116 = arith.cmpi sgt, %0, %115 : vector<4x1xi32>
    %117 = vector.shape_cast %116 : vector<4x1xi1> to vector<4x1xi1>
    %118 = vector.broadcast %117 : vector<4x1xi1> to vector<4x128xi1>
    %119 = arith.select %118, %114, %90 : vector<4x128xi1>, vector<4x128xf32>
    %c4 = arith.constant 4 : index
    %c0_22 = arith.constant 0 : index
    %c0_23 = arith.constant 0 : index
    %120 = vector.load %arg0[%c4, %c0_22, %c0_23] : memref<6x4x384xf32, #tpu.memory_space<vmem>>, vector<1x4x384xf32>
    %121 = vector.shape_cast %120 : vector<1x4x384xf32> to vector<4x384xf32>
    %122 = arith.truncf %119 : vector<4x128xf32> to vector<4x128xbf16>
    %cst_24 = arith.constant dense<0.000000e+00> : vector<4x384xf32>
    %123 = tpu.matmul %122, %1, %cst_24 {dimension_numbers = #tpu.dot_dimension_numbers<[1], [0], [0], [1], [0, 0, 1, 1], [], []>} : vector<4x128xbf16>, vector<128x384xbf16>, vector<4x384xf32> -> vector<4x384xf32>
    %124 = vector.extract_strided_slice %121 {offsets = [0, 0], sizes = [4, 256], strides = [1, 1]} : vector<4x384xf32> to vector<4x256xf32>
    %125 = vector.extract_strided_slice %123 {offsets = [0, 0], sizes = [4, 256], strides = [1, 1]} : vector<4x384xf32> to vector<4x256xf32>
    %126 = arith.addf %124, %125 : vector<4x256xf32>
    %127 = arith.negf %126 : vector<4x256xf32>
    %128 = math.exp %127 : vector<4x256xf32>
    %cst_25 = arith.constant 1.000000e+00 : f32
    %129 = vector.broadcast %cst_25 : f32 to vector<4x256xf32>
    %130 = arith.addf %129, %128 : vector<4x256xf32>
    %131 = arith.divf %129, %130 : vector<4x256xf32>
    %132 = vector.extract_strided_slice %131 {offsets = [0, 0], sizes = [4, 128], strides = [1, 1]} : vector<4x256xf32> to vector<4x128xf32>
    %133 = vector.extract_strided_slice %131 {offsets = [0, 128], sizes = [4, 128], strides = [1, 1]} : vector<4x256xf32> to vector<4x128xf32>
    %134 = vector.extract_strided_slice %121 {offsets = [0, 256], sizes = [4, 128], strides = [1, 1]} : vector<4x384xf32> to vector<4x128xf32>
    %135 = vector.extract_strided_slice %123 {offsets = [0, 256], sizes = [4, 128], strides = [1, 1]} : vector<4x384xf32> to vector<4x128xf32>
    %136 = vector.broadcast %2 : vector<1x128xf32> to vector<4x128xf32>
    %137 = arith.addf %135, %136 : vector<4x128xf32>
    %138 = arith.mulf %132, %137 : vector<4x128xf32>
    %139 = arith.addf %134, %138 : vector<4x128xf32>
    %140 = math.tanh %139 : vector<4x128xf32>
    %141 = arith.subf %119, %140 : vector<4x128xf32>
    %142 = arith.mulf %133, %141 : vector<4x128xf32>
    %143 = arith.addf %140, %142 : vector<4x128xf32>
    %c4_i32 = arith.constant 4 : i32
    %144 = vector.broadcast %c4_i32 : i32 to vector<4x1xi32>
    %145 = arith.cmpi sgt, %0, %144 : vector<4x1xi32>
    %146 = vector.shape_cast %145 : vector<4x1xi1> to vector<4x1xi1>
    %147 = vector.broadcast %146 : vector<4x1xi1> to vector<4x128xi1>
    %148 = arith.select %147, %143, %119 : vector<4x128xi1>, vector<4x128xf32>
    %c5 = arith.constant 5 : index
    %c0_26 = arith.constant 0 : index
    %c0_27 = arith.constant 0 : index
    %149 = vector.load %arg0[%c5, %c0_26, %c0_27] : memref<6x4x384xf32, #tpu.memory_space<vmem>>, vector<1x4x384xf32>
    %150 = vector.shape_cast %149 : vector<1x4x384xf32> to vector<4x384xf32>
    %151 = arith.truncf %148 : vector<4x128xf32> to vector<4x128xbf16>
    %cst_28 = arith.constant dense<0.000000e+00> : vector<4x384xf32>
    %152 = tpu.matmul %151, %1, %cst_28 {dimension_numbers = #tpu.dot_dimension_numbers<[1], [0], [0], [1], [0, 0, 1, 1], [], []>} : vector<4x128xbf16>, vector<128x384xbf16>, vector<4x384xf32> -> vector<4x384xf32>
    %153 = vector.extract_strided_slice %150 {offsets = [0, 0], sizes = [4, 256], strides = [1, 1]} : vector<4x384xf32> to vector<4x256xf32>
    %154 = vector.extract_strided_slice %152 {offsets = [0, 0], sizes = [4, 256], strides = [1, 1]} : vector<4x384xf32> to vector<4x256xf32>
    %155 = arith.addf %153, %154 : vector<4x256xf32>
    %156 = arith.negf %155 : vector<4x256xf32>
    %157 = math.exp %156 : vector<4x256xf32>
    %cst_29 = arith.constant 1.000000e+00 : f32
    %158 = vector.broadcast %cst_29 : f32 to vector<4x256xf32>
    %159 = arith.addf %158, %157 : vector<4x256xf32>
    %160 = arith.divf %158, %159 : vector<4x256xf32>
    %161 = vector.extract_strided_slice %160 {offsets = [0, 0], sizes = [4, 128], strides = [1, 1]} : vector<4x256xf32> to vector<4x128xf32>
    %162 = vector.extract_strided_slice %160 {offsets = [0, 128], sizes = [4, 128], strides = [1, 1]} : vector<4x256xf32> to vector<4x128xf32>
    %163 = vector.extract_strided_slice %150 {offsets = [0, 256], sizes = [4, 128], strides = [1, 1]} : vector<4x384xf32> to vector<4x128xf32>
    %164 = vector.extract_strided_slice %152 {offsets = [0, 256], sizes = [4, 128], strides = [1, 1]} : vector<4x384xf32> to vector<4x128xf32>
    %165 = vector.broadcast %2 : vector<1x128xf32> to vector<4x128xf32>
    %166 = arith.addf %164, %165 : vector<4x128xf32>
    %167 = arith.mulf %161, %166 : vector<4x128xf32>
    %168 = arith.addf %163, %167 : vector<4x128xf32>
    %169 = math.tanh %168 : vector<4x128xf32>
    %170 = arith.subf %148, %169 : vector<4x128xf32>
    %171 = arith.mulf %162, %170 : vector<4x128xf32>
    %172 = arith.addf %169, %171 : vector<4x128xf32>
    %c5_i32 = arith.constant 5 : i32
    %173 = vector.broadcast %c5_i32 : i32 to vector<4x1xi32>
    %174 = arith.cmpi sgt, %0, %173 : vector<4x1xi32>
    %175 = vector.shape_cast %174 : vector<4x1xi1> to vector<4x1xi1>
    %176 = vector.broadcast %175 : vector<4x1xi1> to vector<4x128xi1>
    %177 = arith.select %176, %172, %148 : vector<4x128xi1>, vector<4x128xf32>
    %178 = arith.truncf %177 : vector<4x128xf32> to vector<4x128xbf16>
    %c0_30 = arith.constant 0 : index
    %c0_31 = arith.constant 0 : index
    %179 = vector.load %arg4[%c0_30, %c0_31] : memref<128x128xbf16, #tpu.memory_space<vmem>>, vector<128x128xbf16>
    %cst_32 = arith.constant dense<0.000000e+00> : vector<4x128xf32>
    %180 = tpu.matmul %178, %179, %cst_32 {dimension_numbers = #tpu.dot_dimension_numbers<[1], [0], [0], [1], [0, 0, 1, 1], [], []>} : vector<4x128xbf16>, vector<128x128xbf16>, vector<4x128xf32> -> vector<4x128xf32>
    %c0_33 = arith.constant 0 : index
    %c0_34 = arith.constant 0 : index
    %181 = vector.load %arg5[%c0_33, %c0_34] : memref<1x128xf32, #tpu.memory_space<vmem>>, vector<1x128xf32>
    %182 = vector.broadcast %181 : vector<1x128xf32> to vector<4x128xf32>
    %183 = arith.addf %180, %182 : vector<4x128xf32>
    %184 = arith.mulf %183, %183 : vector<4x128xf32>
    %cst_35 = arith.constant dense<0.000000e+00> : vector<4xf32>
    %185 = vector.multi_reduction <add>, %184, %cst_35 [1] : vector<4x128xf32> to vector<4xf32>
    %186 = vector.shape_cast %185 : vector<4xf32> to vector<4x1xf32>
    %cst_36 = arith.constant 1.000000e-18 : f32
    %187 = vector.broadcast %cst_36 : f32 to vector<4x1xf32>
    %188 = arith.addf %186, %187 : vector<4x1xf32>
    %189 = math.rsqrt %188 : vector<4x1xf32>
    %190 = vector.broadcast %189 : vector<4x1xf32> to vector<4x128xf32>
    %191 = arith.mulf %183, %190 : vector<4x128xf32>
    %c0_37 = arith.constant 0 : index
    %c0_38 = arith.constant 0 : index
    %192 = vector.load %arg12[%c0_37, %c0_38] : memref<4x128xf32, #tpu.memory_space<vmem>>, vector<4x128xf32>
    tpu.vector_store %arg12[%c0_37, %c0_38], %191 {strides = array<i32>} : memref<4x128xf32, #tpu.memory_space<vmem>>, vector<4x128xf32>,
    %c0_39 = arith.constant 0 : index
    %c0_40 = arith.constant 0 : index
    %193 = vector.load %arg6[%c0_39, %c0_40] : memref<16x384xbf16, #tpu.memory_space<vmem>>, vector<16x384xbf16>
    %c0_41 = arith.constant 0 : index
    %c0_42 = arith.constant 0 : index
    %194 = vector.load %arg7[%c0_41, %c0_42] : memref<1x384xf32, #tpu.memory_space<vmem>>, vector<1x384xf32>
    %c0_43 = arith.constant 0 : index
    %c0_44 = arith.constant 0 : index
    %195 = vector.load %arg8[%c0_43, %c0_44] : memref<128x384xbf16, #tpu.memory_space<vmem>>, vector<128x384xbf16>
    %c0_45 = arith.constant 0 : index
    %c0_46 = arith.constant 0 : index
    %196 = vector.load %arg9[%c0_45, %c0_46] : memref<1x128xf32, #tpu.memory_space<vmem>>, vector<1x128xf32>
    %c0_47 = arith.constant 0 : index
    %c0_48 = arith.constant 0 : index
    %197 = vector.load %arg10[%c0_47, %c0_48] : memref<128x16xbf16, #tpu.memory_space<vmem>>, vector<128x16xbf16>
    %c0_49 = arith.constant 0 : index
    %c0_50 = arith.constant 0 : index
    %198 = vector.load %arg11[%c0_49, %c0_50] : memref<1x16xf32, #tpu.memory_space<vmem>>, vector<1x16xf32>
    %199 = tpu.iota {dimensions = array<i32: 1>} : vector<4x16xi32>
    %200 = tpu.iota {dimensions = array<i32: 1>} : vector<4x8xi32>
    %c1_i32_51 = arith.constant 1 : i32
    %201 = vector.broadcast %c1_i32_51 : i32 to vector<4x16xi32>
    %202 = arith.cmpi eq, %199, %201 : vector<4x16xi32>
    %203 = arith.extui %202 : vector<4x16xi1> to vector<4x16xi32>
    %204 = arith.sitofp %203 : vector<4x16xi32> to vector<4x16xf32>
    %c0_i32_52 = arith.constant 0 : i32
    %205 = vector.broadcast %c0_i32_52 : i32 to vector<4x8xi32>
    %206 = arith.truncf %204 : vector<4x16xf32> to vector<4x16xbf16>
    %cst_53 = arith.constant dense<0.000000e+00> : vector<4x384xf32>
    %207 = tpu.matmul %206, %193, %cst_53 {dimension_numbers = #tpu.dot_dimension_numbers<[1], [0], [0], [1], [0, 0, 1, 1], [], []>} : vector<4x16xbf16>, vector<16x384xbf16>, vector<4x384xf32> -> vector<4x384xf32>
    %208 = vector.broadcast %194 : vector<1x384xf32> to vector<4x384xf32>
    %209 = arith.addf %207, %208 : vector<4x384xf32>
    %210 = arith.truncf %191 : vector<4x128xf32> to vector<4x128xbf16>
    %cst_54 = arith.constant dense<0.000000e+00> : vector<4x384xf32>
    %211 = tpu.matmul %210, %195, %cst_54 {dimension_numbers = #tpu.dot_dimension_numbers<[1], [0], [0], [1], [0, 0, 1, 1], [], []>} : vector<4x128xbf16>, vector<128x384xbf16>, vector<4x384xf32> -> vector<4x384xf32>
    %212 = vector.extract_strided_slice %209 {offsets = [0, 0], sizes = [4, 256], strides = [1, 1]} : vector<4x384xf32> to vector<4x256xf32>
    %213 = vector.extract_strided_slice %211 {offsets = [0, 0], sizes = [4, 256], strides = [1, 1]} : vector<4x384xf32> to vector<4x256xf32>
    %214 = arith.addf %212, %213 : vector<4x256xf32>
    %215 = arith.negf %214 : vector<4x256xf32>
    %216 = math.exp %215 : vector<4x256xf32>
    %cst_55 = arith.constant 1.000000e+00 : f32
    %217 = vector.broadcast %cst_55 : f32 to vector<4x256xf32>
    %218 = arith.addf %217, %216 : vector<4x256xf32>
    %219 = arith.divf %217, %218 : vector<4x256xf32>
    %220 = vector.extract_strided_slice %219 {offsets = [0, 0], sizes = [4, 128], strides = [1, 1]} : vector<4x256xf32> to vector<4x128xf32>
    %221 = vector.extract_strided_slice %219 {offsets = [0, 128], sizes = [4, 128], strides = [1, 1]} : vector<4x256xf32> to vector<4x128xf32>
    %222 = vector.extract_strided_slice %209 {offsets = [0, 256], sizes = [4, 128], strides = [1, 1]} : vector<4x384xf32> to vector<4x128xf32>
    %223 = vector.extract_strided_slice %211 {offsets = [0, 256], sizes = [4, 128], strides = [1, 1]} : vector<4x384xf32> to vector<4x128xf32>
    %224 = vector.broadcast %196 : vector<1x128xf32> to vector<4x128xf32>
    %225 = arith.addf %223, %224 : vector<4x128xf32>
    %226 = arith.mulf %220, %225 : vector<4x128xf32>
    %227 = arith.addf %222, %226 : vector<4x128xf32>
    %228 = math.tanh %227 : vector<4x128xf32>
    %229 = arith.subf %191, %228 : vector<4x128xf32>
    %230 = arith.mulf %221, %229 : vector<4x128xf32>
    %231 = arith.addf %228, %230 : vector<4x128xf32>
    %232 = arith.truncf %231 : vector<4x128xf32> to vector<4x128xbf16>
    %cst_56 = arith.constant dense<0.000000e+00> : vector<4x16xf32>
    %233 = tpu.matmul %232, %197, %cst_56 {dimension_numbers = #tpu.dot_dimension_numbers<[1], [0], [0], [1], [0, 0, 1, 1], [], []>} : vector<4x128xbf16>, vector<128x16xbf16>, vector<4x16xf32> -> vector<4x16xf32>
    %234 = vector.broadcast %198 : vector<1x16xf32> to vector<4x16xf32>
    %235 = arith.addf %233, %234 : vector<4x16xf32>
    %cst_57 = arith.constant dense<0xFF800000> : vector<4xf32>
    %236 = vector.multi_reduction <maximumf>, %235, %cst_57 [1] : vector<4x16xf32> to vector<4xf32>
    %237 = vector.shape_cast %236 : vector<4xf32> to vector<4x1xf32>
    %238 = vector.broadcast %237 : vector<4x1xf32> to vector<4x16xf32>
    %239 = arith.cmpf oge, %235, %238 : vector<4x16xf32>
    %c16_i32 = arith.constant 16 : i32
    %240 = vector.broadcast %c16_i32 : i32 to vector<4x16xi32>
    %241 = arith.select %239, %199, %240 : vector<4x16xi1>, vector<4x16xi32>
    %cst_58 = arith.constant dense<2147483647> : vector<4xi32>
    %242 = vector.multi_reduction <minsi>, %241, %cst_58 [1] : vector<4x16xi32> to vector<4xi32>
    %243 = vector.shape_cast %242 : vector<4xi32> to vector<4x1xi32>
    %c0_i32_59 = arith.constant 0 : i32
    %244 = vector.broadcast %c0_i32_59 : i32 to vector<4x8xi32>
    %245 = arith.cmpi eq, %200, %244 : vector<4x8xi32>
    %246 = vector.shape_cast %243 : vector<4x1xi32> to vector<4x1xi32>
    %247 = vector.broadcast %246 : vector<4x1xi32> to vector<4x8xi32>
    %248 = arith.select %245, %247, %205 : vector<4x8xi1>, vector<4x8xi32>
    %249 = vector.broadcast %243 : vector<4x1xi32> to vector<4x16xi32>
    %250 = arith.cmpi eq, %199, %249 : vector<4x16xi32>
    %251 = arith.extui %250 : vector<4x16xi1> to vector<4x16xi32>
    %252 = arith.sitofp %251 : vector<4x16xi32> to vector<4x16xf32>
    %253 = arith.truncf %252 : vector<4x16xf32> to vector<4x16xbf16>
    %cst_60 = arith.constant dense<0.000000e+00> : vector<4x384xf32>
    %254 = tpu.matmul %253, %193, %cst_60 {dimension_numbers = #tpu.dot_dimension_numbers<[1], [0], [0], [1], [0, 0, 1, 1], [], []>} : vector<4x16xbf16>, vector<16x384xbf16>, vector<4x384xf32> -> vector<4x384xf32>
    %255 = vector.broadcast %194 : vector<1x384xf32> to vector<4x384xf32>
    %256 = arith.addf %254, %255 : vector<4x384xf32>
    %257 = arith.truncf %231 : vector<4x128xf32> to vector<4x128xbf16>
    %cst_61 = arith.constant dense<0.000000e+00> : vector<4x384xf32>
    %258 = tpu.matmul %257, %195, %cst_61 {dimension_numbers = #tpu.dot_dimension_numbers<[1], [0], [0], [1], [0, 0, 1, 1], [], []>} : vector<4x128xbf16>, vector<128x384xbf16>, vector<4x384xf32> -> vector<4x384xf32>
    %259 = vector.extract_strided_slice %256 {offsets = [0, 0], sizes = [4, 256], strides = [1, 1]} : vector<4x384xf32> to vector<4x256xf32>
    %260 = vector.extract_strided_slice %258 {offsets = [0, 0], sizes = [4, 256], strides = [1, 1]} : vector<4x384xf32> to vector<4x256xf32>
    %261 = arith.addf %259, %260 : vector<4x256xf32>
    %262 = arith.negf %261 : vector<4x256xf32>
    %263 = math.exp %262 : vector<4x256xf32>
    %cst_62 = arith.constant 1.000000e+00 : f32
    %264 = vector.broadcast %cst_62 : f32 to vector<4x256xf32>
    %265 = arith.addf %264, %263 : vector<4x256xf32>
    %266 = arith.divf %264, %265 : vector<4x256xf32>
    %267 = vector.extract_strided_slice %266 {offsets = [0, 0], sizes = [4, 128], strides = [1, 1]} : vector<4x256xf32> to vector<4x128xf32>
    %268 = vector.extract_strided_slice %266 {offsets = [0, 128], sizes = [4, 128], strides = [1, 1]} : vector<4x256xf32> to vector<4x128xf32>
    %269 = vector.extract_strided_slice %256 {offsets = [0, 256], sizes = [4, 128], strides = [1, 1]} : vector<4x384xf32> to vector<4x128xf32>
    %270 = vector.extract_strided_slice %258 {offsets = [0, 256], sizes = [4, 128], strides = [1, 1]} : vector<4x384xf32> to vector<4x128xf32>
    %271 = vector.broadcast %196 : vector<1x128xf32> to vector<4x128xf32>
    %272 = arith.addf %270, %271 : vector<4x128xf32>
    %273 = arith.mulf %267, %272 : vector<4x128xf32>
    %274 = arith.addf %269, %273 : vector<4x128xf32>
    %275 = math.tanh %274 : vector<4x128xf32>
    %276 = arith.subf %231, %275 : vector<4x128xf32>
    %277 = arith.mulf %268, %276 : vector<4x128xf32>
    %278 = arith.addf %275, %277 : vector<4x128xf32>
    %279 = arith.truncf %278 : vector<4x128xf32> to vector<4x128xbf16>
    %cst_63 = arith.constant dense<0.000000e+00> : vector<4x16xf32>
    %280 = tpu.matmul %279, %197, %cst_63 {dimension_numbers = #tpu.dot_dimension_numbers<[1], [0], [0], [1], [0, 0, 1, 1], [], []>} : vector<4x128xbf16>, vector<128x16xbf16>, vector<4x16xf32> -> vector<4x16xf32>
    %281 = vector.broadcast %198 : vector<1x16xf32> to vector<4x16xf32>
    %282 = arith.addf %280, %281 : vector<4x16xf32>
    %cst_64 = arith.constant dense<0xFF800000> : vector<4xf32>
    %283 = vector.multi_reduction <maximumf>, %282, %cst_64 [1] : vector<4x16xf32> to vector<4xf32>
    %284 = vector.shape_cast %283 : vector<4xf32> to vector<4x1xf32>
    %285 = vector.broadcast %284 : vector<4x1xf32> to vector<4x16xf32>
    %286 = arith.cmpf oge, %282, %285 : vector<4x16xf32>
    %c16_i32_65 = arith.constant 16 : i32
    %287 = vector.broadcast %c16_i32_65 : i32 to vector<4x16xi32>
    %288 = arith.select %286, %199, %287 : vector<4x16xi1>, vector<4x16xi32>
    %cst_66 = arith.constant dense<2147483647> : vector<4xi32>
    %289 = vector.multi_reduction <minsi>, %288, %cst_66 [1] : vector<4x16xi32> to vector<4xi32>
    %290 = vector.shape_cast %289 : vector<4xi32> to vector<4x1xi32>
    %c1_i32_67 = arith.constant 1 : i32
    %291 = vector.broadcast %c1_i32_67 : i32 to vector<4x8xi32>
    %292 = arith.cmpi eq, %200, %291 : vector<4x8xi32>
    %293 = vector.shape_cast %290 : vector<4x1xi32> to vector<4x1xi32>
    %294 = vector.broadcast %293 : vector<4x1xi32> to vector<4x8xi32>
    %295 = arith.select %292, %294, %248 : vector<4x8xi1>, vector<4x8xi32>
    %296 = vector.broadcast %290 : vector<4x1xi32> to vector<4x16xi32>
    %297 = arith.cmpi eq, %199, %296 : vector<4x16xi32>
    %298 = arith.extui %297 : vector<4x16xi1> to vector<4x16xi32>
    %299 = arith.sitofp %298 : vector<4x16xi32> to vector<4x16xf32>
    %300 = arith.truncf %299 : vector<4x16xf32> to vector<4x16xbf16>
    %cst_68 = arith.constant dense<0.000000e+00> : vector<4x384xf32>
    %301 = tpu.matmul %300, %193, %cst_68 {dimension_numbers = #tpu.dot_dimension_numbers<[1], [0], [0], [1], [0, 0, 1, 1], [], []>} : vector<4x16xbf16>, vector<16x384xbf16>, vector<4x384xf32> -> vector<4x384xf32>
    %302 = vector.broadcast %194 : vector<1x384xf32> to vector<4x384xf32>
    %303 = arith.addf %301, %302 : vector<4x384xf32>
    %304 = arith.truncf %278 : vector<4x128xf32> to vector<4x128xbf16>
    %cst_69 = arith.constant dense<0.000000e+00> : vector<4x384xf32>
    %305 = tpu.matmul %304, %195, %cst_69 {dimension_numbers = #tpu.dot_dimension_numbers<[1], [0], [0], [1], [0, 0, 1, 1], [], []>} : vector<4x128xbf16>, vector<128x384xbf16>, vector<4x384xf32> -> vector<4x384xf32>
    %306 = vector.extract_strided_slice %303 {offsets = [0, 0], sizes = [4, 256], strides = [1, 1]} : vector<4x384xf32> to vector<4x256xf32>
    %307 = vector.extract_strided_slice %305 {offsets = [0, 0], sizes = [4, 256], strides = [1, 1]} : vector<4x384xf32> to vector<4x256xf32>
    %308 = arith.addf %306, %307 : vector<4x256xf32>
    %309 = arith.negf %308 : vector<4x256xf32>
    %310 = math.exp %309 : vector<4x256xf32>
    %cst_70 = arith.constant 1.000000e+00 : f32
    %311 = vector.broadcast %cst_70 : f32 to vector<4x256xf32>
    %312 = arith.addf %311, %310 : vector<4x256xf32>
    %313 = arith.divf %311, %312 : vector<4x256xf32>
    %314 = vector.extract_strided_slice %313 {offsets = [0, 0], sizes = [4, 128], strides = [1, 1]} : vector<4x256xf32> to vector<4x128xf32>
    %315 = vector.extract_strided_slice %313 {offsets = [0, 128], sizes = [4, 128], strides = [1, 1]} : vector<4x256xf32> to vector<4x128xf32>
    %316 = vector.extract_strided_slice %303 {offsets = [0, 256], sizes = [4, 128], strides = [1, 1]} : vector<4x384xf32> to vector<4x128xf32>
    %317 = vector.extract_strided_slice %305 {offsets = [0, 256], sizes = [4, 128], strides = [1, 1]} : vector<4x384xf32> to vector<4x128xf32>
    %318 = vector.broadcast %196 : vector<1x128xf32> to vector<4x128xf32>
    %319 = arith.addf %317, %318 : vector<4x128xf32>
    %320 = arith.mulf %314, %319 : vector<4x128xf32>
    %321 = arith.addf %316, %320 : vector<4x128xf32>
    %322 = math.tanh %321 : vector<4x128xf32>
    %323 = arith.subf %278, %322 : vector<4x128xf32>
    %324 = arith.mulf %315, %323 : vector<4x128xf32>
    %325 = arith.addf %322, %324 : vector<4x128xf32>
    %326 = arith.truncf %325 : vector<4x128xf32> to vector<4x128xbf16>
    %cst_71 = arith.constant dense<0.000000e+00> : vector<4x16xf32>
    %327 = tpu.matmul %326, %197, %cst_71 {dimension_numbers = #tpu.dot_dimension_numbers<[1], [0], [0], [1], [0, 0, 1, 1], [], []>} : vector<4x128xbf16>, vector<128x16xbf16>, vector<4x16xf32> -> vector<4x16xf32>
    %328 = vector.broadcast %198 : vector<1x16xf32> to vector<4x16xf32>
    %329 = arith.addf %327, %328 : vector<4x16xf32>
    %cst_72 = arith.constant dense<0xFF800000> : vector<4xf32>
    %330 = vector.multi_reduction <maximumf>, %329, %cst_72 [1] : vector<4x16xf32> to vector<4xf32>
    %331 = vector.shape_cast %330 : vector<4xf32> to vector<4x1xf32>
    %332 = vector.broadcast %331 : vector<4x1xf32> to vector<4x16xf32>
    %333 = arith.cmpf oge, %329, %332 : vector<4x16xf32>
    %c16_i32_73 = arith.constant 16 : i32
    %334 = vector.broadcast %c16_i32_73 : i32 to vector<4x16xi32>
    %335 = arith.select %333, %199, %334 : vector<4x16xi1>, vector<4x16xi32>
    %cst_74 = arith.constant dense<2147483647> : vector<4xi32>
    %336 = vector.multi_reduction <minsi>, %335, %cst_74 [1] : vector<4x16xi32> to vector<4xi32>
    %337 = vector.shape_cast %336 : vector<4xi32> to vector<4x1xi32>
    %c2_i32_75 = arith.constant 2 : i32
    %338 = vector.broadcast %c2_i32_75 : i32 to vector<4x8xi32>
    %339 = arith.cmpi eq, %200, %338 : vector<4x8xi32>
    %340 = vector.shape_cast %337 : vector<4x1xi32> to vector<4x1xi32>
    %341 = vector.broadcast %340 : vector<4x1xi32> to vector<4x8xi32>
    %342 = arith.select %339, %341, %295 : vector<4x8xi1>, vector<4x8xi32>
    %343 = vector.broadcast %337 : vector<4x1xi32> to vector<4x16xi32>
    %344 = arith.cmpi eq, %199, %343 : vector<4x16xi32>
    %345 = arith.extui %344 : vector<4x16xi1> to vector<4x16xi32>
    %346 = arith.sitofp %345 : vector<4x16xi32> to vector<4x16xf32>
    %347 = arith.truncf %346 : vector<4x16xf32> to vector<4x16xbf16>
    %cst_76 = arith.constant dense<0.000000e+00> : vector<4x384xf32>
    %348 = tpu.matmul %347, %193, %cst_76 {dimension_numbers = #tpu.dot_dimension_numbers<[1], [0], [0], [1], [0, 0, 1, 1], [], []>} : vector<4x16xbf16>, vector<16x384xbf16>, vector<4x384xf32> -> vector<4x384xf32>
    %349 = vector.broadcast %194 : vector<1x384xf32> to vector<4x384xf32>
    %350 = arith.addf %348, %349 : vector<4x384xf32>
    %351 = arith.truncf %325 : vector<4x128xf32> to vector<4x128xbf16>
    %cst_77 = arith.constant dense<0.000000e+00> : vector<4x384xf32>
    %352 = tpu.matmul %351, %195, %cst_77 {dimension_numbers = #tpu.dot_dimension_numbers<[1], [0], [0], [1], [0, 0, 1, 1], [], []>} : vector<4x128xbf16>, vector<128x384xbf16>, vector<4x384xf32> -> vector<4x384xf32>
    %353 = vector.extract_strided_slice %350 {offsets = [0, 0], sizes = [4, 256], strides = [1, 1]} : vector<4x384xf32> to vector<4x256xf32>
    %354 = vector.extract_strided_slice %352 {offsets = [0, 0], sizes = [4, 256], strides = [1, 1]} : vector<4x384xf32> to vector<4x256xf32>
    %355 = arith.addf %353, %354 : vector<4x256xf32>
    %356 = arith.negf %355 : vector<4x256xf32>
    %357 = math.exp %356 : vector<4x256xf32>
    %cst_78 = arith.constant 1.000000e+00 : f32
    %358 = vector.broadcast %cst_78 : f32 to vector<4x256xf32>
    %359 = arith.addf %358, %357 : vector<4x256xf32>
    %360 = arith.divf %358, %359 : vector<4x256xf32>
    %361 = vector.extract_strided_slice %360 {offsets = [0, 0], sizes = [4, 128], strides = [1, 1]} : vector<4x256xf32> to vector<4x128xf32>
    %362 = vector.extract_strided_slice %360 {offsets = [0, 128], sizes = [4, 128], strides = [1, 1]} : vector<4x256xf32> to vector<4x128xf32>
    %363 = vector.extract_strided_slice %350 {offsets = [0, 256], sizes = [4, 128], strides = [1, 1]} : vector<4x384xf32> to vector<4x128xf32>
    %364 = vector.extract_strided_slice %352 {offsets = [0, 256], sizes = [4, 128], strides = [1, 1]} : vector<4x384xf32> to vector<4x128xf32>
    %365 = vector.broadcast %196 : vector<1x128xf32> to vector<4x128xf32>
    %366 = arith.addf %364, %365 : vector<4x128xf32>
    %367 = arith.mulf %361, %366 : vector<4x128xf32>
    %368 = arith.addf %363, %367 : vector<4x128xf32>
    %369 = math.tanh %368 : vector<4x128xf32>
    %370 = arith.subf %325, %369 : vector<4x128xf32>
    %371 = arith.mulf %362, %370 : vector<4x128xf32>
    %372 = arith.addf %369, %371 : vector<4x128xf32>
    %373 = arith.truncf %372 : vector<4x128xf32> to vector<4x128xbf16>
    %cst_79 = arith.constant dense<0.000000e+00> : vector<4x16xf32>
    %374 = tpu.matmul %373, %197, %cst_79 {dimension_numbers = #tpu.dot_dimension_numbers<[1], [0], [0], [1], [0, 0, 1, 1], [], []>} : vector<4x128xbf16>, vector<128x16xbf16>, vector<4x16xf32> -> vector<4x16xf32>
    %375 = vector.broadcast %198 : vector<1x16xf32> to vector<4x16xf32>
    %376 = arith.addf %374, %375 : vector<4x16xf32>
    %cst_80 = arith.constant dense<0xFF800000> : vector<4xf32>
    %377 = vector.multi_reduction <maximumf>, %376, %cst_80 [1] : vector<4x16xf32> to vector<4xf32>
    %378 = vector.shape_cast %377 : vector<4xf32> to vector<4x1xf32>
    %379 = vector.broadcast %378 : vector<4x1xf32> to vector<4x16xf32>
    %380 = arith.cmpf oge, %376, %379 : vector<4x16xf32>
    %c16_i32_81 = arith.constant 16 : i32
    %381 = vector.broadcast %c16_i32_81 : i32 to vector<4x16xi32>
    %382 = arith.select %380, %199, %381 : vector<4x16xi1>, vector<4x16xi32>
    %cst_82 = arith.constant dense<2147483647> : vector<4xi32>
    %383 = vector.multi_reduction <minsi>, %382, %cst_82 [1] : vector<4x16xi32> to vector<4xi32>
    %384 = vector.shape_cast %383 : vector<4xi32> to vector<4x1xi32>
    %c3_i32_83 = arith.constant 3 : i32
    %385 = vector.broadcast %c3_i32_83 : i32 to vector<4x8xi32>
    %386 = arith.cmpi eq, %200, %385 : vector<4x8xi32>
    %387 = vector.shape_cast %384 : vector<4x1xi32> to vector<4x1xi32>
    %388 = vector.broadcast %387 : vector<4x1xi32> to vector<4x8xi32>
    %389 = arith.select %386, %388, %342 : vector<4x8xi1>, vector<4x8xi32>
    %390 = vector.broadcast %384 : vector<4x1xi32> to vector<4x16xi32>
    %391 = arith.cmpi eq, %199, %390 : vector<4x16xi32>
    %392 = arith.extui %391 : vector<4x16xi1> to vector<4x16xi32>
    %393 = arith.sitofp %392 : vector<4x16xi32> to vector<4x16xf32>
    %394 = arith.truncf %393 : vector<4x16xf32> to vector<4x16xbf16>
    %cst_84 = arith.constant dense<0.000000e+00> : vector<4x384xf32>
    %395 = tpu.matmul %394, %193, %cst_84 {dimension_numbers = #tpu.dot_dimension_numbers<[1], [0], [0], [1], [0, 0, 1, 1], [], []>} : vector<4x16xbf16>, vector<16x384xbf16>, vector<4x384xf32> -> vector<4x384xf32>
    %396 = vector.broadcast %194 : vector<1x384xf32> to vector<4x384xf32>
    %397 = arith.addf %395, %396 : vector<4x384xf32>
    %398 = arith.truncf %372 : vector<4x128xf32> to vector<4x128xbf16>
    %cst_85 = arith.constant dense<0.000000e+00> : vector<4x384xf32>
    %399 = tpu.matmul %398, %195, %cst_85 {dimension_numbers = #tpu.dot_dimension_numbers<[1], [0], [0], [1], [0, 0, 1, 1], [], []>} : vector<4x128xbf16>, vector<128x384xbf16>, vector<4x384xf32> -> vector<4x384xf32>
    %400 = vector.extract_strided_slice %397 {offsets = [0, 0], sizes = [4, 256], strides = [1, 1]} : vector<4x384xf32> to vector<4x256xf32>
    %401 = vector.extract_strided_slice %399 {offsets = [0, 0], sizes = [4, 256], strides = [1, 1]} : vector<4x384xf32> to vector<4x256xf32>
    %402 = arith.addf %400, %401 : vector<4x256xf32>
    %403 = arith.negf %402 : vector<4x256xf32>
    %404 = math.exp %403 : vector<4x256xf32>
    %cst_86 = arith.constant 1.000000e+00 : f32
    %405 = vector.broadcast %cst_86 : f32 to vector<4x256xf32>
    %406 = arith.addf %405, %404 : vector<4x256xf32>
    %407 = arith.divf %405, %406 : vector<4x256xf32>
    %408 = vector.extract_strided_slice %407 {offsets = [0, 0], sizes = [4, 128], strides = [1, 1]} : vector<4x256xf32> to vector<4x128xf32>
    %409 = vector.extract_strided_slice %407 {offsets = [0, 128], sizes = [4, 128], strides = [1, 1]} : vector<4x256xf32> to vector<4x128xf32>
    %410 = vector.extract_strided_slice %397 {offsets = [0, 256], sizes = [4, 128], strides = [1, 1]} : vector<4x384xf32> to vector<4x128xf32>
    %411 = vector.extract_strided_slice %399 {offsets = [0, 256], sizes = [4, 128], strides = [1, 1]} : vector<4x384xf32> to vector<4x128xf32>
    %412 = vector.broadcast %196 : vector<1x128xf32> to vector<4x128xf32>
    %413 = arith.addf %411, %412 : vector<4x128xf32>
    %414 = arith.mulf %408, %413 : vector<4x128xf32>
    %415 = arith.addf %410, %414 : vector<4x128xf32>
    %416 = math.tanh %415 : vector<4x128xf32>
    %417 = arith.subf %372, %416 : vector<4x128xf32>
    %418 = arith.mulf %409, %417 : vector<4x128xf32>
    %419 = arith.addf %416, %418 : vector<4x128xf32>
    %420 = arith.truncf %419 : vector<4x128xf32> to vector<4x128xbf16>
    %cst_87 = arith.constant dense<0.000000e+00> : vector<4x16xf32>
    %421 = tpu.matmul %420, %197, %cst_87 {dimension_numbers = #tpu.dot_dimension_numbers<[1], [0], [0], [1], [0, 0, 1, 1], [], []>} : vector<4x128xbf16>, vector<128x16xbf16>, vector<4x16xf32> -> vector<4x16xf32>
    %422 = vector.broadcast %198 : vector<1x16xf32> to vector<4x16xf32>
    %423 = arith.addf %421, %422 : vector<4x16xf32>
    %cst_88 = arith.constant dense<0xFF800000> : vector<4xf32>
    %424 = vector.multi_reduction <maximumf>, %423, %cst_88 [1] : vector<4x16xf32> to vector<4xf32>
    %425 = vector.shape_cast %424 : vector<4xf32> to vector<4x1xf32>
    %426 = vector.broadcast %425 : vector<4x1xf32> to vector<4x16xf32>
    %427 = arith.cmpf oge, %423, %426 : vector<4x16xf32>
    %c16_i32_89 = arith.constant 16 : i32
    %428 = vector.broadcast %c16_i32_89 : i32 to vector<4x16xi32>
    %429 = arith.select %427, %199, %428 : vector<4x16xi1>, vector<4x16xi32>
    %cst_90 = arith.constant dense<2147483647> : vector<4xi32>
    %430 = vector.multi_reduction <minsi>, %429, %cst_90 [1] : vector<4x16xi32> to vector<4xi32>
    %431 = vector.shape_cast %430 : vector<4xi32> to vector<4x1xi32>
    %c4_i32_91 = arith.constant 4 : i32
    %432 = vector.broadcast %c4_i32_91 : i32 to vector<4x8xi32>
    %433 = arith.cmpi eq, %200, %432 : vector<4x8xi32>
    %434 = vector.shape_cast %431 : vector<4x1xi32> to vector<4x1xi32>
    %435 = vector.broadcast %434 : vector<4x1xi32> to vector<4x8xi32>
    %436 = arith.select %433, %435, %389 : vector<4x8xi1>, vector<4x8xi32>
    %437 = vector.broadcast %431 : vector<4x1xi32> to vector<4x16xi32>
    %438 = arith.cmpi eq, %199, %437 : vector<4x16xi32>
    %439 = arith.extui %438 : vector<4x16xi1> to vector<4x16xi32>
    %440 = arith.sitofp %439 : vector<4x16xi32> to vector<4x16xf32>
    %441 = arith.truncf %440 : vector<4x16xf32> to vector<4x16xbf16>
    %cst_92 = arith.constant dense<0.000000e+00> : vector<4x384xf32>
    %442 = tpu.matmul %441, %193, %cst_92 {dimension_numbers = #tpu.dot_dimension_numbers<[1], [0], [0], [1], [0, 0, 1, 1], [], []>} : vector<4x16xbf16>, vector<16x384xbf16>, vector<4x384xf32> -> vector<4x384xf32>
    %443 = vector.broadcast %194 : vector<1x384xf32> to vector<4x384xf32>
    %444 = arith.addf %442, %443 : vector<4x384xf32>
    %445 = arith.truncf %419 : vector<4x128xf32> to vector<4x128xbf16>
    %cst_93 = arith.constant dense<0.000000e+00> : vector<4x384xf32>
    %446 = tpu.matmul %445, %195, %cst_93 {dimension_numbers = #tpu.dot_dimension_numbers<[1], [0], [0], [1], [0, 0, 1, 1], [], []>} : vector<4x128xbf16>, vector<128x384xbf16>, vector<4x384xf32> -> vector<4x384xf32>
    %447 = vector.extract_strided_slice %444 {offsets = [0, 0], sizes = [4, 256], strides = [1, 1]} : vector<4x384xf32> to vector<4x256xf32>
    %448 = vector.extract_strided_slice %446 {offsets = [0, 0], sizes = [4, 256], strides = [1, 1]} : vector<4x384xf32> to vector<4x256xf32>
    %449 = arith.addf %447, %448 : vector<4x256xf32>
    %450 = arith.negf %449 : vector<4x256xf32>
    %451 = math.exp %450 : vector<4x256xf32>
    %cst_94 = arith.constant 1.000000e+00 : f32
    %452 = vector.broadcast %cst_94 : f32 to vector<4x256xf32>
    %453 = arith.addf %452, %451 : vector<4x256xf32>
    %454 = arith.divf %452, %453 : vector<4x256xf32>
    %455 = vector.extract_strided_slice %454 {offsets = [0, 0], sizes = [4, 128], strides = [1, 1]} : vector<4x256xf32> to vector<4x128xf32>
    %456 = vector.extract_strided_slice %454 {offsets = [0, 128], sizes = [4, 128], strides = [1, 1]} : vector<4x256xf32> to vector<4x128xf32>
    %457 = vector.extract_strided_slice %444 {offsets = [0, 256], sizes = [4, 128], strides = [1, 1]} : vector<4x384xf32> to vector<4x128xf32>
    %458 = vector.extract_strided_slice %446 {offsets = [0, 256], sizes = [4, 128], strides = [1, 1]} : vector<4x384xf32> to vector<4x128xf32>
    %459 = vector.broadcast %196 : vector<1x128xf32> to vector<4x128xf32>
    %460 = arith.addf %458, %459 : vector<4x128xf32>
    %461 = arith.mulf %455, %460 : vector<4x128xf32>
    %462 = arith.addf %457, %461 : vector<4x128xf32>
    %463 = math.tanh %462 : vector<4x128xf32>
    %464 = arith.subf %419, %463 : vector<4x128xf32>
    %465 = arith.mulf %456, %464 : vector<4x128xf32>
    %466 = arith.addf %463, %465 : vector<4x128xf32>
    %467 = arith.truncf %466 : vector<4x128xf32> to vector<4x128xbf16>
    %cst_95 = arith.constant dense<0.000000e+00> : vector<4x16xf32>
    %468 = tpu.matmul %467, %197, %cst_95 {dimension_numbers = #tpu.dot_dimension_numbers<[1], [0], [0], [1], [0, 0, 1, 1], [], []>} : vector<4x128xbf16>, vector<128x16xbf16>, vector<4x16xf32> -> vector<4x16xf32>
    %469 = vector.broadcast %198 : vector<1x16xf32> to vector<4x16xf32>
    %470 = arith.addf %468, %469 : vector<4x16xf32>
    %cst_96 = arith.constant dense<0xFF800000> : vector<4xf32>
    %471 = vector.multi_reduction <maximumf>, %470, %cst_96 [1] : vector<4x16xf32> to vector<4xf32>
    %472 = vector.shape_cast %471 : vector<4xf32> to vector<4x1xf32>
    %473 = vector.broadcast %472 : vector<4x1xf32> to vector<4x16xf32>
    %474 = arith.cmpf oge, %470, %473 : vector<4x16xf32>
    %c16_i32_97 = arith.constant 16 : i32
    %475 = vector.broadcast %c16_i32_97 : i32 to vector<4x16xi32>
    %476 = arith.select %474, %199, %475 : vector<4x16xi1>, vector<4x16xi32>
    %cst_98 = arith.constant dense<2147483647> : vector<4xi32>
    %477 = vector.multi_reduction <minsi>, %476, %cst_98 [1] : vector<4x16xi32> to vector<4xi32>
    %478 = vector.shape_cast %477 : vector<4xi32> to vector<4x1xi32>
    %c5_i32_99 = arith.constant 5 : i32
    %479 = vector.broadcast %c5_i32_99 : i32 to vector<4x8xi32>
    %480 = arith.cmpi eq, %200, %479 : vector<4x8xi32>
    %481 = vector.shape_cast %478 : vector<4x1xi32> to vector<4x1xi32>
    %482 = vector.broadcast %481 : vector<4x1xi32> to vector<4x8xi32>
    %483 = arith.select %480, %482, %436 : vector<4x8xi1>, vector<4x8xi32>
    %484 = vector.broadcast %478 : vector<4x1xi32> to vector<4x16xi32>
    %485 = arith.cmpi eq, %199, %484 : vector<4x16xi32>
    %486 = arith.extui %485 : vector<4x16xi1> to vector<4x16xi32>
    %487 = arith.sitofp %486 : vector<4x16xi32> to vector<4x16xf32>
    %488 = arith.truncf %487 : vector<4x16xf32> to vector<4x16xbf16>
    %cst_100 = arith.constant dense<0.000000e+00> : vector<4x384xf32>
    %489 = tpu.matmul %488, %193, %cst_100 {dimension_numbers = #tpu.dot_dimension_numbers<[1], [0], [0], [1], [0, 0, 1, 1], [], []>} : vector<4x16xbf16>, vector<16x384xbf16>, vector<4x384xf32> -> vector<4x384xf32>
    %490 = vector.broadcast %194 : vector<1x384xf32> to vector<4x384xf32>
    %491 = arith.addf %489, %490 : vector<4x384xf32>
    %492 = arith.truncf %466 : vector<4x128xf32> to vector<4x128xbf16>
    %cst_101 = arith.constant dense<0.000000e+00> : vector<4x384xf32>
    %493 = tpu.matmul %492, %195, %cst_101 {dimension_numbers = #tpu.dot_dimension_numbers<[1], [0], [0], [1], [0, 0, 1, 1], [], []>} : vector<4x128xbf16>, vector<128x384xbf16>, vector<4x384xf32> -> vector<4x384xf32>
    %494 = vector.extract_strided_slice %491 {offsets = [0, 0], sizes = [4, 256], strides = [1, 1]} : vector<4x384xf32> to vector<4x256xf32>
    %495 = vector.extract_strided_slice %493 {offsets = [0, 0], sizes = [4, 256], strides = [1, 1]} : vector<4x384xf32> to vector<4x256xf32>
    %496 = arith.addf %494, %495 : vector<4x256xf32>
    %497 = arith.negf %496 : vector<4x256xf32>
    %498 = math.exp %497 : vector<4x256xf32>
    %cst_102 = arith.constant 1.000000e+00 : f32
    %499 = vector.broadcast %cst_102 : f32 to vector<4x256xf32>
    %500 = arith.addf %499, %498 : vector<4x256xf32>
    %501 = arith.divf %499, %500 : vector<4x256xf32>
    %502 = vector.extract_strided_slice %501 {offsets = [0, 0], sizes = [4, 128], strides = [1, 1]} : vector<4x256xf32> to vector<4x128xf32>
    %503 = vector.extract_strided_slice %501 {offsets = [0, 128], sizes = [4, 128], strides = [1, 1]} : vector<4x256xf32> to vector<4x128xf32>
    %504 = vector.extract_strided_slice %491 {offsets = [0, 256], sizes = [4, 128], strides = [1, 1]} : vector<4x384xf32> to vector<4x128xf32>
    %505 = vector.extract_strided_slice %493 {offsets = [0, 256], sizes = [4, 128], strides = [1, 1]} : vector<4x384xf32> to vector<4x128xf32>
    %506 = vector.broadcast %196 : vector<1x128xf32> to vector<4x128xf32>
    %507 = arith.addf %505, %506 : vector<4x128xf32>
    %508 = arith.mulf %502, %507 : vector<4x128xf32>
    %509 = arith.addf %504, %508 : vector<4x128xf32>
    %510 = math.tanh %509 : vector<4x128xf32>
    %511 = arith.subf %466, %510 : vector<4x128xf32>
    %512 = arith.mulf %503, %511 : vector<4x128xf32>
    %513 = arith.addf %510, %512 : vector<4x128xf32>
    %514 = arith.truncf %513 : vector<4x128xf32> to vector<4x128xbf16>
    %cst_103 = arith.constant dense<0.000000e+00> : vector<4x16xf32>
    %515 = tpu.matmul %514, %197, %cst_103 {dimension_numbers = #tpu.dot_dimension_numbers<[1], [0], [0], [1], [0, 0, 1, 1], [], []>} : vector<4x128xbf16>, vector<128x16xbf16>, vector<4x16xf32> -> vector<4x16xf32>
    %516 = vector.broadcast %198 : vector<1x16xf32> to vector<4x16xf32>
    %517 = arith.addf %515, %516 : vector<4x16xf32>
    %cst_104 = arith.constant dense<0xFF800000> : vector<4xf32>
    %518 = vector.multi_reduction <maximumf>, %517, %cst_104 [1] : vector<4x16xf32> to vector<4xf32>
    %519 = vector.shape_cast %518 : vector<4xf32> to vector<4x1xf32>
    %520 = vector.broadcast %519 : vector<4x1xf32> to vector<4x16xf32>
    %521 = arith.cmpf oge, %517, %520 : vector<4x16xf32>
    %c16_i32_105 = arith.constant 16 : i32
    %522 = vector.broadcast %c16_i32_105 : i32 to vector<4x16xi32>
    %523 = arith.select %521, %199, %522 : vector<4x16xi1>, vector<4x16xi32>
    %cst_106 = arith.constant dense<2147483647> : vector<4xi32>
    %524 = vector.multi_reduction <minsi>, %523, %cst_106 [1] : vector<4x16xi32> to vector<4xi32>
    %525 = vector.shape_cast %524 : vector<4xi32> to vector<4x1xi32>
    %c6_i32 = arith.constant 6 : i32
    %526 = vector.broadcast %c6_i32 : i32 to vector<4x8xi32>
    %527 = arith.cmpi eq, %200, %526 : vector<4x8xi32>
    %528 = vector.shape_cast %525 : vector<4x1xi32> to vector<4x1xi32>
    %529 = vector.broadcast %528 : vector<4x1xi32> to vector<4x8xi32>
    %530 = arith.select %527, %529, %483 : vector<4x8xi1>, vector<4x8xi32>
    %531 = vector.broadcast %525 : vector<4x1xi32> to vector<4x16xi32>
    %532 = arith.cmpi eq, %199, %531 : vector<4x16xi32>
    %533 = arith.extui %532 : vector<4x16xi1> to vector<4x16xi32>
    %534 = arith.sitofp %533 : vector<4x16xi32> to vector<4x16xf32>
    %535 = arith.truncf %534 : vector<4x16xf32> to vector<4x16xbf16>
    %cst_107 = arith.constant dense<0.000000e+00> : vector<4x384xf32>
    %536 = tpu.matmul %535, %193, %cst_107 {dimension_numbers = #tpu.dot_dimension_numbers<[1], [0], [0], [1], [0, 0, 1, 1], [], []>} : vector<4x16xbf16>, vector<16x384xbf16>, vector<4x384xf32> -> vector<4x384xf32>
    %537 = vector.broadcast %194 : vector<1x384xf32> to vector<4x384xf32>
    %538 = arith.addf %536, %537 : vector<4x384xf32>
    %539 = arith.truncf %513 : vector<4x128xf32> to vector<4x128xbf16>
    %cst_108 = arith.constant dense<0.000000e+00> : vector<4x384xf32>
    %540 = tpu.matmul %539, %195, %cst_108 {dimension_numbers = #tpu.dot_dimension_numbers<[1], [0], [0], [1], [0, 0, 1, 1], [], []>} : vector<4x128xbf16>, vector<128x384xbf16>, vector<4x384xf32> -> vector<4x384xf32>
    %541 = vector.extract_strided_slice %538 {offsets = [0, 0], sizes = [4, 256], strides = [1, 1]} : vector<4x384xf32> to vector<4x256xf32>
    %542 = vector.extract_strided_slice %540 {offsets = [0, 0], sizes = [4, 256], strides = [1, 1]} : vector<4x384xf32> to vector<4x256xf32>
    %543 = arith.addf %541, %542 : vector<4x256xf32>
    %544 = arith.negf %543 : vector<4x256xf32>
    %545 = math.exp %544 : vector<4x256xf32>
    %cst_109 = arith.constant 1.000000e+00 : f32
    %546 = vector.broadcast %cst_109 : f32 to vector<4x256xf32>
    %547 = arith.addf %546, %545 : vector<4x256xf32>
    %548 = arith.divf %546, %547 : vector<4x256xf32>
    %549 = vector.extract_strided_slice %548 {offsets = [0, 0], sizes = [4, 128], strides = [1, 1]} : vector<4x256xf32> to vector<4x128xf32>
    %550 = vector.extract_strided_slice %548 {offsets = [0, 128], sizes = [4, 128], strides = [1, 1]} : vector<4x256xf32> to vector<4x128xf32>
    %551 = vector.extract_strided_slice %538 {offsets = [0, 256], sizes = [4, 128], strides = [1, 1]} : vector<4x384xf32> to vector<4x128xf32>
    %552 = vector.extract_strided_slice %540 {offsets = [0, 256], sizes = [4, 128], strides = [1, 1]} : vector<4x384xf32> to vector<4x128xf32>
    %553 = vector.broadcast %196 : vector<1x128xf32> to vector<4x128xf32>
    %554 = arith.addf %552, %553 : vector<4x128xf32>
    %555 = arith.mulf %549, %554 : vector<4x128xf32>
    %556 = arith.addf %551, %555 : vector<4x128xf32>
    %557 = math.tanh %556 : vector<4x128xf32>
    %558 = arith.subf %513, %557 : vector<4x128xf32>
    %559 = arith.mulf %550, %558 : vector<4x128xf32>
    %560 = arith.addf %557, %559 : vector<4x128xf32>
    %561 = arith.truncf %560 : vector<4x128xf32> to vector<4x128xbf16>
    %cst_110 = arith.constant dense<0.000000e+00> : vector<4x16xf32>
    %562 = tpu.matmul %561, %197, %cst_110 {dimension_numbers = #tpu.dot_dimension_numbers<[1], [0], [0], [1], [0, 0, 1, 1], [], []>} : vector<4x128xbf16>, vector<128x16xbf16>, vector<4x16xf32> -> vector<4x16xf32>
    %563 = vector.broadcast %198 : vector<1x16xf32> to vector<4x16xf32>
    %564 = arith.addf %562, %563 : vector<4x16xf32>
    %cst_111 = arith.constant dense<0xFF800000> : vector<4xf32>
    %565 = vector.multi_reduction <maximumf>, %564, %cst_111 [1] : vector<4x16xf32> to vector<4xf32>
    %566 = vector.shape_cast %565 : vector<4xf32> to vector<4x1xf32>
    %567 = vector.broadcast %566 : vector<4x1xf32> to vector<4x16xf32>
    %568 = arith.cmpf oge, %564, %567 : vector<4x16xf32>
    %c16_i32_112 = arith.constant 16 : i32
    %569 = vector.broadcast %c16_i32_112 : i32 to vector<4x16xi32>
    %570 = arith.select %568, %199, %569 : vector<4x16xi1>, vector<4x16xi32>
    %cst_113 = arith.constant dense<2147483647> : vector<4xi32>
    %571 = vector.multi_reduction <minsi>, %570, %cst_113 [1] : vector<4x16xi32> to vector<4xi32>
    %572 = vector.shape_cast %571 : vector<4xi32> to vector<4x1xi32>
    %c7_i32 = arith.constant 7 : i32
    %573 = vector.broadcast %c7_i32 : i32 to vector<4x8xi32>
    %574 = arith.cmpi eq, %200, %573 : vector<4x8xi32>
    %575 = vector.shape_cast %572 : vector<4x1xi32> to vector<4x1xi32>
    %576 = vector.broadcast %575 : vector<4x1xi32> to vector<4x8xi32>
    %577 = arith.select %574, %576, %530 : vector<4x8xi1>, vector<4x8xi32>
    %c0_114 = arith.constant 0 : index
    %c0_115 = arith.constant 0 : index
    %578 = vector.load %arg13[%c0_114, %c0_115] : memref<4x8xi32, #tpu.memory_space<vmem>>, vector<4x8xi32>
    tpu.vector_store %arg13[%c0_114, %c0_115], %577 {strides = array<i32>} : memref<4x8xi32, #tpu.memory_space<vmem>>, vector<4x8xi32>,
    return
  }
}

</mosaic_0001>

<bundles_post_ra>
// kernel: tpu_custom_call.1
= control target key start
LH: loop header
LB: loop body
LE: loop exit
PB: predicated region body
PF: predicated region fallthrough
CT: control target
= control target key end

     0   :  { %19 = vsyncpa [#allocation3], 0  ;;  %s6057_s0 = inlined_call_operand.vmem [shape: f32[6,4,384], index: 0, kind: input, shape index: {}]   ;;  %s6058_s1 = inlined_call_operand.vmem [shape: s32[4,1], index: 1, kind: input, shape index: {}]   ;;  %s6059_s2 = inlined_call_operand.hbm [shape: bf16[128,384], index: 2, kind: input, shape index: {}]   ;;  %s6060_s3 = inlined_call_operand.vmem [shape: f32[1,128], index: 3, kind: input, shape index: {}]   ;;  %s6061_s4 = inlined_call_operand.hbm [shape: bf16[128,128], index: 4, kind: input, shape index: {}]   ;;  %s6062_s5 = inlined_call_operand.vmem [shape: f32[1,128], index: 5, kind: input, shape index: {}]   ;;  %s6063_s6 = inlined_call_operand.hbm [shape: bf16[16,384], index: 6, kind: input, shape index: {}]   ;;  %s6064_s7 = inlined_call_operand.vmem [shape: f32[1,384], index: 7, kind: input, shape index: {}]   ;;  %s6065_s8 = inlined_call_operand.hbm [shape: bf16[128,384], index: 8, kind: input, shape index: {}]   ;;  %s6066_s9 = inlined_call_operand.vmem [shape: f32[1,128], index: 9, kind: input, shape index: {}]   ;;  %s6067_s10 = inlined_call_operand.vmem [shape: bf16[128,16], index: 10, kind: input, shape index: {}]   ;;  %s6068_s11 = inlined_call_operand.vmem [shape: f32[1,16], index: 11, kind: input, shape index: {}]   ;;  %s6069_s12 = inlined_call_operand.hbm [shape: f32[4,128], index: 12, kind: output, shape index: {0}]   ;;  %s6070_s13 = inlined_call_operand.hbm [shape: s32[4,8], index: 13, kind: output, shape index: {1}]  }
   0x1   :  { %20 = vsyncpa [#allocation6], 0 }
   0x2   :  { %21 = vsyncpa [#allocation9], 0 }
   0x3   :  { %22 = vsyncpa [#allocation4], 0 }
   0x4   :  { %23 = vsyncpa [#allocation12], 0  ;;  %s4650_s25 = smov [#allocation5]  }
   0x5   :  { %s47_s26 = sshll.u32 %s4650_s25, 4  ;;  %s48_s26 = int_to_ptr.vmem [resolvable:$true] %s47_s26 }
   0x6   :  { %s4528_s27 = scalar_lea.vmem %s48_s26, 1024  ;;  %p4533_p1 = scmp.lt.s32.totalorder %s48_s26, %s48_s26 }
   0x7   :  { %p4529_p0 = scmp.ne.s32.totalorder %s48_s26, %s4528_s27  ;;  %p4534_p2 = scmp.lt.s32.totalorder %s4528_s27, %s4528_s27 }
   0x9   :  { %p4535_p3 = por %p4534_p2, %p4533_p1 }
   0xb   :  { %p4536_p4 = pnand %p4535_p3, %p4529_p0 }
   0xd   :  { %4539 = shalt.err (!%p4536_p4)
}
   0xe   :  { %s4651_s28 = smov 64   ;;  %s4652_s29 = smov 4  }
   0xf   :  { %53 = dma.hbm_to_vmem [thread:$0]  %s6061_s4, 1024, %s48_s26, [#allocation6], %s4651_s28, %s4651_s28, %s4652_s29  }
  0x10   :  { %s4653_s15 = smov [#allocation2]  }
  0x11   :  { %s33_s16 = sshll.u32 %s4653_s15, 4  ;;  %s34_s16 = int_to_ptr.vmem [resolvable:$true] %s33_s16 }
  0x12   :  { %s4548_s17 = scalar_lea.vmem %s34_s16, 3072  ;;  %p4553_p6 = scmp.lt.s32.totalorder %s34_s16, %s34_s16 }
  0x13   :  { %p4549_p5 = scmp.ne.s32.totalorder %s34_s16, %s4548_s17  ;;  %p4554_p7 = scmp.lt.s32.totalorder %s4548_s17, %s4548_s17 }
  0x15   :  { %p4555_p8 = por %p4554_p7, %p4553_p6 }
  0x17   :  { %p4556_p9 = pnand %p4555_p8, %p4549_p5 }
  0x19   :  { %4559 = shalt.err (!%p4556_p9)
}
  0x1a   :  { %s4654_s18 = smov 192   ;;  %s4655_s19 = smov 12  }
  0x1b   :  { %39 = dma.hbm_to_vmem [thread:$0]  %s6059_s2, 3072, %s34_s16, [#allocation3], %s4654_s18, %s4654_s18, %s4655_s19  }
  0x1c   :  { %s4656_s22 = smov [#allocation7]   ;;  %s4657_s24 = smov [#allocation8]  }
  0x1d   :  { %s61_s23 = sshll.u32 %s4656_s22, 4  ;;  %s75_s4 = sshll.u32 %s4657_s24, 4  ;;  %s62_s23 = int_to_ptr.vmem [resolvable:$true] %s61_s23  ;;  %s76_s4 = int_to_ptr.vmem [resolvable:$true] %s75_s4 }
  0x1e   :  { %s4568_s25 = scalar_lea.vmem %s62_s23, 384  ;;  %p4573_p11 = scmp.lt.s32.totalorder %s62_s23, %s62_s23 }
  0x1f   :  { %p4569_p10 = scmp.ne.s32.totalorder %s62_s23, %s4568_s25  ;;  %p4574_p12 = scmp.lt.s32.totalorder %s4568_s25, %s4568_s25 }
  0x21   :  { %p4575_p13 = por %p4574_p12, %p4573_p11 }
  0x23   :  { %p4576_p0 = pnand %p4575_p13, %p4569_p10 }
  0x25   :  { %4579 = shalt.err (!%p4576_p0)
}
  0x26   :  { %67 = dma.hbm_to_vmem [thread:$0]  %s6063_s6, 384, %s62_s23, [#allocation6], %s4654_s18, %s4654_s18, %s4655_s19  }
  0x27   :  { %s4588_s28 = scalar_lea.vmem %s76_s4, 3072  ;;  %p4593_p2 = scmp.lt.s32.totalorder %s76_s4, %s76_s4 }
  0x28   :  { %p4589_p1 = scmp.ne.s32.totalorder %s76_s4, %s4588_s28  ;;  %p4594_p3 = scmp.lt.s32.totalorder %s4588_s28, %s4588_s28 }
  0x2a   :  { %p4595_p4 = por %p4594_p3, %p4593_p2 }
  0x2c   :  { %p4596_p5 = pnand %p4595_p4, %p4589_p1 }
  0x2e   :  { %4599 = shalt.err (!%p4596_p5)
}
  0x2f   :  { %81 = dma.hbm_to_vmem [thread:$0]  %s6065_s8, 3072, %s76_s4, [#allocation9], %s4654_s18, %s4654_s18, %s4655_s19  }
  0x30   :  { %4640 = dma.done.wait [#allocation3], 3072  }
  0x31   :  { %4641 = vsyncadd [#allocation3], 4294964224 }
  0x32   :  { %4642 = dma.done.wait [#allocation6], 1408  }
  0x33   :  { %4643 = vsyncadd [#allocation6], 4294965888 }
  0x34   :  { %4644 = dma.done.wait [#allocation9], 3072  }
  0x35   :  { %4645 = vsyncadd [#allocation9], 4294964224  ;;  %v6073_v0 = vmov 0.0   ;;  %v6071_v1 = vmov 0   ;;  %vm4660_vm0 = vmmov 0   ;;  %v135_v31 = vld [vmem:[%s6057_s0] sm:$0xff] }
  0x36   :  { %3758 = vmatprep.subr.bf16.mxu1 %v6073_v0  ;;  %297 = vmatprep.mubr.bf16.mxu0 %v6071_v1  ;;  %v4751_v2 = vld [vmem:[#allocation2 + $0xac] ss:$12 sps:$4 sm:$0xff]   ;;  %v4753_v3 = vld [vmem:[#allocation2 + $0xa8] ss:$12 sps:$4 sm:$0xff]   ;;  %v4759_v5 = vld [vmem:[#allocation2 + $0x90] ss:$12 sps:$4 sm:$0xff]  }
  0x37   :  { %3774 = vmatprep.mubr.msk.bf16.mxu1 %vm4660_vm0, %v6073_v0  ;;  %4279 = vset.pattern.permute.xlu0 %v6071_v1  ;;  %v4756_v4 = vld [vmem:[#allocation2 + $0x94] ss:$12 sps:$4 sm:$0xff]   ;;  %v4762_v6 = vld [vmem:[#allocation2 + $0x7c] ss:$12 sps:$4 sm:$0xff]   ;;  %v4765_v7 = vld [vmem:[#allocation2 + $0x78] ss:$12 sps:$4 sm:$0xff]  }
  0x38   :  { %4280 = vset.pattern.permute.xlu1 %v6071_v1  ;;  %265 = vmatprep.subr.bf16.mxu0 %v4751_v2  ;;  %v4768_v8 = vld [vmem:[#allocation2 + $0x64] ss:$12 sps:$4 sm:$0xff]   ;;  %v4770_v9 = vld [vmem:[#allocation2 + $0x60] ss:$12 sps:$4 sm:$0xff]   ;;  %v4783_v13 = vld [vmem:[#allocation2 + $0x48] ss:$12 sps:$4 sm:$0xff]  }
  0x39   :  { %266 = vmatpush1.bf16.msra.mxu0 %v4753_v3  ;;  %v4773_v10 = vld [vmem:[#allocation2 + $0xb0] ss:$12 sps:$4 sm:$0xff]   ;;  %v4776_v11 = vld [vmem:[#allocation2 + $0x4c] ss:$12 sps:$4 sm:$0xff]   ;;  %v4786_v14 = vld [vmem:[#allocation2 + $0x34] ss:$12 sps:$4 sm:$0xff]  }
  0x3a   :  { %267 = vmatprep.subr.bf16.mxu0 %v4756_v4  ;;  %3759 = vmatpush3.bf16.msra.mxu1 %v4773_v10  ;;  %v4779_v12 = vld [vmem:[#allocation2 + $0x98] ss:$12 sps:$4 sm:$0xff]   ;;  %v4788_v15 = vld [vmem:[#allocation2 + $0x30] ss:$12 sps:$4 sm:$0xff]   ;;  %v4791_v16 = vld [vmem:[#allocation2 + $0x80] ss:$12 sps:$4 sm:$0xff]  }
  0x3b   :  { %3760 = vmatprep.subr.bf16.mxu1 %v6073_v0  ;;  %v4793_v17 = vld [vmem:[#allocation2 + $0x1c] ss:$12 sps:$4 sm:$0xff]   ;;  %v4799_v18 = vld [vmem:[%s6058_s1] sm:$0xf]  ;;  %v4810_v22 = vld [vmem:[#allocation2 + $0x18] ss:$12 sps:$4 sm:$0xff]  }
  0x3c   :  { %v4802_v19 = vld [vmem:[#allocation2 + $0x68] ss:$12 sps:$4 sm:$0xff]   ;;  %vm373_vm1 = vcmp.gt.s32.totalorder %v4799_v18, 0  ;;  %vm486_vm2 = vcmp.gt.s32.totalorder %v4799_v18, 1  ;;  %vm825_vm3 = vcmp.gt.s32.totalorder %v4799_v18, 4  ;;  %vm599_vm6 = vcmp.gt.s32.totalorder %v4799_v18, 2 }
  0x3d   :  { %268 = vmatpush1.bf16.msra.mxu0 %v4759_v5  ;;  %v374_v20 = vsel %vm373_vm1, 1, %v6071_v1  ;;  %v487_v21 = vsel %vm486_vm2, 1, %v6071_v1  ;;  %v4813_v23 = vld [vmem:[#allocation2 + $0x4] ss:$12 sps:$4 sm:$0xff]   ;;  %v4820_v25 = vld [vmem:[#allocation2] ss:$12 sps:$4 sm:$0xff]  }
  0x3e   :  { %269 = vmatprep.subr.bf16.mxu0 %v4762_v6  ;;  %3761 = vmatpush3.bf16.msra.mxu1 %v4779_v12  ;;  %v4817_v24 = vld [vmem:[#allocation2 + $0x50] ss:$12 sps:$4 sm:$0xff]   ;;  %v826_v26 = vsel %vm825_vm3, 1, %v6071_v1  ;;  %v4826_v27 = vld [vmem:[#allocation2 + $0x38] ss:$12 sps:$4 sm:$0xff]   ;;  %vm712_vm7 = vcmp.gt.s32.totalorder %v4799_v18, 3 }
  0x3f   :  { %3762 = vmatprep.subr.bf16.mxu1 %v6073_v0  ;;  %376 = vperm.xlu0 %4279, %v374_v20   ;;  %v4832_v28 = vld [vmem:[#allocation2 + $0x20] ss:$12 sps:$4 sm:$0xff]   ;;  %v4838_v29 = vld [vmem:[#allocation2 + $0x8] ss:$12 sps:$4 sm:$0xff]   ;;  %v600_v57 = vsel %vm599_vm6, 1, %v6071_v1  ;;  %v713_v58 = vsel %vm712_vm7, 1, %v6071_v1 }
  0x40   :  { %v4886_v44 = vld [vmem:[%s6060_s3] ss:$0 sm:$0xff]  ;;  %v136_v47 = vld [vmem:[%s6057_s0 + $0x8] sm:$0xf]  ;;  %602 = vperm.xlu1 %4280, %v600_v57   ;;  %vm938_vm8 = vcmp.gt.s32.totalorder %v4799_v18, 5  ;;  %v3428_v62 = vld [vmem:[%s6057_s0 + $0xc] sm:$0xff] }
  0x41   :  { %270 = vmatpush1.bf16.msra.mxu0 %v4765_v7  ;;  %v939_v59 = vsel %vm938_vm8, 1, %v6071_v1  ;;  %vm1159_vm15 = vcmask 130048   ;;  %vm1058_vm1 = vcmask 1043456   ;;  %vm1576_vm2 = vcmask 125952  }
  0x42   :  { %271 = vmatprep.subr.bf16.mxu0 %v4768_v8  ;;  %3763 = vmatpush3.bf16.msra.mxu1 %v4791_v16 }
  0x43   :  { %3764 = vmatprep.subr.bf16.mxu1 %v6073_v0  ;;  %489 = vperm.xlu0 %4279, %v487_v21  }
  0x44   :  { %715 = vperm.xlu1 %4280, %v713_v58  }
  0x45   :  { %272 = vmatpush1.bf16.msra.mxu0 %v4770_v9 }
  0x46   :  { %273 = vmatprep.subr.bf16.mxu0 %v4776_v11  ;;  %3765 = vmatpush3.bf16.msra.mxu1 %v4802_v19 }
  0x47   :  { %3766 = vmatprep.subr.bf16.mxu1 %v6073_v0  ;;  %828 = vperm.xlu0 %4279, %v826_v26  }
  0x48   :  { %941 = vperm.xlu1 %4280, %v939_v59  }
  0x49   :  { %274 = vmatpush1.bf16.msra.mxu0 %v4783_v13 }
  0x4a   :  { %275 = vmatprep.subr.bf16.mxu0 %v4786_v14  ;;  %3767 = vmatpush3.bf16.msra.mxu1 %v4817_v24 }
  0x4b   :  { %3768 = vmatprep.subr.bf16.mxu1 %v6073_v0 }
  0x4d   :  { %276 = vmatpush1.bf16.msra.mxu0 %v4788_v15 }
  0x4e   :  { %277 = vmatprep.subr.bf16.mxu0 %v4793_v17  ;;  %3769 = vmatpush3.bf16.msra.mxu1 %v4826_v27 }
  0x4f   :  { %3770 = vmatprep.subr.bf16.mxu1 %v6073_v0 }
  0x51   :  { %278 = vmatpush1.bf16.msra.mxu0 %v4810_v22 }
  0x52   :  { %279 = vmatprep.subr.bf16.mxu0 %v4813_v23  ;;  %3771 = vmatpush3.bf16.msra.mxu1 %v4832_v28 }
  0x53   :  { %3772 = vmatprep.subr.bf16.mxu1 %v6073_v0 }
  0x55   :  { %280 = vmatpush1.bf16.msra.mxu0 %v4820_v25 }
  0x56   :  { %384 = vmatprep.subr.bf16.mxu0 %v4751_v2  ;;  %3773 = vmatpush3.bf16.msra.mxu1 %v4838_v29 }
  0x57   :  { %3778 = vmatprep.subr.bf16.mxu1 %v6073_v0 }
  0x58   :  { %298 = vmatmul.mubr.bf16.vlgmr.msra.gmra.mxu0 %v6071_v1 }
  0x59   :  { %385 = vmatpush1.bf16.msra.mxu0 %v4753_v3  ;;  %416 = vmatprep.mubr.bf16.mxu0 %v6071_v1 }
  0x5a   :  { %386 = vmatprep.subr.bf16.mxu0 %v4756_v4  ;;  %3775 = vmatmul.mubr.bf16.vlgmr.msra.gmra.mxu1 %v6071_v1 }
  0x5b   :  { %3779 = vmatpush3.bf16.msra.mxu1 %v4773_v10  ;;  %3794 = vmatprep.mubr.msk.bf16.mxu1 %vm4660_vm0, %v6073_v0 }
  0x5c   :  { %3780 = vmatprep.subr.bf16.mxu1 %v6073_v0 }
  0x5d   :  { %387 = vmatpush1.bf16.msra.mxu0 %v4759_v5 }
  0x5e   :  { %388 = vmatprep.subr.bf16.mxu0 %v4762_v6 }
  0x5f   :  { %3781 = vmatpush3.bf16.msra.mxu1 %v4779_v12 }
  0x60   :  { %3782 = vmatprep.subr.bf16.mxu1 %v6073_v0 }
  0x61   :  { %389 = vmatpush1.bf16.msra.mxu0 %v4765_v7 }
  0x62   :  { %390 = vmatprep.subr.bf16.mxu0 %v4768_v8 }
  0x63   :  { %3783 = vmatpush3.bf16.msra.mxu1 %v4791_v16 }
  0x64   :  { %3784 = vmatprep.subr.bf16.mxu1 %v6073_v0 }
  0x65   :  { %391 = vmatpush1.bf16.msra.mxu0 %v4770_v9 }
  0x66   :  { %392 = vmatprep.subr.bf16.mxu0 %v4776_v11 }
  0x67   :  { %3785 = vmatpush3.bf16.msra.mxu1 %v4802_v19 }
  0x68   :  { %3786 = vmatprep.subr.bf16.mxu1 %v6073_v0 }
  0x69   :  { %393 = vmatpush1.bf16.msra.mxu0 %v4783_v13 }
  0x6a   :  { %394 = vmatprep.subr.bf16.mxu0 %v4786_v14 }
  0x6b   :  { %3787 = vmatpush3.bf16.msra.mxu1 %v4817_v24 }
  0x6c   :  { %3788 = vmatprep.subr.bf16.mxu1 %v6073_v0 }
  0x6d   :  { %395 = vmatpush1.bf16.msra.mxu0 %v4788_v15 }
  0x6e   :  { %396 = vmatprep.subr.bf16.mxu0 %v4793_v17 }
  0x6f   :  { %3789 = vmatpush3.bf16.msra.mxu1 %v4826_v27 }
  0x70   :  { %3790 = vmatprep.subr.bf16.mxu1 %v6073_v0 }
  0x71   :  { %397 = vmatpush1.bf16.msra.mxu0 %v4810_v22 }
  0x72   :  { %398 = vmatprep.subr.bf16.mxu0 %v4813_v23 }
  0x73   :  { %3791 = vmatpush3.bf16.msra.mxu1 %v4832_v28 }
  0x74   :  { %3792 = vmatprep.subr.bf16.mxu1 %v6073_v0 }
  0x75   :  { %399 = vmatpush1.bf16.msra.mxu0 %v4820_v25 }
  0x76   :  { %497 = vmatprep.subr.bf16.mxu0 %v4751_v2 }
  0x77   :  { %3793 = vmatpush3.bf16.msra.mxu1 %v4838_v29 }
  0x78   :  { %3798 = vmatprep.subr.bf16.mxu1 %v6073_v0 }
  0xba   :  { %v4892_v53 = vpop.permute.xlu0 %376 }
  0xbb   :  { %vm378_vm4 = vcmp.eq.s32.totalorder %v4892_v53, 1  ;;  %v3437_v53 = vld [vmem:[%s6057_s0 + $0x18] sm:$0xff] }
  0xbc   :  { %vm3430_vm5 = vmpackc.low %vm378_vm4, %vm378_vm4 }
 0x118   :  { %v299_v30 = vpop.f32.mrf.mxu0 }
 0x11a   :  { %v301_v32 = vpop.f32.mrf.mxu0  ;;  %v340_v38 = vpop.f32.mrf.mxu1 }
 0x11b   :  { %v348_v33 = vcombine.low %v299_v30, %v301_v32  ;;  %v363_v45 = vadd.f32 %v4886_v44, %v340_v38  ;;  %v3429_v38 = vld [vmem:[%s6057_s0 + $0x14] sm:$0xf] }
 0x11c   :  { %v303_v34 = vpop.f32.mrf.mxu0  ;;  %v3776_v39 = vpop.f32.mrf.mxu1 }
 0x11d   :  { %v350_v35 = vadd.f32 %v348_v33, %v135_v31 }
 0x11e   :  { %v304_v36 = vpop.f32.mrf.mxu0  ;;  %v343_v40 = vpop.f32.mrf.mxu1 }
 0x11f   :  { %v3426_v37 = vmul.f32 -1.442695, %v350_v35 }
 0x120   :  { %v3777_v41 = vpop.f32.mrf.mxu1 }
 0x121   :  { %4365 = vpow2.f32 %v3426_v37 }
 0x12e   :  { %v4366_v42 = vpop.eup %4365 }
 0x12f   :  { %v354_v43 = vadd.f32 1.0, %v4366_v42 }
 0x131   :  { %4367 = vrcp.f32 %v354_v43 }
 0x13e   :  { %v4368_v46 = vpop.eup %4367 }
 0x13f   :  { %v364_v48 = vmul.f32 %v4368_v46, %v363_v45  ;;  %v369_v52 = vrot.slane %v4368_v46, 4 }
 0x141   :  { %v365_v49 = vadd.f32 %v364_v48, %v136_v47  ;;  %v490_v47 = vpop.permute.xlu0 %489 }
 0x142   :  { %vm491_vm9 = vcmp.eq.s32.totalorder %v490_v47, 1 }
 0x143   :  { %4369 = vtanh.f32 %v365_v49 }
 0x150   :  { %v4370_v50 = vpop.eup %4369 }
 0x151   :  { %v367_v51 = vsub.f32 0.0, %v4370_v50 }
 0x153   :  { %v371_v54 = vmul.f32 %v369_v52, %v367_v51 }
 0x155   :  { %v4895_v55 = vadd.f32 %v4370_v50, %v371_v54 }
 0x157   :  { %v3431_v56 = vpack.c.bf16 %v4895_v55, %v4895_v55  ;;  %v379_v42 = vsel %vm378_vm4, %v4895_v55, 0.0 }
 0x159   :  { %3432 = vmatmul.mubr.msk.bf16.vlgmr.msra.gmra.mxu0 %vm3430_vm5, %v3431_v56  ;;  %3795 = vmatmul.mubr.msk.bf16.vlgmr.msra.gmra.mxu1 %vm3430_vm5, %v3431_v56 }
 0x15a   :  { %498 = vmatpush1.bf16.msra.mxu0 %v4753_v3  ;;  %3799 = vmatpush3.bf16.msra.mxu1 %v4773_v10 }
 0x15b   :  { %499 = vmatprep.subr.bf16.mxu0 %v4756_v4  ;;  %3800 = vmatprep.subr.bf16.mxu1 %v6073_v0 }
 0x15c   :  { %529 = vmatprep.mubr.bf16.mxu0 %v6071_v1  ;;  %3814 = vmatprep.mubr.msk.bf16.mxu1 %vm4660_vm0, %v6073_v0 }
 0x15e   :  { %500 = vmatpush1.bf16.msra.mxu0 %v4759_v5  ;;  %3801 = vmatpush3.bf16.msra.mxu1 %v4779_v12 }
 0x15f   :  { %501 = vmatprep.subr.bf16.mxu0 %v4762_v6  ;;  %3802 = vmatprep.subr.bf16.mxu1 %v6073_v0 }
 0x162   :  { %502 = vmatpush1.bf16.msra.mxu0 %v4765_v7  ;;  %3803 = vmatpush3.bf16.msra.mxu1 %v4791_v16 }
 0x163   :  { %503 = vmatprep.subr.bf16.mxu0 %v4768_v8  ;;  %3804 = vmatprep.subr.bf16.mxu1 %v6073_v0 }
 0x166   :  { %504 = vmatpush1.bf16.msra.mxu0 %v4770_v9  ;;  %3805 = vmatpush3.bf16.msra.mxu1 %v4802_v19 }
 0x167   :  { %505 = vmatprep.subr.bf16.mxu0 %v4776_v11  ;;  %3806 = vmatprep.subr.bf16.mxu1 %v6073_v0 }
 0x16a   :  { %506 = vmatpush1.bf16.msra.mxu0 %v4783_v13  ;;  %3807 = vmatpush3.bf16.msra.mxu1 %v4817_v24 }
 0x16b   :  { %507 = vmatprep.subr.bf16.mxu0 %v4786_v14  ;;  %3808 = vmatprep.subr.bf16.mxu1 %v6073_v0 }
 0x16e   :  { %508 = vmatpush1.bf16.msra.mxu0 %v4788_v15  ;;  %3809 = vmatpush3.bf16.msra.mxu1 %v4826_v27 }
 0x16f   :  { %509 = vmatprep.subr.bf16.mxu0 %v4793_v17  ;;  %3810 = vmatprep.subr.bf16.mxu1 %v6073_v0 }
 0x172   :  { %510 = vmatpush1.bf16.msra.mxu0 %v4810_v22  ;;  %3811 = vmatpush3.bf16.msra.mxu1 %v4832_v28 }
 0x173   :  { %511 = vmatprep.subr.bf16.mxu0 %v4813_v23  ;;  %3812 = vmatprep.subr.bf16.mxu1 %v6073_v0 }
 0x176   :  { %512 = vmatpush1.bf16.msra.mxu0 %v4820_v25  ;;  %3813 = vmatpush3.bf16.msra.mxu1 %v4838_v29 }
 0x177   :  { %610 = vmatprep.subr.bf16.mxu0 %v4751_v2  ;;  %3818 = vmatprep.subr.bf16.mxu1 %v6073_v0 }
 0x219   :  { %v418_v60 = vpop.f32.mrf.mxu0  ;;  %v459_v61 = vpop.f32.mrf.mxu1 }
 0x21a   :  { %v476_v36 = vadd.f32 %v4886_v44, %v459_v61 }
 0x21b   :  { %v420_v63 = vpop.f32.mrf.mxu0  ;;  %v3796_v20 = vpop.f32.mrf.mxu1 }
 0x21c   :  { %v467_v21 = vcombine.low %v418_v60, %v420_v63 }
 0x21d   :  { %v422_v26 = vpop.f32.mrf.mxu0  ;;  %v462_v30 = vpop.f32.mrf.mxu1 }
 0x21e   :  { %v469_v31 = vadd.f32 %v3428_v62, %v467_v21  ;;  %v3438_v30 = vld [vmem:[%s6057_s0 + $0x20] sm:$0xf] }
 0x21f   :  { %v423_v32 = vpop.f32.mrf.mxu0  ;;  %v3797_v33 = vpop.f32.mrf.mxu1 }
 0x220   :  { %v3436_v34 = vmul.f32 -1.442695, %v469_v31 }
 0x222   :  { %4371 = vpow2.f32 %v3436_v34 }
 0x22f   :  { %v4372_v18 = vpop.eup %4371 }
 0x230   :  { %v473_v35 = vadd.f32 1.0, %v4372_v18 }
 0x232   :  { %4373 = vrcp.f32 %v473_v35  ;;  %v603_v35 = vpop.permute.xlu1 %602 }
 0x233   :  { %vm604_vm10 = vcmp.eq.s32.totalorder %v603_v35, 1  ;;  %v4315_v35 = vld [vmem:[#allocation5 + $0x28] sm:$0xff]  }
 0x23f   :  { %v4374_v37 = vpop.eup %4373 }
 0x240   :  { %v477_v39 = vmul.f32 %v4374_v37, %v476_v36  ;;  %v482_v45 = vrot.slane %v4374_v37, 4 }
 0x242   :  { %v478_v40 = vadd.f32 %v3429_v38, %v477_v39 }
 0x244   :  { %4375 = vtanh.f32 %v478_v40 }
 0x251   :  { %v4376_v41 = vpop.eup %4375 }
 0x252   :  { %v480_v43 = vsub.f32 %v379_v42, %v4376_v41 }
 0x254   :  { %v484_v46 = vmul.f32 %v482_v45, %v480_v43 }
 0x256   :  { %v485_v48 = vadd.f32 %v4376_v41, %v484_v46 }
 0x258   :  { %v4953_v49 = vsel %vm491_vm9, %v485_v48, %v379_v42  ;;  %v3440_v42 = vld [vmem:[%s6057_s0 + $0x24] sm:$0xff] }
 0x259   :  { %v496_v50 = vpack.c.bf16 %v4953_v49, %v4953_v49 }
 0x25b   :  { %530 = vmatmul.mubr.bf16.vlgmr.msra.gmra.mxu0 %v496_v50  ;;  %3815 = vmatmul.mubr.bf16.vlgmr.msra.gmra.mxu1 %v496_v50 }
 0x25c   :  { %611 = vmatpush1.bf16.msra.mxu0 %v4753_v3  ;;  %3819 = vmatpush3.bf16.msra.mxu1 %v4773_v10 }
 0x25d   :  { %612 = vmatprep.subr.bf16.mxu0 %v4756_v4  ;;  %3820 = vmatprep.subr.bf16.mxu1 %v6073_v0 }
 0x25e   :  { %642 = vmatprep.mubr.bf16.mxu0 %v6071_v1  ;;  %3834 = vmatprep.mubr.msk.bf16.mxu1 %vm4660_vm0, %v6073_v0 }
 0x260   :  { %613 = vmatpush1.bf16.msra.mxu0 %v4759_v5  ;;  %3821 = vmatpush3.bf16.msra.mxu1 %v4779_v12 }
 0x261   :  { %614 = vmatprep.subr.bf16.mxu0 %v4762_v6  ;;  %3822 = vmatprep.subr.bf16.mxu1 %v6073_v0 }
 0x264   :  { %615 = vmatpush1.bf16.msra.mxu0 %v4765_v7  ;;  %3823 = vmatpush3.bf16.msra.mxu1 %v4791_v16 }
 0x265   :  { %616 = vmatprep.subr.bf16.mxu0 %v4768_v8  ;;  %3824 = vmatprep.subr.bf16.mxu1 %v6073_v0 }
 0x268   :  { %617 = vmatpush1.bf16.msra.mxu0 %v4770_v9  ;;  %3825 = vmatpush3.bf16.msra.mxu1 %v4802_v19 }
 0x269   :  { %618 = vmatprep.subr.bf16.mxu0 %v4776_v11  ;;  %3826 = vmatprep.subr.bf16.mxu1 %v6073_v0 }
 0x26c   :  { %619 = vmatpush1.bf16.msra.mxu0 %v4783_v13  ;;  %3827 = vmatpush3.bf16.msra.mxu1 %v4817_v24 }
 0x26d   :  { %620 = vmatprep.subr.bf16.mxu0 %v4786_v14  ;;  %3828 = vmatprep.subr.bf16.mxu1 %v6073_v0 }
 0x270   :  { %621 = vmatpush1.bf16.msra.mxu0 %v4788_v15  ;;  %3829 = vmatpush3.bf16.msra.mxu1 %v4826_v27 }
 0x271   :  { %622 = vmatprep.subr.bf16.mxu0 %v4793_v17  ;;  %3830 = vmatprep.subr.bf16.mxu1 %v6073_v0 }
 0x274   :  { %623 = vmatpush1.bf16.msra.mxu0 %v4810_v22  ;;  %3831 = vmatpush3.bf16.msra.mxu1 %v4832_v28 }
 0x275   :  { %624 = vmatprep.subr.bf16.mxu0 %v4813_v23  ;;  %3832 = vmatprep.subr.bf16.mxu1 %v6073_v0 }
 0x278   :  { %625 = vmatpush1.bf16.msra.mxu0 %v4820_v25  ;;  %3833 = vmatpush3.bf16.msra.mxu1 %v4838_v29 }
 0x279   :  { %723 = vmatprep.subr.bf16.mxu0 %v4751_v2  ;;  %3838 = vmatprep.subr.bf16.mxu1 %v6073_v0 }
 0x31b   :  { %v531_v51 = vpop.f32.mrf.mxu0  ;;  %v572_v52 = vpop.f32.mrf.mxu1 }
 0x31c   :  { %v589_v21 = vadd.f32 %v4886_v44, %v572_v52 }
 0x31d   :  { %v533_v54 = vpop.f32.mrf.mxu0  ;;  %v3816_v55 = vpop.f32.mrf.mxu1 }
 0x31e   :  { %v580_v56 = vcombine.low %v531_v51, %v533_v54 }
 0x31f   :  { %v535_v57 = vpop.f32.mrf.mxu0  ;;  %v575_v58 = vpop.f32.mrf.mxu1 }
 0x320   :  { %v582_v59 = vadd.f32 %v3437_v53, %v580_v56  ;;  %v3441_v56 = vld [vmem:[%s6057_s0 + $0x2c] sm:$0xf] }
 0x321   :  { %v536_v60 = vpop.f32.mrf.mxu0  ;;  %v3817_v61 = vpop.f32.mrf.mxu1 }
 0x322   :  { %v3439_v62 = vmul.f32 -1.442695, %v582_v59 }
 0x324   :  { %4377 = vpow2.f32 %v3439_v62 }
 0x331   :  { %v4378_v63 = vpop.eup %4377 }
 0x332   :  { %v586_v20 = vadd.f32 1.0, %v4378_v63  ;;  %v716_v63 = vpop.permute.xlu1 %715 }
 0x333   :  { %vm717_vm11 = vcmp.eq.s32.totalorder %v716_v63, 1 }
 0x334   :  { %4379 = vrcp.f32 %v586_v20 }
 0x336   :  { %v942_v63 = vpop.permute.xlu1 %941 }
 0x337   :  { %vm943_vm13 = vcmp.eq.s32.totalorder %v942_v63, 1  ;;  %v5289_v63 = vld [vmem:[%s6067_s10 + $0x10] sm:$0xff]  }
 0x341   :  { %v4380_v26 = vpop.eup %4379 }
 0x342   :  { %v590_v31 = vmul.f32 %v4380_v26, %v589_v21  ;;  %v595_v18 = vrot.slane %v4380_v26, 4 }
 0x344   :  { %v591_v32 = vadd.f32 %v3438_v30, %v590_v31 }
 0x346   :  { %4381 = vtanh.f32 %v591_v32 }
 0x353   :  { %v4382_v33 = vpop.eup %4381 }
 0x354   :  { %v593_v34 = vsub.f32 %v4953_v49, %v4382_v33 }
 0x356   :  { %v597_v36 = vmul.f32 %v595_v18, %v593_v34  ;;  %v4313_v34 = vld [vmem:[#allocation5 + $0x38] sm:$0xff]   ;;  %v4314_v18 = vld [vmem:[#allocation5 + $0x30] sm:$0xff]  }
 0x358   :  { %v598_v37 = vadd.f32 %v4382_v33, %v597_v36  ;;  %v4316_v36 = vld [vmem:[#allocation5 + $0x20] sm:$0xff]  }
 0x35a   :  { %v5001_v38 = vsel %vm604_vm10, %v598_v37, %v4953_v49  ;;  %v4317_v37 = vld [vmem:[#allocation5 + $0x18] sm:$0xff]  }
 0x35b   :  { %v609_v39 = vpack.c.bf16 %v5001_v38, %v5001_v38 }
 0x35d   :  { %643 = vmatmul.mubr.bf16.vlgmr.msra.gmra.mxu0 %v609_v39  ;;  %3835 = vmatmul.mubr.bf16.vlgmr.msra.gmra.mxu1 %v609_v39  ;;  %v4319_v39 = vld [vmem:[#allocation5 + $0x8] sm:$0xff]  }
 0x35e   :  { %724 = vmatpush1.bf16.msra.mxu0 %v4753_v3  ;;  %3839 = vmatpush3.bf16.msra.mxu1 %v4773_v10 }
 0x35f   :  { %725 = vmatprep.subr.bf16.mxu0 %v4756_v4  ;;  %3840 = vmatprep.subr.bf16.mxu1 %v6073_v0 }
 0x360   :  { %755 = vmatprep.mubr.bf16.mxu0 %v6071_v1  ;;  %3854 = vmatprep.mubr.msk.bf16.mxu1 %vm4660_vm0, %v6073_v0 }
 0x362   :  { %726 = vmatpush1.bf16.msra.mxu0 %v4759_v5  ;;  %3841 = vmatpush3.bf16.msra.mxu1 %v4779_v12 }
 0x363   :  { %727 = vmatprep.subr.bf16.mxu0 %v4762_v6  ;;  %3842 = vmatprep.subr.bf16.mxu1 %v6073_v0 }
 0x366   :  { %728 = vmatpush1.bf16.msra.mxu0 %v4765_v7  ;;  %3843 = vmatpush3.bf16.msra.mxu1 %v4791_v16 }
 0x367   :  { %729 = vmatprep.subr.bf16.mxu0 %v4768_v8  ;;  %3844 = vmatprep.subr.bf16.mxu1 %v6073_v0 }
 0x36a   :  { %730 = vmatpush1.bf16.msra.mxu0 %v4770_v9  ;;  %3845 = vmatpush3.bf16.msra.mxu1 %v4802_v19 }
 0x36b   :  { %731 = vmatprep.subr.bf16.mxu0 %v4776_v11  ;;  %3846 = vmatprep.subr.bf16.mxu1 %v6073_v0 }
 0x36e   :  { %732 = vmatpush1.bf16.msra.mxu0 %v4783_v13  ;;  %3847 = vmatpush3.bf16.msra.mxu1 %v4817_v24 }
 0x36f   :  { %733 = vmatprep.subr.bf16.mxu0 %v4786_v14  ;;  %3848 = vmatprep.subr.bf16.mxu1 %v6073_v0 }
 0x372   :  { %734 = vmatpush1.bf16.msra.mxu0 %v4788_v15  ;;  %3849 = vmatpush3.bf16.msra.mxu1 %v4826_v27 }
 0x373   :  { %735 = vmatprep.subr.bf16.mxu0 %v4793_v17  ;;  %3850 = vmatprep.subr.bf16.mxu1 %v6073_v0 }
 0x376   :  { %736 = vmatpush1.bf16.msra.mxu0 %v4810_v22  ;;  %3851 = vmatpush3.bf16.msra.mxu1 %v4832_v28 }
 0x377   :  { %737 = vmatprep.subr.bf16.mxu0 %v4813_v23  ;;  %3852 = vmatprep.subr.bf16.mxu1 %v6073_v0 }
 0x37a   :  { %738 = vmatpush1.bf16.msra.mxu0 %v4820_v25  ;;  %3853 = vmatpush3.bf16.msra.mxu1 %v4838_v29 }
 0x37b   :  { %836 = vmatprep.subr.bf16.mxu0 %v4751_v2  ;;  %3858 = vmatprep.subr.bf16.mxu1 %v6073_v0 }
 0x41d   :  { %v644_v40 = vpop.f32.mrf.mxu0  ;;  %v685_v41 = vpop.f32.mrf.mxu1 }
 0x41e   :  { %v702_v54 = vadd.f32 %v4886_v44, %v685_v41 }
 0x41f   :  { %v646_v43 = vpop.f32.mrf.mxu0  ;;  %v3836_v45 = vpop.f32.mrf.mxu1 }
 0x420   :  { %v693_v46 = vcombine.low %v644_v40, %v646_v43  ;;  %v4320_v40 = vld [vmem:[#allocation5] sm:$0xff]  }
 0x421   :  { %v648_v47 = vpop.f32.mrf.mxu0  ;;  %v688_v48 = vpop.f32.mrf.mxu1  ;;  %v3446_v43 = vld [vmem:[%s6057_s0 + $0x3c] sm:$0xff] }
 0x422   :  { %v695_v49 = vadd.f32 %v3440_v42, %v693_v46 }
 0x423   :  { %v649_v50 = vpop.f32.mrf.mxu0  ;;  %v3837_v51 = vpop.f32.mrf.mxu1 }
 0x424   :  { %v3442_v52 = vmul.f32 -1.442695, %v695_v49 }
 0x426   :  { %4383 = vpow2.f32 %v3442_v52 }
 0x433   :  { %v4384_v53 = vpop.eup %4383 }
 0x434   :  { %v699_v2 = vadd.f32 1.0, %v4384_v53 }
 0x436   :  { %4385 = vrcp.f32 %v699_v2 }
 0x443   :  { %v4386_v55 = vpop.eup %4385 }
 0x444   :  { %v703_v57 = vmul.f32 %v4386_v55, %v702_v54  ;;  %v708_v61 = vrot.slane %v4386_v55, 4 }
 0x446   :  { %v704_v58 = vadd.f32 %v3441_v56, %v703_v57  ;;  %v3447_v57 = vld [vmem:[%s6057_s0 + $0x44] sm:$0xf] }
 0x448   :  { %4387 = vtanh.f32 %v704_v58 }
 0x455   :  { %v4388_v59 = vpop.eup %4387 }
 0x456   :  { %v706_v60 = vsub.f32 %v5001_v38, %v4388_v59 }
 0x458   :  { %v710_v62 = vmul.f32 %v708_v61, %v706_v60 }
 0x45a   :  { %v711_v20 = vadd.f32 %v4388_v59, %v710_v62 }
 0x45c   :  { %v5049_v21 = vsel %vm717_vm11, %v711_v20, %v5001_v38  ;;  %v4318_v38 = vld [vmem:[#allocation5 + $0x10] sm:$0xff]  }
 0x45d   :  { %v722_v26 = vpack.c.bf16 %v5049_v21, %v5049_v21 }
 0x45f   :  { %756 = vmatmul.mubr.bf16.vlgmr.msra.gmra.mxu0 %v722_v26  ;;  %3855 = vmatmul.mubr.bf16.vlgmr.msra.gmra.mxu1 %v722_v26 }
 0x460   :  { %837 = vmatpush1.bf16.msra.mxu0 %v4753_v3  ;;  %3859 = vmatpush3.bf16.msra.mxu1 %v4773_v10 }
 0x461   :  { %838 = vmatprep.subr.bf16.mxu0 %v4756_v4  ;;  %3860 = vmatprep.subr.bf16.mxu1 %v6073_v0 }
 0x462   :  { %868 = vmatprep.mubr.bf16.mxu0 %v6071_v1  ;;  %3874 = vmatprep.mubr.msk.bf16.mxu1 %vm4660_vm0, %v6073_v0 }
 0x464   :  { %839 = vmatpush1.bf16.msra.mxu0 %v4759_v5  ;;  %3861 = vmatpush3.bf16.msra.mxu1 %v4779_v12  ;;  %v3443_v5 = vld [vmem:[%s6057_s0 + $0x30] sm:$0xff] }
 0x465   :  { %840 = vmatprep.subr.bf16.mxu0 %v4762_v6  ;;  %3862 = vmatprep.subr.bf16.mxu1 %v6073_v0 }
 0x468   :  { %841 = vmatpush1.bf16.msra.mxu0 %v4765_v7  ;;  %3863 = vmatpush3.bf16.msra.mxu1 %v4791_v16 }
 0x469   :  { %842 = vmatprep.subr.bf16.mxu0 %v4768_v8  ;;  %3864 = vmatprep.subr.bf16.mxu1 %v6073_v0 }
 0x46c   :  { %843 = vmatpush1.bf16.msra.mxu0 %v4770_v9  ;;  %3865 = vmatpush3.bf16.msra.mxu1 %v4802_v19 }
 0x46d   :  { %844 = vmatprep.subr.bf16.mxu0 %v4776_v11  ;;  %3866 = vmatprep.subr.bf16.mxu1 %v6073_v0 }
 0x470   :  { %845 = vmatpush1.bf16.msra.mxu0 %v4783_v13  ;;  %3867 = vmatpush3.bf16.msra.mxu1 %v4817_v24 }
 0x471   :  { %846 = vmatprep.subr.bf16.mxu0 %v4786_v14  ;;  %3868 = vmatprep.subr.bf16.mxu1 %v6073_v0 }
 0x474   :  { %847 = vmatpush1.bf16.msra.mxu0 %v4788_v15  ;;  %3869 = vmatpush3.bf16.msra.mxu1 %v4826_v27 }
 0x475   :  { %848 = vmatprep.subr.bf16.mxu0 %v4793_v17  ;;  %3870 = vmatprep.subr.bf16.mxu1 %v6073_v0 }
 0x478   :  { %849 = vmatpush1.bf16.msra.mxu0 %v4810_v22  ;;  %3871 = vmatpush3.bf16.msra.mxu1 %v4832_v28  ;;  %v3444_v22 = vld [vmem:[%s6057_s0 + $0x38] sm:$0xf] }
 0x479   :  { %850 = vmatprep.subr.bf16.mxu0 %v4813_v23  ;;  %3872 = vmatprep.subr.bf16.mxu1 %v6073_v0 }
 0x47c   :  { %851 = vmatpush1.bf16.msra.mxu0 %v4820_v25  ;;  %3873 = vmatpush3.bf16.msra.mxu1 %v4838_v29  ;;  %v829_v29 = vpop.permute.xlu0 %828 }
 0x47d   :  { %3878 = vmatprep.subr.bf16.mxu0 %v6073_v0  ;;  %vm830_vm12 = vcmp.eq.s32.totalorder %v829_v29, 1 }
 0x51f   :  { %v757_v3 = vpop.f32.mrf.mxu0  ;;  %v798_v4 = vpop.f32.mrf.mxu1 }
 0x520   :  { %v815_v17 = vadd.f32 %v4886_v44, %v798_v4  ;;  %v5118_v4 = vld [vmem:[#allocation7] ss:$12 sps:$4 sm:$0xff]  }
 0x521   :  { %v759_v6 = vpop.f32.mrf.mxu0  ;;  %v3856_v7 = vpop.f32.mrf.mxu1 }
 0x522   :  { %v806_v8 = vcombine.low %v757_v3, %v759_v6  ;;  %v5124_v7 = vld [vmem:[#allocation8 + $0xb0] ss:$12 sps:$4 sm:$0xff]  }
 0x523   :  { %v761_v9 = vpop.f32.mrf.mxu0  ;;  %v801_v10 = vpop.f32.mrf.mxu1 }
 0x524   :  { %v808_v11 = vadd.f32 %v3443_v5, %v806_v8  ;;  %v1121_v5 = vlaneseq  ;;  %v5130_v8 = vld [vmem:[#allocation8 + $0x98] ss:$12 sps:$4 sm:$0xff]   ;;  %v5135_v10 = vld [vmem:[#allocation7 + $0x8] ss:$12 sps:$4 sm:$0xff]  }
 0x525   :  { %v762_v12 = vpop.f32.mrf.mxu0  ;;  %v3857_v13 = vpop.f32.mrf.mxu1 }
 0x526   :  { %v3445_v14 = vmul.f32 -1.442695, %v808_v11  ;;  %v5122_v6 = vand.u32 127, %v1121_v5  ;;  %v5138_v12 = vld [vmem:[#allocation8 + $0xac] ss:$12 sps:$4 sm:$0xff]  }
 0x527   :  { %v5142_v13 = vld [vmem:[#allocation8 + $0x80] ss:$12 sps:$4 sm:$0xff]  }
 0x528   :  { %4389 = vpow2.f32 %v3445_v14  ;;  %vm1123_vm14 = vcmp.eq.s32.totalorder %v5122_v6, 1  ;;  %v5150_v14 = vld [vmem:[#allocation8 + $0xa8] ss:$12 sps:$4 sm:$0xff]   ;;  %vm1597_vm8 = vcmp.eq.s32.totalorder %v5122_v6, 0 }
 0x529   :  { %v3458_v9 = vsel %vm1123_vm14, 1.0, %v6073_v0 }
 0x52a   :  { %v1126_v11 = vpack.c.bf16 %v3458_v9, %v3458_v9  ;;  %v1070_v9 = vld [vmem:[%s6064_s7] sm:$0x7] }
 0x535   :  { %v4390_v15 = vpop.eup %4389 }
 0x536   :  { %v812_v16 = vadd.f32 1.0, %v4390_v15  ;;  %v5153_v15 = vld [vmem:[#allocation8 + $0x94] ss:$12 sps:$4 sm:$0xff]  }
 0x538   :  { %4391 = vrcp.f32 %v812_v16  ;;  %v5157_v16 = vld [vmem:[#allocation8 + $0x90] ss:$12 sps:$4 sm:$0xff]  }
 0x545   :  { %v4392_v19 = vpop.eup %4391 }
 0x546   :  { %v816_v23 = vmul.f32 %v4392_v19, %v815_v17  ;;  %v821_v28 = vrot.slane %v4392_v19, 4  ;;  %v5161_v17 = vld [vmem:[#allocation8 + $0x7c] ss:$12 sps:$4 sm:$0xff]   ;;  %v5164_v19 = vld [vmem:[#allocation8 + $0x78] ss:$12 sps:$4 sm:$0xff]  }
 0x548   :  { %v817_v24 = vadd.f32 %v3444_v22, %v816_v23  ;;  %v3449_v22 = vld [vmem:[%s6062_s5] ss:$0 sm:$0xff] }
 0x54a   :  { %4393 = vtanh.f32 %v817_v24 }
 0x557   :  { %v4394_v25 = vpop.eup %4393 }
 0x558   :  { %v819_v27 = vsub.f32 %v5049_v21, %v4394_v25 }
 0x55a   :  { %v823_v30 = vmul.f32 %v821_v28, %v819_v27 }
 0x55c   :  { %v824_v31 = vadd.f32 %v4394_v25, %v823_v30 }
 0x55e   :  { %v831_v32 = vsel %vm830_vm12, %v824_v31, %v5049_v21  ;;  %v5171_v31 = vld [vmem:[#allocation8 + $0x64] ss:$12 sps:$4 sm:$0xff]   ;;  %vm2102_vm12 = vcmp.eq.s32.totalorder %v5122_v6, 2 }
 0x55f   :  { %v835_v33 = vpack.c.bf16 %v831_v32, %v831_v32 }
 0x561   :  { %869 = vmatmul.mubr.bf16.vlgmr.msra.gmra.mxu0 %v835_v33  ;;  %3875 = vmatmul.mubr.bf16.vlgmr.msra.gmra.mxu1 %v835_v33  ;;  %v5175_v33 = vld [vmem:[#allocation8 + $0x68] ss:$12 sps:$4 sm:$0xff]  }
 0x562   :  { %3894 = vmatprep.mubr.msk.bf16.mxu0 %vm4660_vm0, %v6073_v0  ;;  %1195 = vmatprep.mubr.bf16.mxu1 %v6071_v1 }
 0x563   :  { %3879 = vmatpush3.bf16.msra.mxu0 %v4313_v34  ;;  %v5180_v34 = vld [vmem:[#allocation8 + $0x4c] ss:$12 sps:$4 sm:$0xff]  }
 0x564   :  { %3880 = vmatprep.subr.bf16.mxu0 %v6073_v0 }
 0x567   :  { %3881 = vmatpush3.bf16.msra.mxu0 %v4314_v18  ;;  %v5183_v18 = vld [vmem:[#allocation8 + $0x48] ss:$12 sps:$4 sm:$0xff]  }
 0x568   :  { %3882 = vmatprep.subr.bf16.mxu0 %v6073_v0 }
 0x56b   :  { %3883 = vmatpush3.bf16.msra.mxu0 %v4315_v35  ;;  %v5185_v35 = vld [vmem:[#allocation8 + $0x50] ss:$12 sps:$4 sm:$0xff]  }
 0x56c   :  { %3884 = vmatprep.subr.bf16.mxu0 %v6073_v0 }
 0x56f   :  { %3885 = vmatpush3.bf16.msra.mxu0 %v4316_v36  ;;  %v5187_v36 = vld [vmem:[#allocation8 + $0x34] ss:$12 sps:$4 sm:$0xff]  }
 0x570   :  { %3886 = vmatprep.subr.bf16.mxu0 %v6073_v0 }
 0x573   :  { %3887 = vmatpush3.bf16.msra.mxu0 %v4317_v37  ;;  %v5192_v37 = vld [vmem:[#allocation8 + $0x30] ss:$12 sps:$4 sm:$0xff]  }
 0x574   :  { %3888 = vmatprep.subr.bf16.mxu0 %v6073_v0 }
 0x577   :  { %3889 = vmatpush3.bf16.msra.mxu0 %v4318_v38  ;;  %v5194_v38 = vld [vmem:[#allocation8 + $0x38] ss:$12 sps:$4 sm:$0xff]  }
 0x578   :  { %3890 = vmatprep.subr.bf16.mxu0 %v6073_v0 }
 0x57b   :  { %3891 = vmatpush3.bf16.msra.mxu0 %v4319_v39  ;;  %v5198_v39 = vld [vmem:[#allocation8 + $0x1c] ss:$12 sps:$4 sm:$0xff]  }
 0x57c   :  { %3892 = vmatprep.subr.bf16.mxu0 %v6073_v0 }
 0x57f   :  { %3893 = vmatpush3.bf16.msra.mxu0 %v4320_v40  ;;  %v5202_v40 = vld [vmem:[#allocation8 + $0x18] ss:$12 sps:$4 sm:$0xff]  }
 0x580   :  { %3904 = vmatprep.subr.bf16.mxu0 %v6073_v0 }
 0x621   :  { %v870_v41 = vpop.f32.mrf.mxu0  ;;  %v911_v42 = vpop.f32.mrf.mxu1 }
 0x622   :  { %v928_v55 = vadd.f32 %v4886_v44, %v911_v42  ;;  %v5116_v44 = vld [vmem:[#allocation7 + $0x4] ss:$12 sps:$4 sm:$0xff]   ;;  %v5208_v42 = vld [vmem:[#allocation8 + $0x4] ss:$12 sps:$4 sm:$0xff]  }
 0x623   :  { %v872_v45 = vpop.f32.mrf.mxu0  ;;  %v3876_v46 = vpop.f32.mrf.mxu1  ;;  %1177 = vmatprep.subr.bf16.mxu1 %v5116_v44 }
 0x624   :  { %v919_v47 = vcombine.low %v870_v41, %v872_v45  ;;  %1178 = vmatpush1.bf16.msra.mxu1 %v5118_v4  ;;  %v5204_v41 = vld [vmem:[#allocation8 + $0x20] ss:$12 sps:$4 sm:$0xff]   ;;  %v5214_v45 = vld [vmem:[#allocation8 + $0x8] ss:$12 sps:$4 sm:$0xff]  }
 0x625   :  { %v874_v48 = vpop.f32.mrf.mxu0  ;;  %v914_v49 = vpop.f32.mrf.mxu1  ;;  %3898 = vmatprep.subr.bf16.mxu1 %v6073_v0 }
 0x626   :  { %v921_v50 = vadd.f32 %v3446_v43, %v919_v47  ;;  %v5212_v43 = vld [vmem:[#allocation8] ss:$12 sps:$4 sm:$0xff]  }
 0x627   :  { %v875_v51 = vpop.f32.mrf.mxu0  ;;  %v3877_v52 = vpop.f32.mrf.mxu1  ;;  %3462 = vmatmul.mubr.msk.bf16.vlgmr.msra.gmra.mxu1 %vm1159_vm15, %v1126_v11 }
 0x628   :  { %v3448_v53 = vmul.f32 -1.442695, %v921_v50  ;;  %3899 = vmatpush3.bf16.msra.mxu1 %v5135_v10  ;;  %3900 = vmatprep.mubr.msk.bf16.mxu1 %vm4660_vm0, %v6073_v0 }
 0x629   :  { %1373 = vmatprep.subr.bf16.mxu1 %v5138_v12 }
 0x62a   :  { %4395 = vpow2.f32 %v3448_v53 }
 0x62f   :  { %3901 = vmatmul.mubr.msk.bf16.vlgmr.msra.gmra.mxu1 %vm1159_vm15, %v1126_v11 }
 0x630   :  { %1374 = vmatpush1.bf16.msra.mxu1 %v5150_v14  ;;  %1405 = vmatprep.mubr.bf16.mxu1 %v6071_v1 }
 0x631   :  { %1375 = vmatprep.subr.bf16.mxu1 %v5153_v15 }
 0x634   :  { %1376 = vmatpush1.bf16.msra.mxu1 %v5157_v16 }
 0x635   :  { %1377 = vmatprep.subr.bf16.mxu1 %v5161_v17 }
 0x637   :  { %v4396_v2 = vpop.eup %4395 }
 0x638   :  { %v925_v54 = vadd.f32 1.0, %v4396_v2  ;;  %1378 = vmatpush1.bf16.msra.mxu1 %v5164_v19 }
 0x639   :  { %1379 = vmatprep.subr.bf16.mxu1 %v5171_v31 }
 0x63a   :  { %4397 = vrcp.f32 %v925_v54 }
 0x647   :  { %v4398_v56 = vpop.eup %4397 }
 0x648   :  { %v929_v58 = vmul.f32 %v4398_v56, %v928_v55  ;;  %v934_v62 = vrot.slane %v4398_v56, 4 }
 0x64a   :  { %v930_v59 = vadd.f32 %v3447_v57, %v929_v58  ;;  %v5255_v58 = vld [vmem:[%s6067_s10 + $0x38] sm:$0xff]  }
 0x64c   :  { %4399 = vtanh.f32 %v930_v59  ;;  %v5262_v59 = vld [vmem:[%s6067_s10 + $0x30] sm:$0xff]  }
 0x659   :  { %v4400_v60 = vpop.eup %4399 }
 0x65a   :  { %v932_v61 = vsub.f32 %v831_v32, %v4400_v60 }
 0x65c   :  { %v936_v20 = vmul.f32 %v934_v62, %v932_v61  ;;  %v5276_v61 = vld [vmem:[%s6067_s10 + $0x20] sm:$0xff]   ;;  %v5282_v62 = vld [vmem:[%s6067_s10 + $0x18] sm:$0xff]  }
 0x65e   :  { %v937_v21 = vadd.f32 %v4400_v60, %v936_v20  ;;  %v5269_v60 = vld [vmem:[%s6067_s10 + $0x28] sm:$0xff]  }
 0x65f   :  { %v5296_v20 = vld [vmem:[%s6067_s10 + $0x8] sm:$0xff]  }
 0x660   :  { %v944_v26 = vsel %vm943_vm13, %v937_v21, %v831_v32  ;;  %v5173_v32 = vld [vmem:[#allocation8 + $0x60] ss:$12 sps:$4 sm:$0xff]  }
 0x661   :  { %v945_v3 = vpack.c.bf16 %v944_v26, %v944_v26  ;;  %1380 = vmatpush1.bf16.msra.mxu1 %v5173_v32  ;;  %v5303_v21 = vld [vmem:[%s6067_s10] sm:$0xff]   ;;  %v1129_v26 = vshrl.u32 %v1121_v5, 7 }
 0x662   :  { %1381 = vmatprep.subr.bf16.mxu1 %v5180_v34 }
 0x663   :  { %3895 = vmatmul.mubr.bf16.vlgmr.msra.gmra.mxu0 %v945_v3  ;;  %v1130_v3 = vsub.s32 0, %v1129_v26 }
 0x664   :  { %3920 = vmatprep.mubr.msk.bf16.mxu0 %vm4660_vm0, %v6073_v0  ;;  %3905 = vmatpush3.bf16.msra.mxu0 %v5124_v7 }
 0x665   :  { %3906 = vmatprep.subr.bf16.mxu0 %v6073_v0  ;;  %1382 = vmatpush1.bf16.msra.mxu1 %v5183_v18  ;;  %v5312_v11 = vrot.slane %v1070_v9, %v1130_v3  ;;  %v5323_v3 = vld [vmem:[%s6066_s9] ss:$0 sm:$0xff] }
 0x666   :  { %1383 = vmatprep.subr.bf16.mxu1 %v5187_v36 }
 0x668   :  { %3907 = vmatpush3.bf16.msra.mxu0 %v5130_v8 }
 0x669   :  { %3908 = vmatprep.subr.bf16.mxu0 %v6073_v0  ;;  %1384 = vmatpush1.bf16.msra.mxu1 %v5192_v37 }
 0x66a   :  { %1385 = vmatprep.subr.bf16.mxu1 %v5198_v39 }
 0x66c   :  { %3909 = vmatpush3.bf16.msra.mxu0 %v5142_v13 }
 0x66d   :  { %3910 = vmatprep.subr.bf16.mxu0 %v6073_v0  ;;  %1386 = vmatpush1.bf16.msra.mxu1 %v5202_v40 }
 0x66e   :  { %1387 = vmatprep.subr.bf16.mxu1 %v5208_v42 }
 0x670   :  { %3911 = vmatpush3.bf16.msra.mxu0 %v5175_v33 }
 0x671   :  { %3912 = vmatprep.subr.bf16.mxu0 %v6073_v0  ;;  %1388 = vmatpush1.bf16.msra.mxu1 %v5212_v43 }
 0x672   :  { %3924 = vmatprep.subr.bf16.mxu1 %v6073_v0 }
 0x674   :  { %3913 = vmatpush3.bf16.msra.mxu0 %v5185_v35 }
 0x675   :  { %3914 = vmatprep.subr.bf16.mxu0 %v6073_v0 }
 0x678   :  { %3915 = vmatpush3.bf16.msra.mxu0 %v5194_v38 }
 0x679   :  { %3916 = vmatprep.subr.bf16.mxu0 %v6073_v0 }
 0x67c   :  { %3917 = vmatpush3.bf16.msra.mxu0 %v5204_v41 }
 0x67d   :  { %3918 = vmatprep.subr.bf16.mxu0 %v6073_v0 }
 0x680   :  { %3919 = vmatpush3.bf16.msra.mxu0 %v5214_v45 }
 0x681   :  { %1687 = vmatprep.subr.bf16.mxu0 %v5138_v12 }
 0x6e7   :  { %v5222_v46 = vpop.f32.mrf.mxu1 }
 0x6e9   :  { %v5224_v47 = vpop.f32.mrf.mxu1 }
 0x6eb   :  { %v1201_v48 = vpop.f32.mrf.mxu1 }
 0x6ed   :  { %v1202_v49 = vpop.f32.mrf.mxu1 }
 0x6ef   :  { %v5226_v50 = vpop.f32.mrf.mxu1 }
 0x6f1   :  { %v3902_v51 = vpop.f32.mrf.mxu1 }
 0x6f3   :  { %v1241_v52 = vpop.f32.mrf.mxu1 }
 0x6f5   :  { %v3903_v53 = vpop.f32.mrf.mxu1 }
 0x723   :  { %v1051_v23 = vpop.f32.mrf.mxu0 }
 0x724   :  { %v1052_v24 = vadd.f32 %v3449_v22, %v1051_v23  ;;  %v1198_v22 = vadd.f32 %v5222_v46, %v5312_v11 }
 0x725   :  { %v3896_v25 = vpop.f32.mrf.mxu0 }
 0x726   :  { %v1057_v27 = vmul.f32 %v1052_v24, %v1052_v24 }
 0x727   :  { %v1054_v28 = vpop.f32.mrf.mxu0 }
 0x728   :  { %v1059_v29 = vsel %vm1058_vm1, %v1057_v27, 0.0  ;;  %v1134_v27 = vsub.s32 1, %v1129_v26 }
 0x729   :  { %1060 = vadd.xlane.f32.xlu0 %v1059_v29  ;;  %v3897_v30 = vpop.f32.mrf.mxu0 }
 0x72a   :  { %v5316_v5 = vrot.slane %v1070_v9, %v1134_v27 }
 0x72c   :  { %v1200_v53 = vadd.f32 %v5224_v47, %v5316_v5 }
 0x7b2   :  { %v1061_v2 = vpop.xlane.xlu0 %1060 }
 0x7b3   :  { %v1062_v54 = vadd.f32 1e-18, %v1061_v2 }
 0x7b5   :  { %4401 = vrsqrt.f32 %v1062_v54 }
 0x7c2   :  { %v4402_v55 = vpop.eup %4401 }
 0x7c3   :  { %v5228_v56 = vmul.f32 %v4402_v55, %v1052_v24 }
 0x7c5   :  { %v1244_v57 = vpack.c.bf16 %v5228_v56, %v5228_v56  ;;  %1065 = vst [vmem:[#allocation10] sm:$0xf] %v5228_v56 }
 0x7c7   :  { %1406 = vmatmul.mubr.bf16.vlgmr.msra.gmra.mxu1 %v1244_v57  ;;  %3921 = vmatmul.mubr.bf16.vlgmr.msra.gmra.mxu0 %v1244_v57  ;;  %v1138_v57 = vsub.s32 2, %v1129_v26 }
 0x7c8   :  { %1688 = vmatpush1.bf16.msra.mxu0 %v5150_v14  ;;  %3940 = vmatprep.mubr.msk.bf16.mxu1 %vm4660_vm0, %v6073_v0 }
 0x7c9   :  { %1689 = vmatprep.subr.bf16.mxu0 %v5153_v15  ;;  %1719 = vmatprep.mubr.bf16.mxu0 %v6071_v1 }
 0x7ca   :  { %3925 = vmatpush3.bf16.msra.mxu1 %v5255_v58 }
 0x7cb   :  { %3926 = vmatprep.subr.bf16.mxu1 %v6073_v0 }
 0x7cc   :  { %1690 = vmatpush1.bf16.msra.mxu0 %v5157_v16 }
 0x7cd   :  { %1691 = vmatprep.subr.bf16.mxu0 %v5161_v17 }
 0x7ce   :  { %3927 = vmatpush3.bf16.msra.mxu1 %v5262_v59 }
 0x7cf   :  { %3928 = vmatprep.subr.bf16.mxu1 %v6073_v0 }
 0x7d0   :  { %1692 = vmatpush1.bf16.msra.mxu0 %v5164_v19 }
 0x7d1   :  { %1693 = vmatprep.subr.bf16.mxu0 %v5171_v31 }
 0x7d2   :  { %3929 = vmatpush3.bf16.msra.mxu1 %v5269_v60 }
 0x7d3   :  { %3930 = vmatprep.subr.bf16.mxu1 %v6073_v0 }
 0x7d4   :  { %1694 = vmatpush1.bf16.msra.mxu0 %v5173_v32 }
 0x7d5   :  { %1695 = vmatprep.subr.bf16.mxu0 %v5180_v34 }
 0x7d6   :  { %3931 = vmatpush3.bf16.msra.mxu1 %v5276_v61 }
 0x7d7   :  { %3932 = vmatprep.subr.bf16.mxu1 %v6073_v0 }
 0x7d8   :  { %1696 = vmatpush1.bf16.msra.mxu0 %v5183_v18 }
 0x7d9   :  { %1697 = vmatprep.subr.bf16.mxu0 %v5187_v36 }
 0x7da   :  { %3933 = vmatpush3.bf16.msra.mxu1 %v5282_v62 }
 0x7db   :  { %3934 = vmatprep.subr.bf16.mxu1 %v6073_v0 }
 0x7dc   :  { %1698 = vmatpush1.bf16.msra.mxu0 %v5192_v37 }
 0x7dd   :  { %1699 = vmatprep.subr.bf16.mxu0 %v5198_v39 }
 0x7de   :  { %3935 = vmatpush3.bf16.msra.mxu1 %v5289_v63 }
 0x7df   :  { %3936 = vmatprep.subr.bf16.mxu1 %v6073_v0 }
 0x7e0   :  { %1700 = vmatpush1.bf16.msra.mxu0 %v5202_v40 }
 0x7e1   :  { %1701 = vmatprep.subr.bf16.mxu0 %v5208_v42 }
 0x7e2   :  { %3937 = vmatpush3.bf16.msra.mxu1 %v5296_v20 }
 0x7e3   :  { %3938 = vmatprep.subr.bf16.mxu1 %v6073_v0 }
 0x7e4   :  { %1702 = vmatpush1.bf16.msra.mxu0 %v5212_v43 }
 0x7e5   :  { %3970 = vmatprep.subr.bf16.mxu0 %v6073_v0 }
 0x7e6   :  { %3939 = vmatpush3.bf16.msra.mxu1 %v5303_v21 }
 0x7e7   :  { %1620 = vmatprep.subr.bf16.mxu1 %v5116_v44 }
 0x887   :  { %v1407_v23 = vpop.f32.mrf.mxu1  ;;  %v1448_v24 = vpop.f32.mrf.mxu0 }
 0x888   :  { %v1454_v25 = vadd.f32 %v1407_v23, %v1198_v22  ;;  %v5325_v22 = vrot.slane %v1070_v9, %v1138_v57 }
 0x889   :  { %v1409_v28 = vpop.f32.mrf.mxu1  ;;  %v3922_v29 = vpop.f32.mrf.mxu0 }
 0x88a   :  { %v3488_v30 = vmul.f32 -1.442695, %v1454_v25  ;;  %v1455_v2 = vadd.f32 %v1409_v28, %v1200_v53  ;;  %v1474_v25 = vadd.f32 %v5323_v3, %v1448_v24  ;;  %v1239_v47 = vadd.f32 %v5226_v50, %v5325_v22  ;;  %v5363_v50 = vld [vmem:[%s6068_s11] ss:$0 sm:$0xff] }
 0x88b   :  { %v1411_v48 = vpop.f32.mrf.mxu1  ;;  %v1451_v49 = vpop.f32.mrf.mxu0 }
 0x88c   :  { %4403 = vpow2.f32 %v3488_v30  ;;  %v3489_v54 = vmul.f32 -1.442695, %v1455_v2 }
 0x88d   :  { %v1412_v51 = vpop.f32.mrf.mxu1  ;;  %v3923_v52 = vpop.f32.mrf.mxu0 }
 0x88e   :  { %4405 = vpow2.f32 %v3489_v54 }
 0x899   :  { %v4404_v46 = vpop.eup %4403 }
 0x89a   :  { %v1462_v55 = vadd.f32 1.0, %v4404_v46 }
 0x89b   :  { %v4406_v23 = vpop.eup %4405 }
 0x89c   :  { %4407 = vrcp.f32 %v1462_v55  ;;  %v1463_v30 = vadd.f32 1.0, %v4406_v23 }
 0x8a9   :  { %v4408_v27 = vpop.eup %4407 }
 0x8aa   :  { %v1475_v28 = vmul.f32 %v4408_v27, %v1474_v25 }
 0x8ac   :  { %v1476_v29 = vadd.f32 %v1475_v28, %v1239_v47 }
 0x8ae   :  { %4409 = vtanh.f32 %v1476_v29 }
 0x8af   :  { %4411 = vrcp.f32 %v1463_v30 }
 0x8bb   :  { %v4410_v26 = vpop.eup %4409 }
 0x8bc   :  { %v1478_v48 = vsub.f32 %v5228_v56, %v4410_v26  ;;  %v4412_v49 = vpop.eup %4411 }
 0x8be   :  { %v1479_v51 = vmul.f32 %v4412_v49, %v1478_v48 }
 0x8c0   :  { %v5331_v52 = vadd.f32 %v4410_v26, %v1479_v51 }
 0x8c2   :  { %v5335_v9 = vpack.c.bf16 %v5331_v52, %v5331_v52 }
 0x8c4   :  { %3941 = vmatmul.mubr.bf16.vlgmr.msra.gmra.mxu1 %v5335_v9  ;;  %1720 = vmatmul.mubr.bf16.vlgmr.msra.gmra.mxu0 %v5335_v9 }
 0x8c5   :  { %1621 = vmatpush1.bf16.msra.mxu1 %v5118_v4  ;;  %1638 = vmatprep.mubr.bf16.mxu1 %v6071_v1 }
 0x8c6   :  { %3944 = vmatprep.subr.bf16.mxu1 %v6073_v0  ;;  %3971 = vmatpush3.bf16.msra.mxu0 %v5255_v58 }
 0x8c7   :  { %3972 = vmatprep.subr.bf16.mxu0 %v6073_v0  ;;  %3986 = vmatprep.mubr.msk.bf16.mxu0 %vm4660_vm0, %v6073_v0 }
 0x8ca   :  { %3973 = vmatpush3.bf16.msra.mxu0 %v5262_v59 }
 0x8cb   :  { %3974 = vmatprep.subr.bf16.mxu0 %v6073_v0 }
 0x8ce   :  { %3975 = vmatpush3.bf16.msra.mxu0 %v5269_v60 }
 0x8cf   :  { %3976 = vmatprep.subr.bf16.mxu0 %v6073_v0 }
 0x8d2   :  { %3977 = vmatpush3.bf16.msra.mxu0 %v5276_v61 }
 0x8d3   :  { %3978 = vmatprep.subr.bf16.mxu0 %v6073_v0 }
 0x8d6   :  { %3979 = vmatpush3.bf16.msra.mxu0 %v5282_v62 }
 0x8d7   :  { %3980 = vmatprep.subr.bf16.mxu0 %v6073_v0 }
 0x8da   :  { %3981 = vmatpush3.bf16.msra.mxu0 %v5289_v63 }
 0x8db   :  { %3982 = vmatprep.subr.bf16.mxu0 %v6073_v0 }
 0x8de   :  { %3983 = vmatpush3.bf16.msra.mxu0 %v5296_v20 }
 0x8df   :  { %3984 = vmatprep.subr.bf16.mxu0 %v6073_v0 }
 0x8e2   :  { %3985 = vmatpush3.bf16.msra.mxu0 %v5303_v21 }
 0x8e3   :  { %3996 = vmatprep.subr.bf16.mxu0 %v6073_v0 }
 0x984   :  { %v1570_v56 = vpop.f32.mrf.mxu1  ;;  %v1721_v24 = vpop.f32.mrf.mxu0 }
 0x985   :  { %v1571_v53 = vadd.f32 %v5363_v50, %v1570_v56 }
 0x986   :  { %v3942_v2 = vpop.f32.mrf.mxu1  ;;  %v5366_v54 = vpop.f32.mrf.mxu0 }
 0x987   :  { %v1577_v46 = vsel %vm1576_vm2, %v1571_v53, -inf }
 0x988   :  { %1578 = vmax.xlane.f32.xlu1 %v1577_v46  ;;  %v1573_v55 = vpop.f32.mrf.mxu1  ;;  %v1725_v57 = vpop.f32.mrf.mxu0 }
 0x98a   :  { %v3943_v23 = vpop.f32.mrf.mxu1  ;;  %v1726_v25 = vpop.f32.mrf.mxu0 }
 0xa11   :  { %v1579_v27 = vpop.xlane.xlu1 %1578 }
 0xa12   :  { %vm1580_vm3 = vcmp.ge.f32.partialorder %v1571_v53, %v1579_v27 }
 0xa13   :  { %v1581_v47 = vsel %vm1580_vm3, %v5122_v6, 16  ;;  %vm2355_vm3 = vcmp.eq.s32.totalorder %v5122_v6, 3 }
 0xa14   :  { %v1582_v28 = vsel %vm1576_vm2, %v1581_v47, 2147483647 }
 0xa15   :  { %v1584_v29 = vshra.s32 %v1582_v28, 16  ;;  %v1583_v26 = vand.u32 65535, %v1582_v28 }
 0xa17   :  { %v1586_v30 = vcvt.s32.f32 %v1584_v29  ;;  %v1585_v49 = vcvt.s32.f32 %v1583_v26 }
 0xa19   :  { %1587 = vmin.xlane.f32.xlu0 %v1586_v30 }
 0xaa2   :  { %v1588_v48 = vpop.xlane.xlu0 %1587 }
 0xaa3   :  { %vm1589_vm4 = vcmp.eq.f32.partialorder %v1586_v30, %v1588_v48  ;;  %v1594_v56 = vcvt.f32.s32 %v1588_v48 }
 0xaa4   :  { %v1590_v51 = vsel %vm1589_vm4, %v1585_v49, inf }
 0xaa5   :  { %1591 = vmin.xlane.f32.xlu0 %v1590_v51  ;;  %v1595_v46 = vshll.u32 %v1594_v56, 16 }
 0xb2e   :  { %v1592_v2 = vpop.xlane.xlu0 %1591 }
 0xb2f   :  { %v1593_v55 = vcvt.f32.s32 %v1592_v2 }
 0xb31   :  { %v5371_v57 = vadd.s32 %v1595_v46, %v1593_v55 }
 0xb33   :  { %vm1599_vm5 = vcmp.eq.s32.totalorder %v5122_v6, %v5371_v57 }
 0xb34   :  { %v3500_v53 = vsel %vm1599_vm5, 1.0, %v6073_v0 }
 0xb35   :  { %v1602_v23 = vpack.c.bf16 %v3500_v53, %v3500_v53 }
 0xb37   :  { %3501 = vmatmul.mubr.msk.bf16.vlgmr.msra.gmra.mxu1 %vm1159_vm15, %v1602_v23 }
 0xb38   :  { %3945 = vmatpush3.bf16.msra.mxu1 %v5135_v10  ;;  %3946 = vmatprep.mubr.msk.bf16.mxu1 %vm4660_vm0, %v6073_v0 }
 0xb39   :  { %3950 = vmatprep.subr.bf16.mxu1 %v6073_v0 }
 0xb3f   :  { %3947 = vmatmul.mubr.msk.bf16.vlgmr.msra.gmra.mxu1 %vm1159_vm15, %v1602_v23 }
 0xb40   :  { %3951 = vmatpush3.bf16.msra.mxu1 %v5124_v7  ;;  %3966 = vmatprep.mubr.msk.bf16.mxu1 %vm4660_vm0, %v6073_v0 }
 0xb41   :  { %3952 = vmatprep.subr.bf16.mxu1 %v6073_v0 }
 0xb44   :  { %3953 = vmatpush3.bf16.msra.mxu1 %v5130_v8 }
 0xb45   :  { %3954 = vmatprep.subr.bf16.mxu1 %v6073_v0 }
 0xb48   :  { %3955 = vmatpush3.bf16.msra.mxu1 %v5142_v13 }
 0xb49   :  { %3956 = vmatprep.subr.bf16.mxu1 %v6073_v0 }
 0xb4c   :  { %3957 = vmatpush3.bf16.msra.mxu1 %v5175_v33 }
 0xb4d   :  { %3958 = vmatprep.subr.bf16.mxu1 %v6073_v0 }
 0xb50   :  { %3959 = vmatpush3.bf16.msra.mxu1 %v5185_v35 }
 0xb51   :  { %3960 = vmatprep.subr.bf16.mxu1 %v6073_v0 }
 0xb54   :  { %3961 = vmatpush3.bf16.msra.mxu1 %v5194_v38 }
 0xb55   :  { %3962 = vmatprep.subr.bf16.mxu1 %v6073_v0 }
 0xb58   :  { %3963 = vmatpush3.bf16.msra.mxu1 %v5204_v41 }
 0xb59   :  { %3964 = vmatprep.subr.bf16.mxu1 %v6073_v0 }
 0xb5c   :  { %3965 = vmatpush3.bf16.msra.mxu1 %v5214_v45 }
 0xb5d   :  { %1872 = vmatprep.subr.bf16.mxu1 %v5116_v44 }
 0xb5f   :  { %3967 = vmatmul.mubr.bf16.vlgmr.msra.gmra.mxu1 %v5335_v9 }
 0xb60   :  { %1873 = vmatpush1.bf16.msra.mxu1 %v5118_v4  ;;  %1890 = vmatprep.mubr.bf16.mxu1 %v6071_v1 }
 0xb61   :  { %3990 = vmatprep.subr.bf16.mxu1 %v6073_v0 }
 0xbf7   :  { %v1640_v25 = vpop.f32.mrf.mxu1 }
 0xbf8   :  { %v1641_v27 = vadd.f32 %v1640_v25, %v5312_v11 }
 0xbf9   :  { %v1642_v47 = vpop.f32.mrf.mxu1 }
 0xbfa   :  { %v1768_v28 = vadd.f32 %v1721_v24, %v1641_v27  ;;  %v1643_v9 = vadd.f32 %v1642_v47, %v5316_v5 }
 0xbfb   :  { %v1644_v29 = vpop.f32.mrf.mxu1 }
 0xbfc   :  { %v3503_v30 = vmul.f32 -1.442695, %v1768_v28  ;;  %v1769_v2 = vadd.f32 %v5366_v54, %v1643_v9 }
 0xbfd   :  { %v1645_v26 = vpop.f32.mrf.mxu1 }
 0xbfe   :  { %4413 = vpow2.f32 %v3503_v30  ;;  %v3504_v55 = vmul.f32 -1.442695, %v1769_v2 }
 0xbff   :  { %v1681_v48 = vpop.f32.mrf.mxu1 }
 0xc00   :  { %4415 = vpow2.f32 %v3504_v55  ;;  %v1682_v29 = vadd.f32 %v1681_v48, %v5325_v22 }
 0xc01   :  { %v3948_v49 = vpop.f32.mrf.mxu1 }
 0xc03   :  { %v1684_v51 = vpop.f32.mrf.mxu1 }
 0xc05   :  { %v3949_v56 = vpop.f32.mrf.mxu1 }
 0xc0b   :  { %v4414_v46 = vpop.eup %4413 }
 0xc0c   :  { %v1776_v53 = vadd.f32 1.0, %v4414_v46 }
 0xc0d   :  { %v4416_v25 = vpop.eup %4415 }
 0xc0e   :  { %4417 = vrcp.f32 %v1776_v53  ;;  %v1777_v49 = vadd.f32 1.0, %v4416_v25 }
 0xc1b   :  { %v4418_v27 = vpop.eup %4417 }
 0xc1f   :  { %v1762_v23 = vpop.f32.mrf.mxu1 }
 0xc20   :  { %v1782_v24 = vadd.f32 %v5323_v3, %v1762_v23 }
 0xc21   :  { %v3968_v28 = vpop.f32.mrf.mxu1 }
 0xc22   :  { %v1783_v30 = vmul.f32 %v4418_v27, %v1782_v24 }
 0xc23   :  { %v1765_v26 = vpop.f32.mrf.mxu1 }
 0xc24   :  { %v1784_v51 = vadd.f32 %v1783_v30, %v1682_v29 }
 0xc25   :  { %v3969_v47 = vpop.f32.mrf.mxu1 }
 0xc26   :  { %4419 = vtanh.f32 %v1784_v51 }
 0xc27   :  { %4421 = vrcp.f32 %v1777_v49 }
 0xc33   :  { %v4420_v54 = vpop.eup %4419 }
 0xc34   :  { %v1786_v56 = vsub.f32 %v5331_v52, %v4420_v54  ;;  %v4422_v9 = vpop.eup %4421 }
 0xc36   :  { %v1787_v2 = vmul.f32 %v4422_v9, %v1786_v56 }
 0xc38   :  { %v5410_v46 = vadd.f32 %v4420_v54, %v1787_v2 }
 0xc3a   :  { %v5414_v55 = vpack.c.bf16 %v5410_v46, %v5410_v46 }
 0xc3c   :  { %3987 = vmatmul.mubr.bf16.vlgmr.msra.gmra.mxu0 %v5414_v55 }
 0xc3d   :  { %3997 = vmatpush3.bf16.msra.mxu0 %v5124_v7  ;;  %4012 = vmatprep.mubr.msk.bf16.mxu0 %vm4660_vm0, %v6073_v0 }
 0xc3e   :  { %3998 = vmatprep.subr.bf16.mxu0 %v6073_v0 }
 0xc41   :  { %3999 = vmatpush3.bf16.msra.mxu0 %v5130_v8 }
 0xc42   :  { %4000 = vmatprep.subr.bf16.mxu0 %v6073_v0 }
 0xc45   :  { %4001 = vmatpush3.bf16.msra.mxu0 %v5142_v13 }
 0xc46   :  { %4002 = vmatprep.subr.bf16.mxu0 %v6073_v0 }
 0xc49   :  { %4003 = vmatpush3.bf16.msra.mxu0 %v5175_v33 }
 0xc4a   :  { %4004 = vmatprep.subr.bf16.mxu0 %v6073_v0 }
 0xc4d   :  { %4005 = vmatpush3.bf16.msra.mxu0 %v5185_v35 }
 0xc4e   :  { %4006 = vmatprep.subr.bf16.mxu0 %v6073_v0 }
 0xc51   :  { %4007 = vmatpush3.bf16.msra.mxu0 %v5194_v38 }
 0xc52   :  { %4008 = vmatprep.subr.bf16.mxu0 %v6073_v0 }
 0xc55   :  { %4009 = vmatpush3.bf16.msra.mxu0 %v5204_v41 }
 0xc56   :  { %4010 = vmatprep.subr.bf16.mxu0 %v6073_v0 }
 0xc59   :  { %4011 = vmatpush3.bf16.msra.mxu0 %v5214_v45 }
 0xc5a   :  { %2125 = vmatprep.subr.bf16.mxu0 %v5116_v44 }
 0xc5c   :  { %4013 = vmatmul.mubr.bf16.vlgmr.msra.gmra.mxu0 %v5414_v55 }
 0xc5d   :  { %2126 = vmatpush1.bf16.msra.mxu0 %v5118_v4  ;;  %2143 = vmatprep.mubr.bf16.mxu0 %v6071_v1 }
 0xc5e   :  { %4036 = vmatprep.subr.bf16.mxu0 %v6073_v0 }
 0xcfc   :  { %v1824_v52 = vpop.f32.mrf.mxu0 }
 0xcfd   :  { %v1825_v48 = vadd.f32 %v5363_v50, %v1824_v52 }
 0xcfe   :  { %v3988_v53 = vpop.f32.mrf.mxu0 }
 0xcff   :  { %v1830_v23 = vsel %vm1576_vm2, %v1825_v48, -inf }
 0xd00   :  { %1831 = vmax.xlane.f32.xlu1 %v1830_v23  ;;  %v1827_v25 = vpop.f32.mrf.mxu0 }
 0xd02   :  { %v3989_v24 = vpop.f32.mrf.mxu0 }
 0xd1c   :  { %v5441_v27 = vpop.f32.mrf.mxu0 }
 0xd1e   :  { %v4014_v28 = vpop.f32.mrf.mxu0 }
 0xd1f   :  { %v1598_v28 = vsel %vm1597_vm8, %v5371_v57, 0 }
 0xd20   :  { %v2017_v29 = vpop.f32.mrf.mxu0 }
 0xd22   :  { %v4015_v30 = vpop.f32.mrf.mxu0 }
 0xd89   :  { %v1832_v26 = vpop.xlane.xlu1 %1831 }
 0xd8a   :  { %vm1833_vm6 = vcmp.ge.f32.partialorder %v1825_v48, %v1832_v26 }
 0xd8b   :  { %v1834_v49 = vsel %vm1833_vm6, %v5122_v6, 16 }
 0xd8c   :  { %v1835_v51 = vsel %vm1576_vm2, %v1834_v49, 2147483647 }
 0xd8d   :  { %v1837_v47 = vshra.s32 %v1835_v51, 16  ;;  %v1836_v56 = vand.u32 65535, %v1835_v51 }
 0xd8f   :  { %v1839_v54 = vcvt.s32.f32 %v1837_v47  ;;  %v1838_v2 = vcvt.s32.f32 %v1836_v56 }
 0xd91   :  { %1840 = vmin.xlane.f32.xlu0 %v1839_v54 }
 0xe1a   :  { %v1841_v9 = vpop.xlane.xlu0 %1840 }
 0xe1b   :  { %vm1842_vm7 = vcmp.eq.f32.partialorder %v1839_v54, %v1841_v9  ;;  %v1847_v53 = vcvt.f32.s32 %v1841_v9 }
 0xe1c   :  { %v1843_v52 = vsel %vm1842_vm7, %v1838_v2, inf  ;;  %vm2608_vm7 = vcmp.eq.s32.totalorder %v5122_v6, 4 }
 0xe1d   :  { %1844 = vmin.xlane.f32.xlu1 %v1843_v52  ;;  %v1848_v25 = vshll.u32 %v1847_v53, 16 }
 0xea6   :  { %v1845_v23 = vpop.xlane.xlu1 %1844 }
 0xea7   :  { %v1846_v24 = vcvt.f32.s32 %v1845_v23 }
 0xea9   :  { %v1849_v48 = vadd.s32 %v1848_v25, %v1846_v24 }
 0xeab   :  { %v5449_v29 = vsel %vm1123_vm14, %v1849_v48, %v1598_v28  ;;  %vm1851_vm9 = vcmp.eq.s32.totalorder %v5122_v6, %v1849_v48 }
 0xeac   :  { %v3505_v30 = vsel %vm1851_vm9, 1.0, %v6073_v0 }
 0xead   :  { %v1854_v26 = vpack.c.bf16 %v3505_v30, %v3505_v30 }
 0xeaf   :  { %3506 = vmatmul.mubr.msk.bf16.vlgmr.msra.gmra.mxu1 %vm1159_vm15, %v1854_v26 }
 0xeb0   :  { %3991 = vmatpush3.bf16.msra.mxu1 %v5135_v10  ;;  %3992 = vmatprep.mubr.msk.bf16.mxu1 %vm4660_vm0, %v6073_v0 }
 0xeb1   :  { %1939 = vmatprep.subr.bf16.mxu1 %v5138_v12 }
 0xeb7   :  { %3993 = vmatmul.mubr.msk.bf16.vlgmr.msra.gmra.mxu1 %vm1159_vm15, %v1854_v26 }
 0xeb8   :  { %1940 = vmatpush1.bf16.msra.mxu1 %v5150_v14  ;;  %1971 = vmatprep.mubr.bf16.mxu1 %v6071_v1 }
 0xeb9   :  { %1941 = vmatprep.subr.bf16.mxu1 %v5153_v15 }
 0xebc   :  { %1942 = vmatpush1.bf16.msra.mxu1 %v5157_v16 }
 0xebd   :  { %1943 = vmatprep.subr.bf16.mxu1 %v5161_v17 }
 0xec0   :  { %1944 = vmatpush1.bf16.msra.mxu1 %v5164_v19 }
 0xec1   :  { %1945 = vmatprep.subr.bf16.mxu1 %v5171_v31 }
 0xec4   :  { %1946 = vmatpush1.bf16.msra.mxu1 %v5173_v32 }
 0xec5   :  { %1947 = vmatprep.subr.bf16.mxu1 %v5180_v34 }
 0xec8   :  { %1948 = vmatpush1.bf16.msra.mxu1 %v5183_v18 }
 0xec9   :  { %1949 = vmatprep.subr.bf16.mxu1 %v5187_v36 }
 0xecc   :  { %1950 = vmatpush1.bf16.msra.mxu1 %v5192_v37 }
 0xecd   :  { %1951 = vmatprep.subr.bf16.mxu1 %v5198_v39 }
 0xed0   :  { %1952 = vmatpush1.bf16.msra.mxu1 %v5202_v40 }
 0xed1   :  { %1953 = vmatprep.subr.bf16.mxu1 %v5208_v42 }
 0xed4   :  { %1954 = vmatpush1.bf16.msra.mxu1 %v5212_v43 }
 0xed5   :  { %4016 = vmatprep.subr.bf16.mxu1 %v6073_v0 }
 0xed7   :  { %1972 = vmatmul.mubr.bf16.vlgmr.msra.gmra.mxu1 %v5414_v55 }
 0xed8   :  { %4017 = vmatpush3.bf16.msra.mxu1 %v5255_v58  ;;  %4032 = vmatprep.mubr.msk.bf16.mxu1 %vm4660_vm0, %v6073_v0 }
 0xed9   :  { %4018 = vmatprep.subr.bf16.mxu1 %v6073_v0 }
 0xedc   :  { %4019 = vmatpush3.bf16.msra.mxu1 %v5262_v59 }
 0xedd   :  { %4020 = vmatprep.subr.bf16.mxu1 %v6073_v0 }
 0xee0   :  { %4021 = vmatpush3.bf16.msra.mxu1 %v5269_v60 }
 0xee1   :  { %4022 = vmatprep.subr.bf16.mxu1 %v6073_v0 }
 0xee4   :  { %4023 = vmatpush3.bf16.msra.mxu1 %v5276_v61 }
 0xee5   :  { %4024 = vmatprep.subr.bf16.mxu1 %v6073_v0 }
 0xee8   :  { %4025 = vmatpush3.bf16.msra.mxu1 %v5282_v62 }
 0xee9   :  { %4026 = vmatprep.subr.bf16.mxu1 %v6073_v0 }
 0xeec   :  { %4027 = vmatpush3.bf16.msra.mxu1 %v5289_v63 }
 0xeed   :  { %4028 = vmatprep.subr.bf16.mxu1 %v6073_v0 }
 0xef0   :  { %4029 = vmatpush3.bf16.msra.mxu1 %v5296_v20 }
 0xef1   :  { %4030 = vmatprep.subr.bf16.mxu1 %v6073_v0 }
 0xef4   :  { %4031 = vmatpush3.bf16.msra.mxu1 %v5303_v21 }
 0xef5   :  { %4042 = vmatprep.subr.bf16.mxu1 %v6073_v0 }
 0xf6f   :  { %v1892_v57 = vpop.f32.mrf.mxu1 }
 0xf70   :  { %v1893_v2 = vadd.f32 %v1892_v57, %v5312_v11 }
 0xf71   :  { %v1894_v55 = vpop.f32.mrf.mxu1 }
 0xf72   :  { %v1895_v28 = vadd.f32 %v1894_v55, %v5316_v5 }
 0xf73   :  { %v1896_v49 = vpop.f32.mrf.mxu1 }
 0xf75   :  { %v1897_v51 = vpop.f32.mrf.mxu1 }
 0xf77   :  { %v1933_v47 = vpop.f32.mrf.mxu1 }
 0xf79   :  { %v3994_v54 = vpop.f32.mrf.mxu1 }
 0xf7a   :  { %v2034_v54 = vadd.f32 %v5323_v3, %v5441_v27 }
 0xf7b   :  { %v1936_v56 = vpop.f32.mrf.mxu1 }
 0xf7c   :  { %v1934_v56 = vadd.f32 %v1933_v47, %v5325_v22 }
 0xf7d   :  { %v3995_v9 = vpop.f32.mrf.mxu1 }
 0xf97   :  { %v1973_v52 = vpop.f32.mrf.mxu1 }
 0xf98   :  { %v2020_v53 = vadd.f32 %v1973_v52, %v1893_v2 }
 0xf99   :  { %v1975_v23 = vpop.f32.mrf.mxu1 }
 0xf9a   :  { %v3508_v25 = vmul.f32 -1.442695, %v2020_v53  ;;  %v2021_v30 = vadd.f32 %v1975_v23, %v1895_v28 }
 0xf9b   :  { %v1977_v24 = vpop.f32.mrf.mxu1 }
 0xf9c   :  { %4423 = vpow2.f32 %v3508_v25  ;;  %v3509_v26 = vmul.f32 -1.442695, %v2021_v30 }
 0xf9d   :  { %v1978_v48 = vpop.f32.mrf.mxu1 }
 0xf9e   :  { %4425 = vpow2.f32 %v3509_v26 }
 0xfa9   :  { %v4424_v1 = vpop.eup %4423 }
 0xfaa   :  { %v2028_v49 = vadd.f32 1.0, %v4424_v1 }
 0xfab   :  { %v4426_v51 = vpop.eup %4425 }
 0xfac   :  { %4427 = vrcp.f32 %v2028_v49  ;;  %v2029_v52 = vadd.f32 1.0, %v4426_v51 }
 0xfb9   :  { %v4428_v57 = vpop.eup %4427 }
 0xfba   :  { %v2035_v9 = vmul.f32 %v4428_v57, %v2034_v54 }
 0xfbc   :  { %v2036_v2 = vadd.f32 %v2035_v9, %v1934_v56 }
 0xfbe   :  { %4429 = vtanh.f32 %v2036_v2 }
 0xfbf   :  { %4431 = vrcp.f32 %v2029_v52 }
 0xfcb   :  { %v4430_v53 = vpop.eup %4429 }
 0xfcc   :  { %v2038_v55 = vsub.f32 %v5410_v46, %v4430_v53  ;;  %v4432_v23 = vpop.eup %4431 }
 0xfce   :  { %v2039_v25 = vmul.f32 %v4432_v23, %v2038_v55 }
 0xfd0   :  { %v5501_v1 = vadd.f32 %v4430_v53, %v2039_v25 }
 0xfd2   :  { %v5505_v24 = vpack.c.bf16 %v5501_v1, %v5501_v1 }
 0xfd4   :  { %4033 = vmatmul.mubr.bf16.vlgmr.msra.gmra.mxu1 %v5505_v24 }
 0xfd5   :  { %4043 = vmatpush3.bf16.msra.mxu1 %v5124_v7  ;;  %4058 = vmatprep.mubr.msk.bf16.mxu1 %vm4660_vm0, %v6073_v0  ;;  %v6075_v7 = vmov 0  }
 0xfd6   :  { %4044 = vmatprep.subr.bf16.mxu1 %v6073_v0 }
 0xfd9   :  { %4045 = vmatpush3.bf16.msra.mxu1 %v5130_v8 }
 0xfda   :  { %4046 = vmatprep.subr.bf16.mxu1 %v6073_v0 }
 0xfdd   :  { %4047 = vmatpush3.bf16.msra.mxu1 %v5142_v13 }
 0xfde   :  { %4048 = vmatprep.subr.bf16.mxu1 %v6073_v0 }
 0xfe1   :  { %4049 = vmatpush3.bf16.msra.mxu1 %v5175_v33 }
 0xfe2   :  { %4050 = vmatprep.subr.bf16.mxu1 %v6073_v0 }
 0xfe5   :  { %4051 = vmatpush3.bf16.msra.mxu1 %v5185_v35 }
 0xfe6   :  { %4052 = vmatprep.subr.bf16.mxu1 %v6073_v0 }
 0xfe9   :  { %4053 = vmatpush3.bf16.msra.mxu1 %v5194_v38 }
 0xfea   :  { %4054 = vmatprep.subr.bf16.mxu1 %v6073_v0 }
 0xfed   :  { %4055 = vmatpush3.bf16.msra.mxu1 %v5204_v41 }
 0xfee   :  { %4056 = vmatprep.subr.bf16.mxu1 %v6073_v0 }
 0xff1   :  { %4057 = vmatpush3.bf16.msra.mxu1 %v5214_v45 }
 0xff2   :  { %2378 = vmatprep.subr.bf16.mxu1 %v5116_v44 }
 0xff4   :  { %4059 = vmatmul.mubr.bf16.vlgmr.msra.gmra.mxu1 %v5505_v24 }
 0xff5   :  { %2379 = vmatpush1.bf16.msra.mxu1 %v5118_v4  ;;  %2396 = vmatprep.mubr.bf16.mxu1 %v6075_v7 }
 0xff6   :  { %4082 = vmatprep.subr.bf16.mxu1 %v6073_v0 }
0x1094   :  { %v2076_v8 = vpop.f32.mrf.mxu1 }
0x1095   :  { %v2077_v13 = vadd.f32 %v5363_v50, %v2076_v8 }
0x1096   :  { %v4034_v33 = vpop.f32.mrf.mxu1 }
0x1097   :  { %v2082_v35 = vsel %vm1576_vm2, %v2077_v13, -inf }
0x1098   :  { %2083 = vmax.xlane.f32.xlu0 %v2082_v35  ;;  %v2079_v38 = vpop.f32.mrf.mxu1 }
0x109a   :  { %v4035_v41 = vpop.f32.mrf.mxu1 }
0x109b   :  { %v5607_v41 = vld [vmem:[#allocation8 + $0x80] ss:$12 sps:$4 sm:$0xff]  }
0x10b4   :  { %v5532_v45 = vpop.f32.mrf.mxu1 }
0x10b6   :  { %v4060_v44 = vpop.f32.mrf.mxu1 }
0x10b7   :  { %v5615_v44 = vld [vmem:[#allocation8 + $0x50] ss:$12 sps:$4 sm:$0xff]  }
0x10b8   :  { %v2270_v46 = vpop.f32.mrf.mxu1 }
0x10b9   :  { %v5619_v46 = vld [vmem:[#allocation8 + $0x38] ss:$12 sps:$4 sm:$0xff]  }
0x10ba   :  { %v4061_v27 = vpop.f32.mrf.mxu1 }
0x10bb   :  { %v5623_v27 = vld [vmem:[#allocation8 + $0x20] ss:$12 sps:$4 sm:$0xff]  }
0x1121   :  { %v2084_v47 = vpop.xlane.xlu0 %2083 }
0x1122   :  { %vm2085_vm10 = vcmp.ge.f32.partialorder %v2077_v13, %v2084_v47  ;;  %v5627_v47 = vld [vmem:[#allocation8 + $0x8] ss:$12 sps:$4 sm:$0xff]  }
0x1123   :  { %v2086_v4 = vsel %vm2085_vm10, %v5122_v6, 16 }
0x1124   :  { %v2087_v48 = vsel %vm1576_vm2, %v2086_v4, 2147483647  ;;  %v5630_v4 = vld [vmem:[#allocation7 + $0x4] ss:$12 sps:$4 sm:$0xff]  }
0x1125   :  { %v2089_v28 = vshra.s32 %v2087_v48, 16  ;;  %v2088_v26 = vand.u32 65535, %v2087_v48  ;;  %v5634_v48 = vld [vmem:[#allocation7] ss:$12 sps:$4 sm:$0xff]  }
0x1127   :  { %v2091_v30 = vcvt.s32.f32 %v2089_v28  ;;  %v2090_v51 = vcvt.s32.f32 %v2088_v26 }
0x1129   :  { %2092 = vmin.xlane.f32.xlu1 %v2091_v30 }
0x11b2   :  { %v2093_v49 = vpop.xlane.xlu1 %2092 }
0x11b3   :  { %vm2094_vm11 = vcmp.eq.f32.partialorder %v2091_v30, %v2093_v49  ;;  %v2099_v57 = vcvt.f32.s32 %v2093_v49 }
0x11b4   :  { %v2095_v54 = vsel %vm2094_vm11, %v2090_v51, inf  ;;  %vm2861_vm11 = vcmp.eq.s32.totalorder %v5122_v6, 5 }
0x11b5   :  { %2096 = vmin.xlane.f32.xlu0 %v2095_v54  ;;  %v2100_v9 = vshll.u32 %v2099_v57, 16 }
0x123e   :  { %v2097_v56 = vpop.xlane.xlu0 %2096 }
0x123f   :  { %v2098_v2 = vcvt.f32.s32 %v2097_v56 }
0x1241   :  { %v2101_v52 = vadd.s32 %v2100_v9, %v2098_v2 }
0x1243   :  { %v5538_v53 = vsel %vm2102_vm12, %v2101_v52, %v5449_v29  ;;  %vm2104_vm13 = vcmp.eq.s32.totalorder %v5122_v6, %v2101_v52 }
0x1244   :  { %v3510_v55 = vsel %vm2104_vm13, 1.0, %v6073_v0 }
0x1245   :  { %v2107_v23 = vpack.c.bf16 %v3510_v55, %v3510_v55 }
0x1247   :  { %3511 = vmatmul.mubr.msk.bf16.vlgmr.msra.gmra.mxu0 %vm1159_vm15, %v2107_v23 }
0x1248   :  { %4037 = vmatpush3.bf16.msra.mxu0 %v5135_v10  ;;  %4038 = vmatprep.mubr.msk.bf16.mxu0 %vm4660_vm0, %v6073_v0 }
0x1249   :  { %2192 = vmatprep.subr.bf16.mxu0 %v5138_v12 }
0x124f   :  { %4039 = vmatmul.mubr.msk.bf16.vlgmr.msra.gmra.mxu0 %vm1159_vm15, %v2107_v23 }
0x1250   :  { %2193 = vmatpush1.bf16.msra.mxu0 %v5150_v14  ;;  %2224 = vmatprep.mubr.bf16.mxu0 %v6075_v7 }
0x1251   :  { %2194 = vmatprep.subr.bf16.mxu0 %v5153_v15 }
0x1254   :  { %2195 = vmatpush1.bf16.msra.mxu0 %v5157_v16 }
0x1255   :  { %2196 = vmatprep.subr.bf16.mxu0 %v5161_v17 }
0x1258   :  { %2197 = vmatpush1.bf16.msra.mxu0 %v5164_v19 }
0x1259   :  { %2198 = vmatprep.subr.bf16.mxu0 %v5171_v31 }
0x125c   :  { %2199 = vmatpush1.bf16.msra.mxu0 %v5173_v32 }
0x125d   :  { %2200 = vmatprep.subr.bf16.mxu0 %v5180_v34 }
0x1260   :  { %2201 = vmatpush1.bf16.msra.mxu0 %v5183_v18 }
0x1261   :  { %2202 = vmatprep.subr.bf16.mxu0 %v5187_v36 }
0x1264   :  { %2203 = vmatpush1.bf16.msra.mxu0 %v5192_v37 }
0x1265   :  { %2204 = vmatprep.subr.bf16.mxu0 %v5198_v39 }
0x1268   :  { %2205 = vmatpush1.bf16.msra.mxu0 %v5202_v40 }
0x1269   :  { %2206 = vmatprep.subr.bf16.mxu0 %v5208_v42 }
0x126c   :  { %2207 = vmatpush1.bf16.msra.mxu0 %v5212_v43 }
0x126d   :  { %4062 = vmatprep.subr.bf16.mxu0 %v6073_v0 }
0x126f   :  { %2225 = vmatmul.mubr.bf16.vlgmr.msra.gmra.mxu0 %v5505_v24 }
0x1270   :  { %4063 = vmatpush3.bf16.msra.mxu0 %v5255_v58  ;;  %4078 = vmatprep.mubr.msk.bf16.mxu0 %vm4660_vm0, %v6073_v0 }
0x1271   :  { %4064 = vmatprep.subr.bf16.mxu0 %v6073_v0 }
0x1274   :  { %4065 = vmatpush3.bf16.msra.mxu0 %v5262_v59 }
0x1275   :  { %4066 = vmatprep.subr.bf16.mxu0 %v6073_v0 }
0x1278   :  { %4067 = vmatpush3.bf16.msra.mxu0 %v5269_v60 }
0x1279   :  { %4068 = vmatprep.subr.bf16.mxu0 %v6073_v0 }
0x127c   :  { %4069 = vmatpush3.bf16.msra.mxu0 %v5276_v61 }
0x127d   :  { %4070 = vmatprep.subr.bf16.mxu0 %v6073_v0 }
0x1280   :  { %4071 = vmatpush3.bf16.msra.mxu0 %v5282_v62  ;;  %v2287_v62 = vadd.f32 %v5323_v3, %v5532_v45  ;;  %v5597_v3 = vld [vmem:[#allocation8 + $0xb0] ss:$12 sps:$4 sm:$0xff]   ;;  %v5611_v45 = vld [vmem:[#allocation8 + $0x68] ss:$12 sps:$4 sm:$0xff]  }
0x1281   :  { %4072 = vmatprep.subr.bf16.mxu0 %v6073_v0 }
0x1284   :  { %4073 = vmatpush3.bf16.msra.mxu0 %v5289_v63 }
0x1285   :  { %4074 = vmatprep.subr.bf16.mxu0 %v6073_v0 }
0x1288   :  { %4075 = vmatpush3.bf16.msra.mxu0 %v5296_v20 }
0x1289   :  { %4076 = vmatprep.subr.bf16.mxu0 %v6073_v0 }
0x128c   :  { %4077 = vmatpush3.bf16.msra.mxu0 %v5303_v21 }
0x128d   :  { %4088 = vmatprep.subr.bf16.mxu0 %v6073_v0 }
0x1307   :  { %v2145_v10 = vpop.f32.mrf.mxu0 }
0x1308   :  { %v2146_v32 = vadd.f32 %v2145_v10, %v5312_v11 }
0x1309   :  { %v2147_v12 = vpop.f32.mrf.mxu0 }
0x130a   :  { %v2148_v42 = vadd.f32 %v2147_v12, %v5316_v5 }
0x130b   :  { %v2149_v14 = vpop.f32.mrf.mxu0 }
0x130d   :  { %v2150_v15 = vpop.f32.mrf.mxu0 }
0x130f   :  { %v2186_v16 = vpop.f32.mrf.mxu0 }
0x1310   :  { %v2187_v20 = vadd.f32 %v2186_v16, %v5325_v22 }
0x1311   :  { %v4040_v17 = vpop.f32.mrf.mxu0 }
0x1313   :  { %v2189_v19 = vpop.f32.mrf.mxu0 }
0x1315   :  { %v4041_v31 = vpop.f32.mrf.mxu0 }
0x132f   :  { %v2226_v34 = vpop.f32.mrf.mxu0 }
0x1330   :  { %v2273_v18 = vadd.f32 %v2226_v34, %v2146_v32 }
0x1331   :  { %v2228_v36 = vpop.f32.mrf.mxu0 }
0x1332   :  { %v3513_v37 = vmul.f32 -1.442695, %v2273_v18  ;;  %v2274_v43 = vadd.f32 %v2228_v36, %v2148_v42  ;;  %v5665_v42 = vld [vmem:[#allocation8 + $0x94] ss:$12 sps:$4 sm:$0xff]  }
0x1333   :  { %v2230_v39 = vpop.f32.mrf.mxu0 }
0x1334   :  { %4433 = vpow2.f32 %v3513_v37  ;;  %v3514_v58 = vmul.f32 -1.442695, %v2274_v43  ;;  %v5652_v39 = vld [vmem:[#allocation7 + $0x8] ss:$12 sps:$4 sm:$0xff]  }
0x1335   :  { %v2231_v40 = vpop.f32.mrf.mxu0  ;;  %v5668_v43 = vld [vmem:[#allocation8 + $0x90] ss:$12 sps:$4 sm:$0xff]  }
0x1336   :  { %4435 = vpow2.f32 %v3514_v58  ;;  %v5657_v40 = vld [vmem:[#allocation8 + $0xac] ss:$12 sps:$4 sm:$0xff]   ;;  %v5671_v58 = vld [vmem:[#allocation8 + $0x7c] ss:$12 sps:$4 sm:$0xff]  }
0x1341   :  { %v4434_v59 = vpop.eup %4433 }
0x1342   :  { %v2281_v60 = vadd.f32 1.0, %v4434_v59  ;;  %v5674_v59 = vld [vmem:[#allocation8 + $0x78] ss:$12 sps:$4 sm:$0xff]  }
0x1343   :  { %v4436_v61 = vpop.eup %4435 }
0x1344   :  { %4437 = vrcp.f32 %v2281_v60  ;;  %v2282_v25 = vadd.f32 1.0, %v4436_v61  ;;  %v5677_v60 = vld [vmem:[#allocation8 + $0x64] ss:$12 sps:$4 sm:$0xff]   ;;  %v5680_v61 = vld [vmem:[#allocation8 + $0x60] ss:$12 sps:$4 sm:$0xff]  }
0x1351   :  { %v4438_v63 = vpop.eup %4437 }
0x1352   :  { %v2288_v21 = vmul.f32 %v4438_v63, %v2287_v62  ;;  %v5683_v62 = vld [vmem:[#allocation8 + $0x4c] ss:$12 sps:$4 sm:$0xff]   ;;  %v5686_v63 = vld [vmem:[#allocation8 + $0x48] ss:$12 sps:$4 sm:$0xff]  }
0x1354   :  { %v2289_v29 = vadd.f32 %v2288_v21, %v2187_v20  ;;  %v5689_v20 = vld [vmem:[#allocation8 + $0x34] ss:$12 sps:$4 sm:$0xff]   ;;  %v5692_v21 = vld [vmem:[#allocation8 + $0x30] ss:$12 sps:$4 sm:$0xff]  }
0x1356   :  { %4439 = vtanh.f32 %v2289_v29  ;;  %v5695_v29 = vld [vmem:[#allocation8 + $0x1c] ss:$12 sps:$4 sm:$0xff]  }
0x1357   :  { %4441 = vrcp.f32 %v2282_v25  ;;  %v5698_v25 = vld [vmem:[#allocation8 + $0x18] ss:$12 sps:$4 sm:$0xff]  }
0x1363   :  { %v4440_v24 = vpop.eup %4439 }
0x1364   :  { %v2291_v8 = vsub.f32 %v5501_v1, %v4440_v24  ;;  %v4442_v13 = vpop.eup %4441  ;;  %v5603_v1 = vld [vmem:[#allocation8 + $0x98] ss:$12 sps:$4 sm:$0xff]  }
0x1366   :  { %v2292_v33 = vmul.f32 %v4442_v13, %v2291_v8  ;;  %v5704_v8 = vld [vmem:[#allocation8] ss:$12 sps:$4 sm:$0xff]  }
0x1367   :  { %v5712_v13 = vld [vmem:[%s6067_s10 + $0x38] sm:$0xff]  }
0x1368   :  { %v5590_v35 = vadd.f32 %v4440_v24, %v2292_v33  ;;  %v5701_v24 = vld [vmem:[#allocation8 + $0x4] ss:$12 sps:$4 sm:$0xff]   ;;  %v5721_v33 = vld [vmem:[%s6067_s10 + $0x30] sm:$0xff]  }
0x136a   :  { %v5594_v38 = vpack.c.bf16 %v5590_v35, %v5590_v35 }
0x136c   :  { %4079 = vmatmul.mubr.bf16.vlgmr.msra.gmra.mxu0 %v5594_v38 }
0x136d   :  { %4089 = vmatpush3.bf16.msra.mxu0 %v5597_v3  ;;  %4104 = vmatprep.mubr.msk.bf16.mxu0 %vm4660_vm0, %v6073_v0 }
0x136e   :  { %4090 = vmatprep.subr.bf16.mxu0 %v6073_v0 }
0x1371   :  { %4091 = vmatpush3.bf16.msra.mxu0 %v5603_v1 }
0x1372   :  { %4092 = vmatprep.subr.bf16.mxu0 %v6073_v0 }
0x1375   :  { %4093 = vmatpush3.bf16.msra.mxu0 %v5607_v41 }
0x1376   :  { %4094 = vmatprep.subr.bf16.mxu0 %v6073_v0 }
0x1379   :  { %4095 = vmatpush3.bf16.msra.mxu0 %v5611_v45 }
0x137a   :  { %4096 = vmatprep.subr.bf16.mxu0 %v6073_v0 }
0x137d   :  { %4097 = vmatpush3.bf16.msra.mxu0 %v5615_v44 }
0x137e   :  { %4098 = vmatprep.subr.bf16.mxu0 %v6073_v0 }
0x1381   :  { %4099 = vmatpush3.bf16.msra.mxu0 %v5619_v46 }
0x1382   :  { %4100 = vmatprep.subr.bf16.mxu0 %v6073_v0 }
0x1385   :  { %4101 = vmatpush3.bf16.msra.mxu0 %v5623_v27 }
0x1386   :  { %4102 = vmatprep.subr.bf16.mxu0 %v6073_v0 }
0x1389   :  { %4103 = vmatpush3.bf16.msra.mxu0 %v5627_v47 }
0x138a   :  { %2631 = vmatprep.subr.bf16.mxu0 %v5630_v4 }
0x138c   :  { %4105 = vmatmul.mubr.bf16.vlgmr.msra.gmra.mxu0 %v5594_v38 }
0x138d   :  { %2632 = vmatpush1.bf16.msra.mxu0 %v5634_v48  ;;  %2649 = vmatprep.mubr.bf16.mxu0 %v6075_v7 }
0x138e   :  { %4128 = vmatprep.subr.bf16.mxu0 %v6073_v0 }
0x142c   :  { %v2329_v28 = vpop.f32.mrf.mxu0 }
0x142d   :  { %v2330_v30 = vadd.f32 %v5363_v50, %v2329_v28  ;;  %v5735_v28 = vld [vmem:[%s6067_s10 + $0x20] sm:$0xff]  }
0x142e   :  { %v4080_v26 = vpop.f32.mrf.mxu0 }
0x142f   :  { %v2335_v49 = vsel %vm1576_vm2, %v2330_v30, -inf  ;;  %v5749_v26 = vld [vmem:[%s6067_s10 + $0x10] sm:$0xff]  }
0x1430   :  { %2336 = vmax.xlane.f32.xlu1 %v2335_v49  ;;  %v2332_v51 = vpop.f32.mrf.mxu0  ;;  %v5756_v49 = vld [vmem:[%s6067_s10 + $0x8] sm:$0xff]  }
0x1431   :  { %v5763_v51 = vld [vmem:[%s6067_s10] sm:$0xff]  }
0x1432   :  { %v4081_v54 = vpop.f32.mrf.mxu0 }
0x144c   :  { %v5641_v57 = vpop.f32.mrf.mxu0 }
0x144e   :  { %v4106_v56 = vpop.f32.mrf.mxu0 }
0x1450   :  { %v2523_v9 = vpop.f32.mrf.mxu0 }
0x1452   :  { %v4107_v2 = vpop.f32.mrf.mxu0 }
0x14b9   :  { %v2337_v52 = vpop.xlane.xlu1 %2336 }
0x14ba   :  { %vm2338_vm14 = vcmp.ge.f32.partialorder %v2330_v30, %v2337_v52  ;;  %v5742_v30 = vld [vmem:[%s6067_s10 + $0x18] sm:$0xff]  }
0x14bb   :  { %v2339_v55 = vsel %vm2338_vm14, %v5122_v6, 16 }
0x14bc   :  { %v2340_v23 = vsel %vm1576_vm2, %v2339_v55, 2147483647 }
0x14bd   :  { %v2342_v10 = vshra.s32 %v2340_v23, 16  ;;  %v2341_v50 = vand.u32 65535, %v2340_v23 }
0x14bf   :  { %v2344_v12 = vcvt.s32.f32 %v2342_v10  ;;  %v2343_v15 = vcvt.s32.f32 %v2341_v50 }
0x14c1   :  { %2345 = vmin.xlane.f32.xlu0 %v2344_v12 }
0x154a   :  { %v2346_v14 = vpop.xlane.xlu0 %2345 }
0x154b   :  { %vm2347_vm1 = vcmp.eq.f32.partialorder %v2344_v12, %v2346_v14  ;;  %v2352_v17 = vcvt.f32.s32 %v2346_v14 }
0x154c   :  { %v2348_v16 = vsel %vm2347_vm1, %v2343_v15, inf  ;;  %vm3114_vm1 = vcmp.eq.s32.totalorder %v5122_v6, 6 }
0x154d   :  { %2349 = vmin.xlane.f32.xlu1 %v2348_v16  ;;  %v2353_v31 = vshll.u32 %v2352_v17, 16 }
0x15d6   :  { %v2350_v19 = vpop.xlane.xlu1 %2349 }
0x15d7   :  { %v2351_v32 = vcvt.f32.s32 %v2350_v19 }
0x15d9   :  { %v2354_v34 = vadd.s32 %v2353_v31, %v2351_v32 }
0x15db   :  { %v5647_v18 = vsel %vm2355_vm3, %v2354_v34, %v5538_v53  ;;  %vm2357_vm4 = vcmp.eq.s32.totalorder %v5122_v6, %v2354_v34  ;;  %v5661_v53 = vld [vmem:[#allocation8 + $0xa8] ss:$12 sps:$4 sm:$0xff]  }
0x15dc   :  { %v3515_v36 = vsel %vm2357_vm4, 1.0, %v6073_v0 }
0x15dd   :  { %v2360_v37 = vpack.c.bf16 %v3515_v36, %v3515_v36 }
0x15df   :  { %3516 = vmatmul.mubr.msk.bf16.vlgmr.msra.gmra.mxu1 %vm1159_vm15, %v2360_v37 }
0x15e0   :  { %4083 = vmatpush3.bf16.msra.mxu1 %v5652_v39  ;;  %4084 = vmatprep.mubr.msk.bf16.mxu1 %vm4660_vm0, %v6073_v0 }
0x15e1   :  { %2445 = vmatprep.subr.bf16.mxu1 %v5657_v40 }
0x15e7   :  { %4085 = vmatmul.mubr.msk.bf16.vlgmr.msra.gmra.mxu1 %vm1159_vm15, %v2360_v37 }
0x15e8   :  { %2446 = vmatpush1.bf16.msra.mxu1 %v5661_v53  ;;  %2477 = vmatprep.mubr.bf16.mxu1 %v6075_v7 }
0x15e9   :  { %2447 = vmatprep.subr.bf16.mxu1 %v5665_v42 }
0x15ec   :  { %2448 = vmatpush1.bf16.msra.mxu1 %v5668_v43 }
0x15ed   :  { %2449 = vmatprep.subr.bf16.mxu1 %v5671_v58 }
0x15f0   :  { %2450 = vmatpush1.bf16.msra.mxu1 %v5674_v59 }
0x15f1   :  { %2451 = vmatprep.subr.bf16.mxu1 %v5677_v60 }
0x15f4   :  { %2452 = vmatpush1.bf16.msra.mxu1 %v5680_v61 }
0x15f5   :  { %2453 = vmatprep.subr.bf16.mxu1 %v5683_v62 }
0x15f8   :  { %2454 = vmatpush1.bf16.msra.mxu1 %v5686_v63 }
0x15f9   :  { %2455 = vmatprep.subr.bf16.mxu1 %v5689_v20 }
0x15fc   :  { %2456 = vmatpush1.bf16.msra.mxu1 %v5692_v21 }
0x15fd   :  { %2457 = vmatprep.subr.bf16.mxu1 %v5695_v29 }
0x1600   :  { %2458 = vmatpush1.bf16.msra.mxu1 %v5698_v25 }
0x1601   :  { %2459 = vmatprep.subr.bf16.mxu1 %v5701_v24 }
0x1604   :  { %2460 = vmatpush1.bf16.msra.mxu1 %v5704_v8 }
0x1605   :  { %4108 = vmatprep.subr.bf16.mxu1 %v6073_v0 }
0x1607   :  { %2478 = vmatmul.mubr.bf16.vlgmr.msra.gmra.mxu1 %v5594_v38  ;;  %v5728_v38 = vld [vmem:[%s6067_s10 + $0x28] sm:$0xff]  }
0x1608   :  { %4109 = vmatpush3.bf16.msra.mxu1 %v5712_v13  ;;  %4124 = vmatprep.mubr.msk.bf16.mxu1 %vm4660_vm0, %v6073_v0 }
0x1609   :  { %4110 = vmatprep.subr.bf16.mxu1 %v6073_v0 }
0x160c   :  { %4111 = vmatpush3.bf16.msra.mxu1 %v5721_v33 }
0x160d   :  { %4112 = vmatprep.subr.bf16.mxu1 %v6073_v0 }
0x1610   :  { %4113 = vmatpush3.bf16.msra.mxu1 %v5728_v38 }
0x1611   :  { %4114 = vmatprep.subr.bf16.mxu1 %v6073_v0 }
0x1614   :  { %4115 = vmatpush3.bf16.msra.mxu1 %v5735_v28 }
0x1615   :  { %4116 = vmatprep.subr.bf16.mxu1 %v6073_v0 }
0x1618   :  { %4117 = vmatpush3.bf16.msra.mxu1 %v5742_v30 }
0x1619   :  { %4118 = vmatprep.subr.bf16.mxu1 %v6073_v0 }
0x161c   :  { %4119 = vmatpush3.bf16.msra.mxu1 %v5749_v26 }
0x161d   :  { %4120 = vmatprep.subr.bf16.mxu1 %v6073_v0 }
0x1620   :  { %4121 = vmatpush3.bf16.msra.mxu1 %v5756_v49 }
0x1621   :  { %4122 = vmatprep.subr.bf16.mxu1 %v6073_v0 }
0x1624   :  { %4123 = vmatpush3.bf16.msra.mxu1 %v5763_v51 }
0x1625   :  { %4134 = vmatprep.subr.bf16.mxu1 %v6073_v0 }
0x169f   :  { %v2398_v54 = vpop.f32.mrf.mxu1 }
0x16a0   :  { %v2399_v12 = vadd.f32 %v2398_v54, %v5312_v11  ;;  %v5772_v54 = vld [vmem:[%s6066_s9] ss:$0 sm:$0xff] }
0x16a1   :  { %v2400_v56 = vpop.f32.mrf.mxu1 }
0x16a2   :  { %v2401_v31 = vadd.f32 %v2400_v56, %v5316_v5 }
0x16a3   :  { %v2402_v9 = vpop.f32.mrf.mxu1 }
0x16a5   :  { %v2403_v2 = vpop.f32.mrf.mxu1 }
0x16a6   :  { %v2540_v2 = vadd.f32 %v5772_v54, %v5641_v57  ;;  %v5810_v57 = vld [vmem:[%s6068_s11] ss:$0 sm:$0xff]  ;;  %s4661_s11 = smov [#allocation10]  }
0x16a7   :  { %v2439_v52 = vpop.f32.mrf.mxu1  ;;  %s3377_s27 = sshll.u32 %s4661_s11, 4  ;;  %s3378_s27 = int_to_ptr.vmem [resolvable:$true] %s3377_s27 }
0x16a8   :  { %s4600_s28 = scalar_lea.vmem %s3378_s27, 64  ;;  %p4605_p7 = scmp.lt.s32.totalorder %s3378_s27, %s3378_s27 }
0x16a9   :  { %v4086_v55 = vpop.f32.mrf.mxu1  ;;  %p4601_p6 = scmp.ne.s32.totalorder %s3378_s27, %s4600_s28  ;;  %p4606_p8 = scmp.lt.s32.totalorder %s4600_s28, %s4600_s28 }
0x16ab   :  { %v2442_v23 = vpop.f32.mrf.mxu1  ;;  %p4607_p9 = por %p4606_p8, %p4605_p7 }
0x16ac   :  { %v2440_v23 = vadd.f32 %v2439_v52, %v5325_v22 }
0x16ad   :  { %v4087_v10 = vpop.f32.mrf.mxu1  ;;  %p4608_p10 = pnand %p4607_p9, %p4601_p6 }
0x16c7   :  { %v2479_v50 = vpop.f32.mrf.mxu1 }
0x16c8   :  { %v2526_v14 = vadd.f32 %v2479_v50, %v2399_v12 }
0x16c9   :  { %v2481_v15 = vpop.f32.mrf.mxu1 }
0x16ca   :  { %v3518_v16 = vmul.f32 -1.442695, %v2526_v14  ;;  %v2527_v32 = vadd.f32 %v2481_v15, %v2401_v31 }
0x16cb   :  { %v2483_v17 = vpop.f32.mrf.mxu1 }
0x16cc   :  { %4443 = vpow2.f32 %v3518_v16  ;;  %v3519_v34 = vmul.f32 -1.442695, %v2527_v32 }
0x16cd   :  { %v2484_v19 = vpop.f32.mrf.mxu1 }
0x16ce   :  { %4445 = vpow2.f32 %v3519_v34 }
0x16d9   :  { %v4444_v36 = vpop.eup %4443 }
0x16da   :  { %v2534_v37 = vadd.f32 1.0, %v4444_v36 }
0x16db   :  { %v4446_v9 = vpop.eup %4445 }
0x16dc   :  { %4447 = vrcp.f32 %v2534_v37  ;;  %v2535_v12 = vadd.f32 1.0, %v4446_v9 }
0x16e9   :  { %v4448_v55 = vpop.eup %4447 }
0x16ea   :  { %v2541_v10 = vmul.f32 %v4448_v55, %v2540_v2 }
0x16ec   :  { %v2542_v56 = vadd.f32 %v2541_v10, %v2440_v23 }
0x16ee   :  { %4449 = vtanh.f32 %v2542_v56 }
0x16ef   :  { %4451 = vrcp.f32 %v2535_v12 }
0x16fb   :  { %v4450_v50 = vpop.eup %4449 }
0x16fc   :  { %v2544_v14 = vsub.f32 %v5590_v35, %v4450_v50  ;;  %v4452_v15 = vpop.eup %4451 }
0x16fe   :  { %v2545_v16 = vmul.f32 %v4452_v15, %v2544_v14 }
0x1700   :  { %v5778_v17 = vadd.f32 %v4450_v50, %v2545_v16 }
0x1702   :  { %v5782_v19 = vpack.c.bf16 %v5778_v17, %v5778_v17 }
0x1704   :  { %4125 = vmatmul.mubr.bf16.vlgmr.msra.gmra.mxu1 %v5782_v19 }
0x1705   :  { %4135 = vmatpush3.bf16.msra.mxu1 %v5597_v3  ;;  %4150 = vmatprep.mubr.msk.bf16.mxu1 %vm4660_vm0, %v6073_v0 }
0x1706   :  { %4136 = vmatprep.subr.bf16.mxu1 %v6073_v0 }
0x1709   :  { %4137 = vmatpush3.bf16.msra.mxu1 %v5603_v1 }
0x170a   :  { %4138 = vmatprep.subr.bf16.mxu1 %v6073_v0 }
0x170d   :  { %4139 = vmatpush3.bf16.msra.mxu1 %v5607_v41 }
0x170e   :  { %4140 = vmatprep.subr.bf16.mxu1 %v6073_v0 }
0x1711   :  { %4141 = vmatpush3.bf16.msra.mxu1 %v5611_v45 }
0x1712   :  { %4142 = vmatprep.subr.bf16.mxu1 %v6073_v0 }
0x1715   :  { %4143 = vmatpush3.bf16.msra.mxu1 %v5615_v44 }
0x1716   :  { %4144 = vmatprep.subr.bf16.mxu1 %v6073_v0 }
0x1719   :  { %4145 = vmatpush3.bf16.msra.mxu1 %v5619_v46 }
0x171a   :  { %4146 = vmatprep.subr.bf16.mxu1 %v6073_v0 }
0x171d   :  { %4147 = vmatpush3.bf16.msra.mxu1 %v5623_v27 }
0x171e   :  { %4148 = vmatprep.subr.bf16.mxu1 %v6073_v0 }
0x1721   :  { %4149 = vmatpush3.bf16.msra.mxu1 %v5627_v47 }
0x1722   :  { %2884 = vmatprep.subr.bf16.mxu1 %v5630_v4 }
0x1724   :  { %4151 = vmatmul.mubr.bf16.vlgmr.msra.gmra.mxu1 %v5782_v19 }
0x1725   :  { %2885 = vmatpush1.bf16.msra.mxu1 %v5634_v48  ;;  %2902 = vmatprep.mubr.bf16.mxu1 %v6075_v7 }
0x1726   :  { %4174 = vmatprep.subr.bf16.mxu1 %v6073_v0 }
0x17c4   :  { %v2582_v35 = vpop.f32.mrf.mxu1 }
0x17c5   :  { %v2583_v52 = vadd.f32 %v5810_v57, %v2582_v35 }
0x17c6   :  { %v4126_v31 = vpop.f32.mrf.mxu1 }
0x17c7   :  { %v2588_v32 = vsel %vm1576_vm2, %v2583_v52, -inf }
0x17c8   :  { %2589 = vmax.xlane.f32.xlu0 %v2588_v32  ;;  %v2585_v34 = vpop.f32.mrf.mxu1 }
0x17ca   :  { %v4127_v36 = vpop.f32.mrf.mxu1 }
0x17e4   :  { %v5814_v37 = vpop.f32.mrf.mxu1 }
0x17e6   :  { %v4152_v9 = vpop.f32.mrf.mxu1 }
0x17e8   :  { %v2776_v2 = vpop.f32.mrf.mxu1 }
0x17ea   :  { %v4153_v55 = vpop.f32.mrf.mxu1 }
0x1851   :  { %v2590_v23 = vpop.xlane.xlu0 %2589 }
0x1852   :  { %vm2591_vm5 = vcmp.ge.f32.partialorder %v2583_v52, %v2590_v23 }
0x1853   :  { %v2592_v10 = vsel %vm2591_vm5, %v5122_v6, 16 }
0x1854   :  { %v2593_v56 = vsel %vm1576_vm2, %v2592_v10, 2147483647 }
0x1855   :  { %v2595_v12 = vshra.s32 %v2593_v56, 16  ;;  %v2594_v14 = vand.u32 65535, %v2593_v56 }
0x1857   :  { %v2597_v50 = vcvt.s32.f32 %v2595_v12  ;;  %v2596_v16 = vcvt.s32.f32 %v2594_v14 }
0x1859   :  { %2598 = vmin.xlane.f32.xlu1 %v2597_v50 }
0x18e2   :  { %v2599_v15 = vpop.xlane.xlu1 %2598 }
0x18e3   :  { %vm2600_vm6 = vcmp.eq.f32.partialorder %v2597_v50, %v2599_v15  ;;  %v2605_v31 = vcvt.f32.s32 %v2599_v15 }
0x18e4   :  { %v2601_v35 = vsel %vm2600_vm6, %v2596_v16, inf }
0x18e5   :  { %2602 = vmin.xlane.f32.xlu0 %v2601_v35  ;;  %v2606_v34 = vshll.u32 %v2605_v31, 16 }
0x196e   :  { %v2603_v32 = vpop.xlane.xlu0 %2602 }
0x196f   :  { %v2604_v36 = vcvt.f32.s32 %v2603_v32 }
0x1971   :  { %v2607_v52 = vadd.s32 %v2606_v34, %v2604_v36 }
0x1973   :  { %v5820_v9 = vsel %vm2608_vm7, %v2607_v52, %v5647_v18  ;;  %vm2610_vm8 = vcmp.eq.s32.totalorder %v5122_v6, %v2607_v52 }
0x1974   :  { %v3520_v2 = vsel %vm2610_vm8, 1.0, %v6073_v0 }
0x1975   :  { %v2613_v55 = vpack.c.bf16 %v3520_v2, %v3520_v2 }
0x1977   :  { %3521 = vmatmul.mubr.msk.bf16.vlgmr.msra.gmra.mxu0 %vm1159_vm15, %v2613_v55 }
0x1978   :  { %4129 = vmatpush3.bf16.msra.mxu0 %v5652_v39  ;;  %4130 = vmatprep.mubr.msk.bf16.mxu0 %vm4660_vm0, %v6073_v0 }
0x1979   :  { %2698 = vmatprep.subr.bf16.mxu0 %v5657_v40 }
0x197f   :  { %4131 = vmatmul.mubr.msk.bf16.vlgmr.msra.gmra.mxu0 %vm1159_vm15, %v2613_v55 }
0x1980   :  { %2699 = vmatpush1.bf16.msra.mxu0 %v5661_v53  ;;  %2730 = vmatprep.mubr.bf16.mxu0 %v6075_v7 }
0x1981   :  { %2700 = vmatprep.subr.bf16.mxu0 %v5665_v42 }
0x1984   :  { %2701 = vmatpush1.bf16.msra.mxu0 %v5668_v43 }
0x1985   :  { %2702 = vmatprep.subr.bf16.mxu0 %v5671_v58 }
0x1988   :  { %2703 = vmatpush1.bf16.msra.mxu0 %v5674_v59 }
0x1989   :  { %2704 = vmatprep.subr.bf16.mxu0 %v5677_v60 }
0x198c   :  { %2705 = vmatpush1.bf16.msra.mxu0 %v5680_v61 }
0x198d   :  { %2706 = vmatprep.subr.bf16.mxu0 %v5683_v62 }
0x1990   :  { %2707 = vmatpush1.bf16.msra.mxu0 %v5686_v63 }
0x1991   :  { %2708 = vmatprep.subr.bf16.mxu0 %v5689_v20 }
0x1994   :  { %2709 = vmatpush1.bf16.msra.mxu0 %v5692_v21 }
0x1995   :  { %2710 = vmatprep.subr.bf16.mxu0 %v5695_v29 }
0x1998   :  { %2711 = vmatpush1.bf16.msra.mxu0 %v5698_v25 }
0x1999   :  { %2712 = vmatprep.subr.bf16.mxu0 %v5701_v24 }
0x199c   :  { %2713 = vmatpush1.bf16.msra.mxu0 %v5704_v8 }
0x199d   :  { %4154 = vmatprep.subr.bf16.mxu0 %v6073_v0 }
0x199f   :  { %2731 = vmatmul.mubr.bf16.vlgmr.msra.gmra.mxu0 %v5782_v19 }
0x19a0   :  { %4155 = vmatpush3.bf16.msra.mxu0 %v5712_v13  ;;  %4170 = vmatprep.mubr.msk.bf16.mxu0 %vm4660_vm0, %v6073_v0 }
0x19a1   :  { %4156 = vmatprep.subr.bf16.mxu0 %v6073_v0 }
0x19a4   :  { %4157 = vmatpush3.bf16.msra.mxu0 %v5721_v33 }
0x19a5   :  { %4158 = vmatprep.subr.bf16.mxu0 %v6073_v0 }
0x19a8   :  { %4159 = vmatpush3.bf16.msra.mxu0 %v5728_v38 }
0x19a9   :  { %4160 = vmatprep.subr.bf16.mxu0 %v6073_v0 }
0x19ac   :  { %4161 = vmatpush3.bf16.msra.mxu0 %v5735_v28 }
0x19ad   :  { %4162 = vmatprep.subr.bf16.mxu0 %v6073_v0 }
0x19b0   :  { %4163 = vmatpush3.bf16.msra.mxu0 %v5742_v30 }
0x19b1   :  { %4164 = vmatprep.subr.bf16.mxu0 %v6073_v0 }
0x19b4   :  { %4165 = vmatpush3.bf16.msra.mxu0 %v5749_v26 }
0x19b5   :  { %4166 = vmatprep.subr.bf16.mxu0 %v6073_v0 }
0x19b8   :  { %4167 = vmatpush3.bf16.msra.mxu0 %v5756_v49 }
0x19b9   :  { %4168 = vmatprep.subr.bf16.mxu0 %v6073_v0 }
0x19bc   :  { %4169 = vmatpush3.bf16.msra.mxu0 %v5763_v51 }
0x19bd   :  { %4180 = vmatprep.subr.bf16.mxu0 %v6073_v0 }
0x1a37   :  { %v2651_v18 = vpop.f32.mrf.mxu0 }
0x1a38   :  { %v2652_v15 = vadd.f32 %v2651_v18, %v5312_v11 }
0x1a39   :  { %v2653_v19 = vpop.f32.mrf.mxu0 }
0x1a3a   :  { %v2654_v52 = vadd.f32 %v2653_v19, %v5316_v5 }
0x1a3b   :  { %v2655_v23 = vpop.f32.mrf.mxu0 }
0x1a3d   :  { %v2656_v10 = vpop.f32.mrf.mxu0 }
0x1a3f   :  { %v2692_v56 = vpop.f32.mrf.mxu0 }
0x1a41   :  { %v4132_v12 = vpop.f32.mrf.mxu0 }
0x1a42   :  { %v2793_v12 = vadd.f32 %v5772_v54, %v5814_v37  ;;  %v6076_v37 = vmov 0.0  }
0x1a43   :  { %v2695_v50 = vpop.f32.mrf.mxu0 }
0x1a44   :  { %v2693_v50 = vadd.f32 %v2692_v56, %v5325_v22 }
0x1a45   :  { %v4133_v14 = vpop.f32.mrf.mxu0 }
0x1a5f   :  { %v2732_v16 = vpop.f32.mrf.mxu0 }
0x1a60   :  { %v2779_v35 = vadd.f32 %v2732_v16, %v2652_v15 }
0x1a61   :  { %v2734_v31 = vpop.f32.mrf.mxu0 }
0x1a62   :  { %v3523_v32 = vmul.f32 -1.442695, %v2779_v35  ;;  %v2780_v2 = vadd.f32 %v2734_v31, %v2654_v52 }
0x1a63   :  { %v2736_v34 = vpop.f32.mrf.mxu0 }
0x1a64   :  { %4453 = vpow2.f32 %v3523_v32  ;;  %v3524_v55 = vmul.f32 -1.442695, %v2780_v2 }
0x1a65   :  { %v2737_v36 = vpop.f32.mrf.mxu0 }
0x1a66   :  { %4455 = vpow2.f32 %v3524_v55 }
0x1a71   :  { %v4454_v0 = vpop.eup %4453 }
0x1a72   :  { %v2787_v23 = vadd.f32 1.0, %v4454_v0 }
0x1a73   :  { %v4456_v10 = vpop.eup %4455 }
0x1a74   :  { %4457 = vrcp.f32 %v2787_v23  ;;  %v2788_v16 = vadd.f32 1.0, %v4456_v10 }
0x1a81   :  { %v4458_v18 = vpop.eup %4457 }
0x1a82   :  { %v2794_v14 = vmul.f32 %v4458_v18, %v2793_v12 }
0x1a84   :  { %v2795_v15 = vadd.f32 %v2794_v14, %v2693_v50 }
0x1a86   :  { %4459 = vtanh.f32 %v2795_v15 }
0x1a87   :  { %4461 = vrcp.f32 %v2788_v16 }
0x1a93   :  { %v4460_v35 = vpop.eup %4459 }
0x1a94   :  { %v2797_v19 = vsub.f32 %v5778_v17, %v4460_v35  ;;  %v4462_v31 = vpop.eup %4461 }
0x1a96   :  { %v2798_v32 = vmul.f32 %v4462_v31, %v2797_v19 }
0x1a98   :  { %v5872_v0 = vadd.f32 %v4460_v35, %v2798_v32 }
0x1a9a   :  { %v5876_v34 = vpack.c.bf16 %v5872_v0, %v5872_v0 }
0x1a9c   :  { %4171 = vmatmul.mubr.bf16.vlgmr.msra.gmra.mxu0 %v5876_v34 }
0x1a9d   :  { %4181 = vmatpush3.bf16.msra.mxu0 %v5597_v3  ;;  %4196 = vmatprep.mubr.msk.bf16.mxu0 %vm4660_vm0, %v6076_v37 }
0x1a9e   :  { %4182 = vmatprep.subr.bf16.mxu0 %v6076_v37 }
0x1aa1   :  { %4183 = vmatpush3.bf16.msra.mxu0 %v5603_v1 }
0x1aa2   :  { %4184 = vmatprep.subr.bf16.mxu0 %v6076_v37 }
0x1aa5   :  { %4185 = vmatpush3.bf16.msra.mxu0 %v5607_v41 }
0x1aa6   :  { %4186 = vmatprep.subr.bf16.mxu0 %v6076_v37 }
0x1aa9   :  { %4187 = vmatpush3.bf16.msra.mxu0 %v5611_v45 }
0x1aaa   :  { %4188 = vmatprep.subr.bf16.mxu0 %v6076_v37 }
0x1aad   :  { %4189 = vmatpush3.bf16.msra.mxu0 %v5615_v44 }
0x1aae   :  { %4190 = vmatprep.subr.bf16.mxu0 %v6076_v37 }
0x1ab1   :  { %4191 = vmatpush3.bf16.msra.mxu0 %v5619_v46 }
0x1ab2   :  { %4192 = vmatprep.subr.bf16.mxu0 %v6076_v37 }
0x1ab5   :  { %4193 = vmatpush3.bf16.msra.mxu0 %v5623_v27 }
0x1ab6   :  { %4194 = vmatprep.subr.bf16.mxu0 %v6076_v37 }
0x1ab9   :  { %4195 = vmatpush3.bf16.msra.mxu0 %v5627_v47 }
0x1aba   :  { %3137 = vmatprep.subr.bf16.mxu0 %v5630_v4 }
0x1abc   :  { %4197 = vmatmul.mubr.bf16.vlgmr.msra.gmra.mxu0 %v5876_v34 }
0x1abd   :  { %3138 = vmatpush1.bf16.msra.mxu0 %v5634_v48  ;;  %3155 = vmatprep.mubr.bf16.mxu0 %v6075_v7 }
0x1abe   :  { %4220 = vmatprep.subr.bf16.mxu0 %v6076_v37 }
0x1b5c   :  { %v2835_v17 = vpop.f32.mrf.mxu0 }
0x1b5d   :  { %v2836_v56 = vadd.f32 %v5810_v57, %v2835_v17 }
0x1b5e   :  { %v4172_v36 = vpop.f32.mrf.mxu0 }
0x1b5f   :  { %v2841_v52 = vsel %vm1576_vm2, %v2836_v56, -inf }
0x1b60   :  { %2842 = vmax.xlane.f32.xlu1 %v2841_v52  ;;  %v2838_v2 = vpop.f32.mrf.mxu0 }
0x1b62   :  { %v4173_v55 = vpop.f32.mrf.mxu0 }
0x1b7c   :  { %v5903_v23 = vpop.f32.mrf.mxu0 }
0x1b7e   :  { %v4198_v4 = vpop.f32.mrf.mxu0 }
0x1b80   :  { %v3029_v10 = vpop.f32.mrf.mxu0 }
0x1b82   :  { %v4199_v12 = vpop.f32.mrf.mxu0 }
0x1be9   :  { %v2843_v18 = vpop.xlane.xlu1 %2842 }
0x1bea   :  { %vm2844_vm9 = vcmp.ge.f32.partialorder %v2836_v56, %v2843_v18 }
0x1beb   :  { %v2845_v48 = vsel %vm2844_vm9, %v5122_v6, 16 }
0x1bec   :  { %v2846_v50 = vsel %vm1576_vm2, %v2845_v48, 2147483647 }
0x1bed   :  { %v2848_v14 = vshra.s32 %v2846_v50, 16  ;;  %v2847_v16 = vand.u32 65535, %v2846_v50 }
0x1bef   :  { %v2850_v15 = vcvt.s32.f32 %v2848_v14  ;;  %v2849_v19 = vcvt.s32.f32 %v2847_v16 }
0x1bf1   :  { %2851 = vmin.xlane.f32.xlu0 %v2850_v15 }
0x1c7a   :  { %v2852_v35 = vpop.xlane.xlu0 %2851 }
0x1c7b   :  { %vm2853_vm10 = vcmp.eq.f32.partialorder %v2850_v15, %v2852_v35  ;;  %v2858_v32 = vcvt.f32.s32 %v2852_v35 }
0x1c7c   :  { %v2854_v31 = vsel %vm2853_vm10, %v2849_v19, inf }
0x1c7d   :  { %2855 = vmin.xlane.f32.xlu1 %v2854_v31  ;;  %v2859_v36 = vshll.u32 %v2858_v32, 16 }
0x1d06   :  { %v2856_v17 = vpop.xlane.xlu1 %2855 }
0x1d07   :  { %v2857_v52 = vcvt.f32.s32 %v2856_v17 }
0x1d09   :  { %v2860_v56 = vadd.s32 %v2859_v36, %v2857_v52 }
0x1d0b   :  { %v5909_v2 = vsel %vm2861_vm11, %v2860_v56, %v5820_v9  ;;  %vm2863_vm12 = vcmp.eq.s32.totalorder %v5122_v6, %v2860_v56 }
0x1d0c   :  { %v3525_v55 = vsel %vm2863_vm12, 1.0, %v6076_v37 }
0x1d0d   :  { %v2866_v4 = vpack.c.bf16 %v3525_v55, %v3525_v55 }
0x1d0f   :  { %3526 = vmatmul.mubr.msk.bf16.vlgmr.msra.gmra.mxu1 %vm1159_vm15, %v2866_v4 }
0x1d10   :  { %4175 = vmatpush3.bf16.msra.mxu1 %v5652_v39  ;;  %4176 = vmatprep.mubr.msk.bf16.mxu1 %vm4660_vm0, %v6076_v37 }
0x1d11   :  { %2951 = vmatprep.subr.bf16.mxu1 %v5657_v40 }
0x1d17   :  { %4177 = vmatmul.mubr.msk.bf16.vlgmr.msra.gmra.mxu1 %vm1159_vm15, %v2866_v4 }
0x1d18   :  { %2952 = vmatpush1.bf16.msra.mxu1 %v5661_v53  ;;  %2983 = vmatprep.mubr.bf16.mxu1 %v6075_v7 }
0x1d19   :  { %2953 = vmatprep.subr.bf16.mxu1 %v5665_v42 }
0x1d1c   :  { %2954 = vmatpush1.bf16.msra.mxu1 %v5668_v43 }
0x1d1d   :  { %2955 = vmatprep.subr.bf16.mxu1 %v5671_v58 }
0x1d20   :  { %2956 = vmatpush1.bf16.msra.mxu1 %v5674_v59 }
0x1d21   :  { %2957 = vmatprep.subr.bf16.mxu1 %v5677_v60 }
0x1d24   :  { %2958 = vmatpush1.bf16.msra.mxu1 %v5680_v61 }
0x1d25   :  { %2959 = vmatprep.subr.bf16.mxu1 %v5683_v62 }
0x1d28   :  { %2960 = vmatpush1.bf16.msra.mxu1 %v5686_v63 }
0x1d29   :  { %2961 = vmatprep.subr.bf16.mxu1 %v5689_v20 }
0x1d2c   :  { %2962 = vmatpush1.bf16.msra.mxu1 %v5692_v21 }
0x1d2d   :  { %2963 = vmatprep.subr.bf16.mxu1 %v5695_v29 }
0x1d30   :  { %2964 = vmatpush1.bf16.msra.mxu1 %v5698_v25 }
0x1d31   :  { %2965 = vmatprep.subr.bf16.mxu1 %v5701_v24 }
0x1d34   :  { %2966 = vmatpush1.bf16.msra.mxu1 %v5704_v8 }
0x1d35   :  { %4200 = vmatprep.subr.bf16.mxu1 %v6076_v37 }
0x1d37   :  { %2984 = vmatmul.mubr.bf16.vlgmr.msra.gmra.mxu1 %v5876_v34 }
0x1d38   :  { %4201 = vmatpush3.bf16.msra.mxu1 %v5712_v13  ;;  %4216 = vmatprep.mubr.msk.bf16.mxu1 %vm4660_vm0, %v6076_v37 }
0x1d39   :  { %4202 = vmatprep.subr.bf16.mxu1 %v6076_v37 }
0x1d3c   :  { %4203 = vmatpush3.bf16.msra.mxu1 %v5721_v33 }
0x1d3d   :  { %4204 = vmatprep.subr.bf16.mxu1 %v6076_v37 }
0x1d40   :  { %4205 = vmatpush3.bf16.msra.mxu1 %v5728_v38 }
0x1d41   :  { %4206 = vmatprep.subr.bf16.mxu1 %v6076_v37 }
0x1d44   :  { %4207 = vmatpush3.bf16.msra.mxu1 %v5735_v28 }
0x1d45   :  { %4208 = vmatprep.subr.bf16.mxu1 %v6076_v37 }
0x1d48   :  { %4209 = vmatpush3.bf16.msra.mxu1 %v5742_v30 }
0x1d49   :  { %4210 = vmatprep.subr.bf16.mxu1 %v6076_v37 }
0x1d4c   :  { %4211 = vmatpush3.bf16.msra.mxu1 %v5749_v26 }
0x1d4d   :  { %4212 = vmatprep.subr.bf16.mxu1 %v6076_v37 }
0x1d50   :  { %4213 = vmatpush3.bf16.msra.mxu1 %v5756_v49 }
0x1d51   :  { %4214 = vmatprep.subr.bf16.mxu1 %v6076_v37 }
0x1d54   :  { %4215 = vmatpush3.bf16.msra.mxu1 %v5763_v51 }
0x1d55   :  { %4226 = vmatprep.subr.bf16.mxu1 %v6076_v37 }
0x1dcf   :  { %v2904_v9 = vpop.f32.mrf.mxu1 }
0x1dd0   :  { %v2905_v15 = vadd.f32 %v2904_v9, %v5312_v11 }
0x1dd1   :  { %v2906_v34 = vpop.f32.mrf.mxu1 }
0x1dd2   :  { %v2907_v36 = vadd.f32 %v2906_v34, %v5316_v5 }
0x1dd3   :  { %v2908_v10 = vpop.f32.mrf.mxu1 }
0x1dd5   :  { %v2909_v12 = vpop.f32.mrf.mxu1 }
0x1dd6   :  { %v3046_v12 = vadd.f32 %v5772_v54, %v5903_v23 }
0x1dd7   :  { %v2945_v18 = vpop.f32.mrf.mxu1 }
0x1dd9   :  { %v4178_v48 = vpop.f32.mrf.mxu1 }
0x1dda   :  { %v2946_v48 = vadd.f32 %v2945_v18, %v5325_v22 }
0x1ddb   :  { %v2948_v50 = vpop.f32.mrf.mxu1 }
0x1ddd   :  { %v4179_v14 = vpop.f32.mrf.mxu1 }
0x1df7   :  { %v2985_v16 = vpop.f32.mrf.mxu1 }
0x1df8   :  { %v3032_v35 = vadd.f32 %v2985_v16, %v2905_v15 }
0x1df9   :  { %v2987_v19 = vpop.f32.mrf.mxu1 }
0x1dfa   :  { %v3528_v31 = vmul.f32 -1.442695, %v3032_v35  ;;  %v3033_v52 = vadd.f32 %v2987_v19, %v2907_v36 }
0x1dfb   :  { %v2989_v32 = vpop.f32.mrf.mxu1 }
0x1dfc   :  { %4463 = vpow2.f32 %v3528_v31  ;;  %v3529_v56 = vmul.f32 -1.442695, %v3033_v52 }
0x1dfd   :  { %v2990_v17 = vpop.f32.mrf.mxu1 }
0x1dfe   :  { %4465 = vpow2.f32 %v3529_v56 }
0x1e09   :  { %v4464_v55 = vpop.eup %4463 }
0x1e0a   :  { %v3040_v4 = vadd.f32 1.0, %v4464_v55 }
0x1e0b   :  { %v4466_v10 = vpop.eup %4465 }
0x1e0c   :  { %4467 = vrcp.f32 %v3040_v4  ;;  %v3041_v15 = vadd.f32 1.0, %v4466_v10 }
0x1e19   :  { %v4468_v9 = vpop.eup %4467 }
0x1e1a   :  { %v3047_v50 = vmul.f32 %v4468_v9, %v3046_v12 }
0x1e1c   :  { %v3048_v14 = vadd.f32 %v3047_v50, %v2946_v48 }
0x1e1e   :  { %4469 = vtanh.f32 %v3048_v14 }
0x1e1f   :  { %4471 = vrcp.f32 %v3041_v15 }
0x1e2b   :  { %v4470_v16 = vpop.eup %4469 }
0x1e2c   :  { %v3050_v34 = vsub.f32 %v5872_v0, %v4470_v16  ;;  %v4472_v35 = vpop.eup %4471 }
0x1e2e   :  { %v3051_v19 = vmul.f32 %v4472_v35, %v3050_v34 }
0x1e30   :  { %v5961_v31 = vadd.f32 %v4470_v16, %v3051_v19 }
0x1e32   :  { %v5965_v32 = vpack.c.bf16 %v5961_v31, %v5961_v31 }
0x1e34   :  { %4217 = vmatmul.mubr.bf16.vlgmr.msra.gmra.mxu1 %v5965_v32 }
0x1e35   :  { %4227 = vmatpush3.bf16.msra.mxu1 %v5597_v3  ;;  %4242 = vmatprep.mubr.msk.bf16.mxu1 %vm4660_vm0, %v6076_v37 }
0x1e36   :  { %4228 = vmatprep.subr.bf16.mxu1 %v6076_v37 }
0x1e39   :  { %4229 = vmatpush3.bf16.msra.mxu1 %v5603_v1 }
0x1e3a   :  { %4230 = vmatprep.subr.bf16.mxu1 %v6076_v37 }
0x1e3d   :  { %4231 = vmatpush3.bf16.msra.mxu1 %v5607_v41 }
0x1e3e   :  { %4232 = vmatprep.subr.bf16.mxu1 %v6076_v37 }
0x1e41   :  { %4233 = vmatpush3.bf16.msra.mxu1 %v5611_v45 }
0x1e42   :  { %4234 = vmatprep.subr.bf16.mxu1 %v6076_v37 }
0x1e45   :  { %4235 = vmatpush3.bf16.msra.mxu1 %v5615_v44 }
0x1e46   :  { %4236 = vmatprep.subr.bf16.mxu1 %v6076_v37 }
0x1e49   :  { %4237 = vmatpush3.bf16.msra.mxu1 %v5619_v46 }
0x1e4a   :  { %4238 = vmatprep.subr.bf16.mxu1 %v6076_v37 }
0x1e4d   :  { %4239 = vmatpush3.bf16.msra.mxu1 %v5623_v27 }
0x1e4e   :  { %4240 = vmatprep.subr.bf16.mxu1 %v6076_v37 }
0x1e51   :  { %4241 = vmatpush3.bf16.msra.mxu1 %v5627_v47 }
0x1e54   :  { %4243 = vmatmul.mubr.bf16.vlgmr.msra.gmra.mxu1 %v5965_v32 }
0x1ef4   :  { %v3088_v3 = vpop.f32.mrf.mxu1 }
0x1ef5   :  { %v3089_v1 = vadd.f32 %v5810_v57, %v3088_v3 }
0x1ef6   :  { %v4218_v41 = vpop.f32.mrf.mxu1 }
0x1ef7   :  { %v3094_v45 = vsel %vm1576_vm2, %v3089_v1, -inf }
0x1ef8   :  { %3095 = vmax.xlane.f32.xlu0 %v3094_v45  ;;  %v3091_v44 = vpop.f32.mrf.mxu1 }
0x1efa   :  { %v4219_v0 = vpop.f32.mrf.mxu1 }
0x1f14   :  { %v5988_v46 = vpop.f32.mrf.mxu1 }
0x1f16   :  { %v4244_v23 = vpop.f32.mrf.mxu1 }
0x1f18   :  { %v3282_v18 = vpop.f32.mrf.mxu1 }
0x1f1a   :  { %v4245_v27 = vpop.f32.mrf.mxu1 }
0x1f81   :  { %v3096_v17 = vpop.xlane.xlu0 %3095 }
0x1f82   :  { %vm3097_vm13 = vcmp.ge.f32.partialorder %v3089_v1, %v3096_v17 }
0x1f83   :  { %v3098_v47 = vsel %vm3097_vm13, %v5122_v6, 16 }
0x1f84   :  { %v3099_v36 = vsel %vm1576_vm2, %v3098_v47, 2147483647 }
0x1f85   :  { %v3101_v52 = vshra.s32 %v3099_v36, 16  ;;  %v3100_v55 = vand.u32 65535, %v3099_v36 }
0x1f87   :  { %v3103_v56 = vcvt.s32.f32 %v3101_v52  ;;  %v3102_v10 = vcvt.s32.f32 %v3100_v55 }
0x1f89   :  { %3104 = vmin.xlane.f32.xlu1 %v3103_v56 }
0x2012   :  { %v3105_v4 = vpop.xlane.xlu1 %3104 }
0x2013   :  { %vm3106_vm14 = vcmp.eq.f32.partialorder %v3103_v56, %v3105_v4  ;;  %v3111_v9 = vcvt.f32.s32 %v3105_v4 }
0x2014   :  { %v3107_v12 = vsel %vm3106_vm14, %v3102_v10, inf }
0x2015   :  { %3108 = vmin.xlane.f32.xlu0 %v3107_v12  ;;  %v3112_v50 = vshll.u32 %v3111_v9, 16 }
0x209e   :  { %v3109_v48 = vpop.xlane.xlu0 %3108 }
0x209f   :  { %v3110_v14 = vcvt.f32.s32 %v3109_v48 }
0x20a1   :  { %v3113_v15 = vadd.s32 %v3112_v50, %v3110_v14 }
0x20a3   :  { %vm3116_vm3 = vcmp.eq.s32.totalorder %v5122_v6, %v3113_v15  ;;  %v5995_v16 = vsel %vm3114_vm1, %v3113_v15, %v5909_v2 }
0x20a4   :  { %v3530_v34 = vsel %vm3116_vm3, 1.0, %v6076_v37 }
0x20a5   :  { %v3119_v35 = vpack.c.bf16 %v3530_v34, %v3530_v34 }
0x20a7   :  { %3531 = vmatmul.mubr.msk.bf16.vlgmr.msra.gmra.mxu0 %vm1159_vm15, %v3119_v35 }
0x20a8   :  { %4221 = vmatpush3.bf16.msra.mxu0 %v5652_v39  ;;  %4222 = vmatprep.mubr.msk.bf16.mxu0 %vm4660_vm0, %v6076_v37 }
0x20a9   :  { %3204 = vmatprep.subr.bf16.mxu0 %v5657_v40 }
0x20af   :  { %4223 = vmatmul.mubr.msk.bf16.vlgmr.msra.gmra.mxu0 %vm1159_vm15, %v3119_v35 }
0x20b0   :  { %3205 = vmatpush1.bf16.msra.mxu0 %v5661_v53  ;;  %3236 = vmatprep.mubr.bf16.mxu0 %v6075_v7 }
0x20b1   :  { %3206 = vmatprep.subr.bf16.mxu0 %v5665_v42 }
0x20b4   :  { %3207 = vmatpush1.bf16.msra.mxu0 %v5668_v43 }
0x20b5   :  { %3208 = vmatprep.subr.bf16.mxu0 %v5671_v58 }
0x20b8   :  { %3209 = vmatpush1.bf16.msra.mxu0 %v5674_v59 }
0x20b9   :  { %3210 = vmatprep.subr.bf16.mxu0 %v5677_v60 }
0x20bc   :  { %3211 = vmatpush1.bf16.msra.mxu0 %v5680_v61 }
0x20bd   :  { %3212 = vmatprep.subr.bf16.mxu0 %v5683_v62 }
0x20c0   :  { %3213 = vmatpush1.bf16.msra.mxu0 %v5686_v63 }
0x20c1   :  { %3214 = vmatprep.subr.bf16.mxu0 %v5689_v20 }
0x20c4   :  { %3215 = vmatpush1.bf16.msra.mxu0 %v5692_v21 }
0x20c5   :  { %3216 = vmatprep.subr.bf16.mxu0 %v5695_v29 }
0x20c8   :  { %3217 = vmatpush1.bf16.msra.mxu0 %v5698_v25 }
0x20c9   :  { %3218 = vmatprep.subr.bf16.mxu0 %v5701_v24 }
0x20cc   :  { %3219 = vmatpush1.bf16.msra.mxu0 %v5704_v8 }
0x20cd   :  { %4246 = vmatprep.subr.bf16.mxu0 %v6076_v37 }
0x20cf   :  { %3237 = vmatmul.mubr.bf16.vlgmr.msra.gmra.mxu0 %v5965_v32 }
0x20d0   :  { %4247 = vmatpush3.bf16.msra.mxu0 %v5712_v13  ;;  %4262 = vmatprep.mubr.msk.bf16.mxu0 %vm4660_vm0, %v6076_v37 }
0x20d1   :  { %4248 = vmatprep.subr.bf16.mxu0 %v6076_v37 }
0x20d4   :  { %4249 = vmatpush3.bf16.msra.mxu0 %v5721_v33 }
0x20d5   :  { %4250 = vmatprep.subr.bf16.mxu0 %v6076_v37 }
0x20d8   :  { %4251 = vmatpush3.bf16.msra.mxu0 %v5728_v38 }
0x20d9   :  { %4252 = vmatprep.subr.bf16.mxu0 %v6076_v37 }
0x20dc   :  { %4253 = vmatpush3.bf16.msra.mxu0 %v5735_v28  ;;  %v3299_v28 = vadd.f32 %v5772_v54, %v5988_v46 }
0x20dd   :  { %4254 = vmatprep.subr.bf16.mxu0 %v6076_v37 }
0x20e0   :  { %4255 = vmatpush3.bf16.msra.mxu0 %v5742_v30 }
0x20e1   :  { %4256 = vmatprep.subr.bf16.mxu0 %v6076_v37 }
0x20e4   :  { %4257 = vmatpush3.bf16.msra.mxu0 %v5749_v26 }
0x20e5   :  { %4258 = vmatprep.subr.bf16.mxu0 %v6076_v37 }
0x20e8   :  { %4259 = vmatpush3.bf16.msra.mxu0 %v5756_v49 }
0x20e9   :  { %4260 = vmatprep.subr.bf16.mxu0 %v6076_v37 }
0x20ec   :  { %4261 = vmatpush3.bf16.msra.mxu0 %v5763_v51 }
0x2167   :  { %v3157_v7 = vpop.f32.mrf.mxu0 }
0x2168   :  { %v3158_v60 = vadd.f32 %v3157_v7, %v5312_v11 }
0x2169   :  { %v3159_v39 = vpop.f32.mrf.mxu0 }
0x216a   :  { %v3160_v25 = vadd.f32 %v3159_v39, %v5316_v5 }
0x216b   :  { %v3161_v40 = vpop.f32.mrf.mxu0 }
0x216d   :  { %v3162_v53 = vpop.f32.mrf.mxu0 }
0x216f   :  { %v3198_v42 = vpop.f32.mrf.mxu0 }
0x2170   :  { %v3199_v30 = vadd.f32 %v3198_v42, %v5325_v22 }
0x2171   :  { %v4224_v43 = vpop.f32.mrf.mxu0 }
0x2173   :  { %v3201_v58 = vpop.f32.mrf.mxu0 }
0x2175   :  { %v4225_v59 = vpop.f32.mrf.mxu0 }
0x218f   :  { %v3238_v61 = vpop.f32.mrf.mxu0 }
0x2190   :  { %v3285_v62 = vadd.f32 %v3238_v61, %v3158_v60 }
0x2191   :  { %v3240_v63 = vpop.f32.mrf.mxu0 }
0x2192   :  { %v3533_v20 = vmul.f32 -1.442695, %v3285_v62  ;;  %v3286_v24 = vadd.f32 %v3240_v63, %v3160_v25 }
0x2193   :  { %v3242_v21 = vpop.f32.mrf.mxu0 }
0x2194   :  { %4473 = vpow2.f32 %v3533_v20  ;;  %v3534_v8 = vmul.f32 -1.442695, %v3286_v24 }
0x2195   :  { %v3243_v29 = vpop.f32.mrf.mxu0 }
0x2196   :  { %4475 = vpow2.f32 %v3534_v8 }
0x21a1   :  { %v4474_v13 = vpop.eup %4473 }
0x21a2   :  { %v3293_v33 = vadd.f32 1.0, %v4474_v13 }
0x21a3   :  { %v4476_v38 = vpop.eup %4475 }
0x21a4   :  { %4477 = vrcp.f32 %v3293_v33  ;;  %v3294_v51 = vadd.f32 1.0, %v4476_v38 }
0x21b1   :  { %v4478_v11 = vpop.eup %4477 }
0x21b2   :  { %v3300_v26 = vmul.f32 %v4478_v11, %v3299_v28 }
0x21b4   :  { %v3301_v49 = vadd.f32 %v3300_v26, %v3199_v30 }
0x21b6   :  { %4479 = vtanh.f32 %v3301_v49 }
0x21b7   :  { %4481 = vrcp.f32 %v3294_v51 }
0x21c3   :  { %v4480_v37 = vpop.eup %4479 }
0x21c4   :  { %v3303_v5 = vsub.f32 %v5961_v31, %v4480_v37  ;;  %v4482_v2 = vpop.eup %4481 }
0x21c6   :  { %v3304_v19 = vmul.f32 %v4482_v2, %v3303_v5 }
0x21c8   :  { %v3305_v32 = vadd.f32 %v4480_v37, %v3304_v19 }
0x21ca   :  { %v3306_v3 = vpack.c.bf16 %v3305_v32, %v3305_v32 }
0x21cc   :  { %4263 = vmatmul.mubr.bf16.vlgmr.msra.gmra.mxu0 %v3306_v3 }
0x228c   :  { %v3341_v1 = vpop.f32.mrf.mxu0 }
0x228d   :  { %v3342_v41 = vadd.f32 %v5810_v57, %v3341_v1 }
0x228e   :  { %v4264_v54 = vpop.f32.mrf.mxu0 }
0x228f   :  { %v3347_v45 = vsel %vm1576_vm2, %v3342_v41, -inf }
0x2290   :  { %3348 = vmax.xlane.f32.xlu1 %v3347_v45  ;;  %v3344_v22 = vpop.f32.mrf.mxu0 }
0x2292   :  { %v4265_v44 = vpop.f32.mrf.mxu0 }
0x2319   :  { %v3349_v0 = vpop.xlane.xlu1 %3348 }
0x231a   :  { %vm3350_vm0 = vcmp.ge.f32.partialorder %v3342_v41, %v3349_v0 }
0x231b   :  { %v3351_v46 = vsel %vm3350_vm0, %v5122_v6, 16 }
0x231c   :  { %v3352_v31 = vsel %vm1576_vm2, %v3351_v46, 2147483647 }
0x231d   :  { %v3354_v23 = vshra.s32 %v3352_v31, 16  ;;  %v3353_v27 = vand.u32 65535, %v3352_v31 }
0x231f   :  { %v3356_v18 = vcvt.s32.f32 %v3354_v23  ;;  %v3355_v47 = vcvt.s32.f32 %v3353_v27 }
0x2321   :  { %3357 = vmin.xlane.f32.xlu0 %v3356_v18 }
0x23aa   :  { %v3358_v17 = vpop.xlane.xlu0 %3357 }
0x23ab   :  { %vm3359_vm15 = vcmp.eq.f32.partialorder %v3356_v18, %v3358_v17 }
0x23ac   :  { %v3360_v57 = vsel %vm3359_vm15, %v3355_v47, inf }
0x23ad   :  { %3361 = vmin.xlane.f32.xlu1 %v3360_v57 }
0x23ae   :  { %4611 = shalt.err (!%p4608_p10)
}
0x23af   :  { %3380 = dma.vmem_to_hbm [thread:$0]  %s3378_s27, 64, %s6069_s12, [#allocation4]   ;;  %v3364_v36 = vcvt.f32.s32 %v3358_v17  ;;  %vm3367_vm2 = vcmp.eq.s32.totalorder %v5122_v6, 7  ;;  %vm3369_vm4 = vcmask 60416  }
0x23b0   :  { %s4662_s7 = smov [#allocation11]  }
0x23b1   :  { %v3365_v56 = vshll.u32 %v3364_v36, 16  ;;  %s3387_s6 = sshll.u32 %s4662_s7, 4  ;;  %s3388_s6 = int_to_ptr.vmem [resolvable:$true] %s3387_s6 }
0x23b2   :  { %s4620_s8 = scalar_lea.vmem %s3388_s6, 64  ;;  %p4625_p12 = scmp.lt.s32.totalorder %s3388_s6, %s3388_s6 }
0x23b3   :  { %p4621_p11 = scmp.ne.s32.totalorder %s3388_s6, %s4620_s8  ;;  %p4626_p13 = scmp.lt.s32.totalorder %s4620_s8, %s4620_s8 }
0x23b5   :  { %p4627_p0 = por %p4626_p13, %p4625_p12 }
0x23b7   :  { %p4628_p1 = pnand %p4627_p0, %p4621_p11 }
0x2436   :  { %v3362_v52 = vpop.xlane.xlu1 %3361 }
0x2437   :  { %v3363_v55 = vcvt.f32.s32 %v3362_v52 }
0x2439   :  { %v3366_v4 = vadd.s32 %v3365_v56, %v3363_v55 }
0x243b   :  { %v3368_v10 = vsel %vm3367_vm2, %v3366_v4, %v5995_v16 }
0x243c   :  { %3370 = vst.msk [vmem:[#allocation11] sm:$0xf] %vm3369_vm4, %v3368_v10 }
0x243d   :  { %4631 = shalt.err (!%p4628_p1)
}
0x243e   :  { %3390 = dma.vmem_to_hbm [thread:$0]  %s3388_s6, 64, %s6070_s13, [#allocation12]  }
0x243f   :  { %4646 = dma.done.wait [#allocation4], 64  }
0x2440   :  { %4647 = vsyncadd [#allocation4], 4294967232 }
0x2441   :  { %4648 = dma.done.wait [#allocation12], 64  }
0x2442   :  { %4649 = vsyncadd [#allocation12], 4294967232 }
0x2443   :  { %3397 = vsyncpa [#allocation3], 1 }
0x2444   :  { %3398 = vsyncpa [#allocation6], 1 }
0x2445   :  { %3399 = vsyncpa [#allocation9], 1 }
0x2446   :  { %3400 = vsyncpa [#allocation4], 1 }
0x2447   :  { %3401 = vsyncpa [#allocation12], 1 }

</bundles_post_ra>
